<compile_context>
chip_gen: v7x
topology: tpu7x:2x2x1
jax: 0.10.0
libtpu: 0.0.40
codegen_flags: <defaults>
</compile_context>

<pallas_src>
import jax
import jax.numpy as jnp
from jax import lax
from jax.experimental import pallas as pl
from jax.experimental.pallas import tpu as pltpu

NEG_SLOPE = 0.1      # torch.nn.LeakyReLU(negative_slope=0.1)
TARGET_TS = 2048     # target lane-tile width (columns)


def _round_up(x, m):
    return (x + m - 1) // m * m


def _cdiv(a, b):
    return -(-a // b)


def _pick_tile(span, halo_w):
    """Largest-ish tile that is a multiple of halo_w and splits span evenly."""
    n_tiles = max(1, _cdiv(span, TARGET_TS))
    return _round_up(_cdiv(span, n_tiles), halo_w)


# ---------------------------------------------------------------------------
# Generic fused "tap conv" Pallas kernel (phases + taps folded into one dot)
# ---------------------------------------------------------------------------
# x_rows[n, ci, col] with col = d * Hp * Wp + h * Wp + w (zero-padded volume).
# For an output column c:
#     out[n, :, c] = LeakyReLU( W_fold @ stack_t( x_rows[n, :, c + off_t] ) + b )
# where W_fold is (out_rows, n_t*ci_p): taps folded into the contraction dim
# and (for the deconv) the 8 phases folded into out_rows.  The tap halo is a
# second, halo_w-wide block of the same array (halo_w >= max(offsets)).
def tap_conv(x_rows, w_fold, bias, *, offsets, ts, halo_w, span,
             out_rows, out_dtype):
    n_b, ci_p, sx = x_rows.shape
    n_t = len(offsets)
    assert w_fold.shape == (out_rows, n_t * ci_p), w_fold.shape
    assert ts % halo_w == 0 and max(offsets) <= halo_w
    grid_s = _cdiv(span, ts)
    so = grid_s * ts
    assert sx >= grid_s * ts + halo_w, (sx, grid_s, ts, halo_w)
    ratio = ts // halo_w
    out_bytes = jnp.dtype(out_dtype).itemsize

    def kernel(xa_ref, xb_ref, w_ref, b_ref, o_ref):
        # current tile + halo, both lane-aligned widths (multiples of 128)
        xc = jnp.concatenate([xa_ref[...], xb_ref[...]], axis=-1)   # (ci_p, ts+halo)
        # fold the taps onto the sublane / contraction axis: (n_t*ci_p, ts)
        xt = jnp.concatenate([xc[:, off:off + ts] for off in offsets], axis=0)
        acc = jnp.dot(w_ref[...], xt, preferred_element_type=jnp.float32)
        y = acc + b_ref[...]
        y = jnp.where(y >= 0.0, y, NEG_SLOPE * y)
        o_ref[...] = y.astype(o_ref.dtype)

    # rough per-step VMEM budget: double-buffered operands + in-body temporaries
    est = 2 * (ci_p * ts * 2 + ci_p * halo_w * 2
               + out_rows * n_t * ci_p * 2 + out_rows * 4
               + out_rows * ts * out_bytes)
    est += ci_p * (ts + halo_w) * 2 + n_t * ci_p * ts * 2 + 2 * out_rows * ts * 4
    vmem_limit = int(min(48 * 2 ** 20, max(32 * 2 ** 20, 2 * est)))

    return pl.pallas_call(
        kernel,
        out_shape=jax.ShapeDtypeStruct((n_b, out_rows, so), out_dtype),
        grid_spec=pltpu.PrefetchScalarGridSpec(
            num_scalar_prefetch=0,
            grid=(n_b, grid_s),
            in_specs=[
                pl.BlockSpec((None, ci_p, ts), lambda n, i: (n, 0, i)),
                pl.BlockSpec((None, ci_p, halo_w),
                             lambda n, i: (n, 0, (i + 1) * ratio)),   # halo only
                pl.BlockSpec((out_rows, n_t * ci_p), lambda n, i: (0, 0)),  # const
                pl.BlockSpec((out_rows, 1), lambda n, i: (0, 0)),
            ],
            out_specs=pl.BlockSpec((None, out_rows, ts), lambda n, i: (n, 0, i)),
        ),
        compiler_params=pltpu.CompilerParams(
            dimension_semantics=("parallel", "parallel"),
            vmem_limit_bytes=vmem_limit),
    )(x_rows, x_rows, w_fold, bias)


# ---------------------------------------------------------------------------
# Weight preparation (phase + tap folding)
# ---------------------------------------------------------------------------
def _deconv_folded_weight(w_up, ci_p):
    """Sub-pixel decomposition of ConvTranspose3d(k=4, s=2, p=1) weights.

    Returns (8*cout, 8*ci_p) bf16 with
      row  = q*cout + co   (q = qd*4 + qh*2 + qw, the output parity)
      col  = t*ci_p + ci   (t = td*4 + th*2 + tw, the 2x2x2 tap)
      val  = w_up[ci, co, 3-qd-2*td, 3-qh-2*th, 3-qw-2*tw]
    """
    cin, cout = w_up.shape[0], w_up.shape[1]
    rows = []
    for qd in (0, 1):
        for qh in (0, 1):
            for qw in (0, 1):
                taps = []
                for td in (0, 1):
                    for th in (0, 1):
                        for tw in (0, 1):
                            wt = w_up[:, :, 3 - qd - 2 * td,
                                      3 - qh - 2 * th, 3 - qw - 2 * tw]  # (cin, cout)
                            taps.append(jnp.pad(wt, ((0, ci_p - cin), (0, 0))))
                rows.append(jnp.concatenate(taps, axis=0).T)   # (cout, 8*ci_p)
    return jnp.concatenate(rows, axis=0).astype(jnp.bfloat16)  # (8*cout, 8*ci_p)


def _smooth_folded_weight(w_sm, ci_p):
    """Conv3d(k=3) weights folded to (cout, 27*ci_p) bf16, tap-major columns."""
    cout, cin = w_sm.shape[0], w_sm.shape[1]
    taps = []
    for kd in range(3):
        for kh in range(3):
            for kw in range(3):
                wt = w_sm[:, :, kd, kh, kw]                     # (cout, cin)
                taps.append(jnp.pad(wt, ((0, 0), (0, ci_p - cin))))
    return jnp.concatenate(taps, axis=1).astype(jnp.bfloat16)   # (cout, 27*ci_p)


# ---------------------------------------------------------------------------
# ExpansionBlock3d forward (NCDHW in, NCDHW out)
# ---------------------------------------------------------------------------
def expansion_block3d_forward(x, shortcut, params):
    w_up, b_up = params["w_up"], params["b_up"]          # (F, F//2, 4,4,4), (F//2,)
    w_sm, b_sm = params["w_smooth"], params["b_smooth"]  # (F//2, F//2, 3,3,3), (F//2,)

    n, cin, d, h, w = x.shape
    cout = w_up.shape[1]
    do, ho, wo = 2 * d, 2 * h, 2 * w

    cin_p = _round_up(cin, 16)      # bf16 sublane packing -> (16,128) tiles
    cmid_p = _round_up(cout, 16)

    # ----- stage 1: ConvTranspose3d(k=4, s=2, p=1) + bias + LeakyReLU -------
    hp1, wp1 = h + 2, w + 2
    hw1 = hp1 * wp1
    off1 = [td * hw1 + th * wp1 + tw
            for td in (0, 1) for th in (0, 1) for tw in (0, 1)]
    halo1 = _round_up(max(off1), 128)
    span1 = (d + 1) * hw1                        # columns needed per phase
    ts1 = _pick_tile(span1, halo1)
    grid1 = _cdiv(span1, ts1)
    sx1 = grid1 * ts1 + halo1
    d_extra1 = _cdiv(max(0, sx1 - (d + 2) * hw1), hw1)

    # one pad: conv halo + channel round-up + tile tail (extra D planes)
    xp = jnp.pad(x, ((0, 0), (0, cin_p - cin),
                     (1, 1 + d_extra1), (1, 1), (1, 1)))
    x_rows = xp.reshape(n, cin_p, -1).astype(jnp.bfloat16)

    w1 = _deconv_folded_weight(w_up, cin_p)                       # (8*cout, 8*cin_p)
    b1 = jnp.tile(b_up.astype(jnp.float32), 8).reshape(8 * cout, 1)

    y_ph = tap_conv(x_rows, w1, b1, offsets=off1, ts=ts1, halo_w=halo1,
                    span=span1, out_rows=8 * cout, out_dtype=jnp.bfloat16)

    # sub-pixel interleave of the 8 phases; XLA fuses the shortcut add,
    # stage-2 padding and bf16 cast into this relayout pass.
    y6 = y_ph[:, :, :span1].reshape(n, 8, cout, d + 1, hp1, wp1)
    parts = []
    q = 0
    for qd in (0, 1):
        for qh in (0, 1):
            for qw in (0, 1):
                parts.append(y6[:, q, :, qd:qd + d, qh:qh + h, qw:qw + w])
                q += 1
    y = jnp.stack(parts, axis=-1).reshape(n, cout, d, h, w, 2, 2, 2)
    y = jnp.transpose(y, (0, 1, 2, 5, 3, 6, 4, 7)).reshape(n, cout, do, ho, wo)
    z = y + shortcut                                              # bf16 + f32 -> f32

    # ----- stage 2: Conv3d(k=3, pad=1) + bias + LeakyReLU -------------------
    hp2, wp2 = ho + 2, wo + 2
    hw2 = hp2 * wp2
    off2 = [kd * hw2 + kh * wp2 + kw
            for kd in range(3) for kh in range(3) for kw in range(3)]
    halo2 = _round_up(max(off2), 128)
    span2 = do * hw2
    ts2 = _pick_tile(span2, halo2)
    grid2 = _cdiv(span2, ts2)
    sx2 = grid2 * ts2 + halo2
    d_extra2 = _cdiv(max(0, sx2 - (do + 2) * hw2), hw2)

    zp = jnp.pad(z, ((0, 0), (0, cmid_p - cout),
                     (1, 1 + d_extra2), (1, 1), (1, 1)))
    z_rows = zp.reshape(n, cmid_p, -1).astype(jnp.bfloat16)

    w2 = _smooth_folded_weight(w_sm, cmid_p)                      # (cout, 27*cmid_p)
    b2 = b_sm.astype(jnp.float32).reshape(cout, 1)

    o_rows = tap_conv(z_rows, w2, b2, offsets=off2, ts=ts2, halo_w=halo2,
                      span=span2, out_rows=cout, out_dtype=jnp.float32)

    out = o_rows[:, :, :span2].reshape(n, cout, do, hp2, wp2)
    return out[:, :, :, :ho, :wo]


# ---------------------------------------------------------------------------
# Pure-JAX f32 reference (lax convs) for correctness check
# ---------------------------------------------------------------------------
def _leaky(v):
    return jnp.where(v >= 0, v, NEG_SLOPE * v)


def reference_forward(x, shortcut, params):
    w_up, b_up = params["w_up"], params["b_up"]
    w_sm, b_sm = params["w_smooth"], params["b_smooth"]
    # transposed conv via lhs-dilated conv with the flipped kernel
    w_t = jnp.transpose(jnp.flip(w_up, (2, 3, 4)), (1, 0, 2, 3, 4))
    y = lax.conv_general_dilated(
        x, w_t, window_strides=(1, 1, 1), padding=[(2, 2)] * 3,
        lhs_dilation=(2, 2, 2),
        dimension_numbers=("NCDHW", "OIDHW", "NCDHW")) + b_up.reshape(1, -1, 1, 1, 1)
    z = _leaky(y) + shortcut
    out = lax.conv_general_dilated(
        z, w_sm, window_strides=(1, 1, 1), padding=[(1, 1)] * 3,
        dimension_numbers=("NCDHW", "OIDHW", "NCDHW")) + b_sm.reshape(1, -1, 1, 1, 1)
    return _leaky(out)


# ---------------------------------------------------------------------------
if __name__ == "__main__":
    key = jax.random.PRNGKey(0)
    k1, k2, k3, k4, k5, k6 = jax.random.split(key, 6)

    F = 4                      # number_of_features
    N, D, H, W = 2, 4, 8, 8    # input volume (NCDHW)
    Cout = F // 2

    params = {
        "w_up": 0.1 * jax.random.normal(k1, (F, Cout, 4, 4, 4), jnp.float32),
        "b_up": 0.1 * jax.random.normal(k2, (Cout,), jnp.float32),
        "w_smooth": 0.1 * jax.random.normal(k3, (Cout, Cout, 3, 3, 3), jnp.float32),
        "b_smooth": 0.1 * jax.random.normal(k4, (Cout,), jnp.float32),
    }

    x = jax.random.normal(k5, (N, F, D, H, W), jnp.float32)
    shortcut = jax.random.normal(k6, (N, Cout, 2 * D, 2 * H, 2 * W), jnp.float32)

    out = jax.block_until_ready(jax.jit(expansion_block3d_forward)(x, shortcut, params))
    ref = jax.block_until_ready(reference_forward(x, shortcut, params))

    assert out.shape == (N, Cout, 2 * D, 2 * H, 2 * W), out.shape
    max_err = float(jnp.max(jnp.abs(out - ref)))
    # bf16 activations/weights/intermediate with f32 accumulation.
    assert jnp.allclose(out, ref, atol=5e-2, rtol=5e-2), max_err

    print("KERNEL_OK")
</pallas_src>

<mosaic_0001>
module attributes {stable_mosaic.version = 11 : i64} {
  func.func @kernel(%arg0: i32, %arg1: i32, %arg2: memref<1x16x512xbf16, #tpu.memory_space<vmem>>, %arg3: memref<1x16x128xbf16, #tpu.memory_space<vmem>>, %arg4: memref<16x128xbf16, #tpu.memory_space<vmem>>, %arg5: memref<16x1xf32, #tpu.memory_space<vmem>>, %arg6: memref<1x16x512xbf16, #tpu.memory_space<vmem>>) attributes {dimension_semantics = [#tpu.dimension_semantics<parallel>, #tpu.dimension_semantics<parallel>], iteration_bounds = array<i64: 2, 1>, scalar_prefetch = 0 : i64, scratch_operands = 0 : i64, tpu.core_type = #tpu.core_type<tc>, window_params = [{transform_indices = @transform_0, window_bounds = array<i64: 1, 16, 512>}, {transform_indices = @transform_1, window_bounds = array<i64: 1, 16, 128>}, {pipeline_mode = #tpu.pipeline_mode<synchronous>, transform_indices = @transform_2, window_bounds = array<i64: 16, 128>}, {pipeline_mode = #tpu.pipeline_mode<synchronous>, transform_indices = @transform_3, window_bounds = array<i64: 16, 1>}, {transform_indices = @transform_4, window_bounds = array<i64: 1, 16, 512>}]} {
    %c0 = arith.constant 0 : index
    %c0_0 = arith.constant 0 : index
    %c0_1 = arith.constant 0 : index
    %0 = vector.load %arg2[%c0, %c0_0, %c0_1] : memref<1x16x512xbf16, #tpu.memory_space<vmem>>, vector<1x16x512xbf16>
    %1 = vector.shape_cast %0 : vector<1x16x512xbf16> to vector<16x512xbf16>
    %c0_2 = arith.constant 0 : index
    %c0_3 = arith.constant 0 : index
    %c0_4 = arith.constant 0 : index
    %2 = vector.load %arg3[%c0_2, %c0_3, %c0_4] : memref<1x16x128xbf16, #tpu.memory_space<vmem>>, vector<1x16x128xbf16>
    %3 = vector.shape_cast %2 : vector<1x16x128xbf16> to vector<16x128xbf16>
    %4 = tpu.concatenate %1, %3 in 1 : vector<16x512xbf16>, vector<16x128xbf16> -> vector<16x640xbf16>
    %5 = vector.extract_strided_slice %4 {offsets = [0, 0], sizes = [16, 512], strides = [1, 1]} : vector<16x640xbf16> to vector<16x512xbf16>
    %6 = vector.extract_strided_slice %4 {offsets = [0, 1], sizes = [16, 512], strides = [1, 1]} : vector<16x640xbf16> to vector<16x512xbf16>
    %7 = vector.extract_strided_slice %4 {offsets = [0, 10], sizes = [16, 512], strides = [1, 1]} : vector<16x640xbf16> to vector<16x512xbf16>
    %8 = vector.extract_strided_slice %4 {offsets = [0, 11], sizes = [16, 512], strides = [1, 1]} : vector<16x640xbf16> to vector<16x512xbf16>
    %9 = vector.extract_strided_slice %4 {offsets = [0, 100], sizes = [16, 512], strides = [1, 1]} : vector<16x640xbf16> to vector<16x512xbf16>
    %10 = vector.extract_strided_slice %4 {offsets = [0, 101], sizes = [16, 512], strides = [1, 1]} : vector<16x640xbf16> to vector<16x512xbf16>
    %11 = vector.extract_strided_slice %4 {offsets = [0, 110], sizes = [16, 512], strides = [1, 1]} : vector<16x640xbf16> to vector<16x512xbf16>
    %12 = vector.extract_strided_slice %4 {offsets = [0, 111], sizes = [16, 512], strides = [1, 1]} : vector<16x640xbf16> to vector<16x512xbf16>
    %13 = tpu.concatenate %5, %6, %7, %8, %9, %10, %11, %12 in 0 : vector<16x512xbf16>, vector<16x512xbf16>, vector<16x512xbf16>, vector<16x512xbf16>, vector<16x512xbf16>, vector<16x512xbf16>, vector<16x512xbf16>, vector<16x512xbf16> -> vector<128x512xbf16>
    %c0_5 = arith.constant 0 : index
    %c0_6 = arith.constant 0 : index
    %14 = vector.load %arg4[%c0_5, %c0_6] : memref<16x128xbf16, #tpu.memory_space<vmem>>, vector<16x128xbf16>
    %cst = arith.constant dense<0.000000e+00> : vector<16x512xf32>
    %15 = tpu.matmul %14, %13, %cst {dimension_numbers = #tpu.dot_dimension_numbers<[1], [0], [0], [1], [0, 0, 1, 1], [], []>} : vector<16x128xbf16>, vector<128x512xbf16>, vector<16x512xf32> -> vector<16x512xf32>
    %c0_7 = arith.constant 0 : index
    %c0_8 = arith.constant 0 : index
    %16 = vector.load %arg5[%c0_7, %c0_8] : memref<16x1xf32, #tpu.memory_space<vmem>>, vector<16x1xf32>
    %17 = vector.broadcast %16 : vector<16x1xf32> to vector<16x512xf32>
    %18 = arith.addf %15, %17 : vector<16x512xf32>
    %cst_9 = arith.constant 0.000000e+00 : f32
    %19 = vector.broadcast %cst_9 : f32 to vector<16x512xf32>
    %20 = arith.cmpf oge, %18, %19 : vector<16x512xf32>
    %cst_10 = arith.constant 1.000000e-01 : f32
    %21 = vector.broadcast %cst_10 : f32 to vector<16x512xf32>
    %22 = arith.mulf %21, %18 : vector<16x512xf32>
    %23 = arith.select %20, %18, %22 : vector<16x512xi1>, vector<16x512xf32>
    %24 = arith.truncf %23 : vector<16x512xf32> to vector<16x512xbf16>
    %c0_11 = arith.constant 0 : index
    %c0_12 = arith.constant 0 : index
    %c0_13 = arith.constant 0 : index
    %25 = vector.load %arg6[%c0_11, %c0_12, %c0_13] : memref<1x16x512xbf16, #tpu.memory_space<vmem>>, vector<1x16x512xbf16>
    %26 = vector.shape_cast %25 : vector<1x16x512xbf16> to vector<16x512xbf16>
    %27 = vector.shape_cast %24 : vector<16x512xbf16> to vector<1x16x512xbf16>
    tpu.vector_store %arg6[%c0_11, %c0_12, %c0_13], %27 {strides = array<i32>} : memref<1x16x512xbf16, #tpu.memory_space<vmem>>, vector<1x16x512xbf16>,
    return
  }
  func.func @transform_0(%arg0: i32, %arg1: i32) -> (i32, i32, i32) {
    %c0_i32 = arith.constant 0 : i32
    %c0_i32_0 = arith.constant 0 : i32
    return %arg0, %c0_i32, %arg1 : i32, i32, i32
  }
  func.func @transform_1(%arg0: i32, %arg1: i32) -> (i32, i32, i32) {
    %c1_i32 = arith.constant 1 : i32
    %0 = arith.addi %arg1, %c1_i32 : i32
    %c4_i32 = arith.constant 4 : i32
    %1 = arith.muli %0, %c4_i32 : i32
    %c0_i32 = arith.constant 0 : i32
    %c0_i32_0 = arith.constant 0 : i32
    return %arg0, %c0_i32, %1 : i32, i32, i32
  }
  func.func @transform_2(%arg0: i32, %arg1: i32) -> (i32, i32) {
    %c0_i32 = arith.constant 0 : i32
    %c0_i32_0 = arith.constant 0 : i32
    %c0_i32_1 = arith.constant 0 : i32
    return %c0_i32, %c0_i32_0 : i32, i32
  }
  func.func @transform_3(%arg0: i32, %arg1: i32) -> (i32, i32) {
    %c0_i32 = arith.constant 0 : i32
    %c0_i32_0 = arith.constant 0 : i32
    %c0_i32_1 = arith.constant 0 : i32
    return %c0_i32, %c0_i32_0 : i32, i32
  }
  func.func @transform_4(%arg0: i32, %arg1: i32) -> (i32, i32, i32) {
    %c0_i32 = arith.constant 0 : i32
    %c0_i32_0 = arith.constant 0 : i32
    return %arg0, %c0_i32, %arg1 : i32, i32, i32
  }
}

module attributes {stable_mosaic.version = 11 : i64} {
  func.func @kernel(%arg0: i32, %arg1: i32, %arg2: memref<1x16x1536xbf16, #tpu.memory_space<vmem>>, %arg3: memref<1x16x768xbf16, #tpu.memory_space<vmem>>, %arg4: memref<2x432xbf16, #tpu.memory_space<vmem>>, %arg5: memref<2x1xf32, #tpu.memory_space<vmem>>, %arg6: memref<1x2x1536xf32, #tpu.memory_space<vmem>>) attributes {dimension_semantics = [#tpu.dimension_semantics<parallel>, #tpu.dimension_semantics<parallel>], iteration_bounds = array<i64: 2, 2>, scalar_prefetch = 0 : i64, scratch_operands = 0 : i64, tpu.core_type = #tpu.core_type<tc>, window_params = [{transform_indices = @transform_0, window_bounds = array<i64: 1, 16, 1536>}, {transform_indices = @transform_1, window_bounds = array<i64: 1, 16, 768>}, {pipeline_mode = #tpu.pipeline_mode<synchronous>, transform_indices = @transform_2, window_bounds = array<i64: 2, 432>}, {pipeline_mode = #tpu.pipeline_mode<synchronous>, transform_indices = @transform_3, window_bounds = array<i64: 2, 1>}, {transform_indices = @transform_4, window_bounds = array<i64: 1, 2, 1536>}]} {
    %c0 = arith.constant 0 : index
    %c0_0 = arith.constant 0 : index
    %c0_1 = arith.constant 0 : index
    %0 = vector.load %arg2[%c0, %c0_0, %c0_1] : memref<1x16x1536xbf16, #tpu.memory_space<vmem>>, vector<1x16x1536xbf16>
    %1 = vector.shape_cast %0 : vector<1x16x1536xbf16> to vector<16x1536xbf16>
    %c0_2 = arith.constant 0 : index
    %c0_3 = arith.constant 0 : index
    %c0_4 = arith.constant 0 : index
    %2 = vector.load %arg3[%c0_2, %c0_3, %c0_4] : memref<1x16x768xbf16, #tpu.memory_space<vmem>>, vector<1x16x768xbf16>
    %3 = vector.shape_cast %2 : vector<1x16x768xbf16> to vector<16x768xbf16>
    %4 = tpu.concatenate %1, %3 in 1 : vector<16x1536xbf16>, vector<16x768xbf16> -> vector<16x2304xbf16>
    %5 = vector.extract_strided_slice %4 {offsets = [0, 0], sizes = [16, 1536], strides = [1, 1]} : vector<16x2304xbf16> to vector<16x1536xbf16>
    %6 = vector.extract_strided_slice %4 {offsets = [0, 1], sizes = [16, 1536], strides = [1, 1]} : vector<16x2304xbf16> to vector<16x1536xbf16>
    %7 = vector.extract_strided_slice %4 {offsets = [0, 2], sizes = [16, 1536], strides = [1, 1]} : vector<16x2304xbf16> to vector<16x1536xbf16>
    %8 = vector.extract_strided_slice %4 {offsets = [0, 18], sizes = [16, 1536], strides = [1, 1]} : vector<16x2304xbf16> to vector<16x1536xbf16>
    %9 = vector.extract_strided_slice %4 {offsets = [0, 19], sizes = [16, 1536], strides = [1, 1]} : vector<16x2304xbf16> to vector<16x1536xbf16>
    %10 = vector.extract_strided_slice %4 {offsets = [0, 20], sizes = [16, 1536], strides = [1, 1]} : vector<16x2304xbf16> to vector<16x1536xbf16>
    %11 = vector.extract_strided_slice %4 {offsets = [0, 36], sizes = [16, 1536], strides = [1, 1]} : vector<16x2304xbf16> to vector<16x1536xbf16>
    %12 = vector.extract_strided_slice %4 {offsets = [0, 37], sizes = [16, 1536], strides = [1, 1]} : vector<16x2304xbf16> to vector<16x1536xbf16>
    %13 = vector.extract_strided_slice %4 {offsets = [0, 38], sizes = [16, 1536], strides = [1, 1]} : vector<16x2304xbf16> to vector<16x1536xbf16>
    %14 = vector.extract_strided_slice %4 {offsets = [0, 324], sizes = [16, 1536], strides = [1, 1]} : vector<16x2304xbf16> to vector<16x1536xbf16>
    %15 = vector.extract_strided_slice %4 {offsets = [0, 325], sizes = [16, 1536], strides = [1, 1]} : vector<16x2304xbf16> to vector<16x1536xbf16>
    %16 = vector.extract_strided_slice %4 {offsets = [0, 326], sizes = [16, 1536], strides = [1, 1]} : vector<16x2304xbf16> to vector<16x1536xbf16>
    %17 = vector.extract_strided_slice %4 {offsets = [0, 342], sizes = [16, 1536], strides = [1, 1]} : vector<16x2304xbf16> to vector<16x1536xbf16>
    %18 = vector.extract_strided_slice %4 {offsets = [0, 343], sizes = [16, 1536], strides = [1, 1]} : vector<16x2304xbf16> to vector<16x1536xbf16>
    %19 = vector.extract_strided_slice %4 {offsets = [0, 344], sizes = [16, 1536], strides = [1, 1]} : vector<16x2304xbf16> to vector<16x1536xbf16>
    %20 = vector.extract_strided_slice %4 {offsets = [0, 360], sizes = [16, 1536], strides = [1, 1]} : vector<16x2304xbf16> to vector<16x1536xbf16>
    %21 = vector.extract_strided_slice %4 {offsets = [0, 361], sizes = [16, 1536], strides = [1, 1]} : vector<16x2304xbf16> to vector<16x1536xbf16>
    %22 = vector.extract_strided_slice %4 {offsets = [0, 362], sizes = [16, 1536], strides = [1, 1]} : vector<16x2304xbf16> to vector<16x1536xbf16>
    %23 = vector.extract_strided_slice %4 {offsets = [0, 648], sizes = [16, 1536], strides = [1, 1]} : vector<16x2304xbf16> to vector<16x1536xbf16>
    %24 = vector.extract_strided_slice %4 {offsets = [0, 649], sizes = [16, 1536], strides = [1, 1]} : vector<16x2304xbf16> to vector<16x1536xbf16>
    %25 = vector.extract_strided_slice %4 {offsets = [0, 650], sizes = [16, 1536], strides = [1, 1]} : vector<16x2304xbf16> to vector<16x1536xbf16>
    %26 = vector.extract_strided_slice %4 {offsets = [0, 666], sizes = [16, 1536], strides = [1, 1]} : vector<16x2304xbf16> to vector<16x1536xbf16>
    %27 = vector.extract_strided_slice %4 {offsets = [0, 667], sizes = [16, 1536], strides = [1, 1]} : vector<16x2304xbf16> to vector<16x1536xbf16>
    %28 = vector.extract_strided_slice %4 {offsets = [0, 668], sizes = [16, 1536], strides = [1, 1]} : vector<16x2304xbf16> to vector<16x1536xbf16>
    %29 = vector.extract_strided_slice %4 {offsets = [0, 684], sizes = [16, 1536], strides = [1, 1]} : vector<16x2304xbf16> to vector<16x1536xbf16>
    %30 = vector.extract_strided_slice %4 {offsets = [0, 685], sizes = [16, 1536], strides = [1, 1]} : vector<16x2304xbf16> to vector<16x1536xbf16>
    %31 = vector.extract_strided_slice %4 {offsets = [0, 686], sizes = [16, 1536], strides = [1, 1]} : vector<16x2304xbf16> to vector<16x1536xbf16>
    %32 = tpu.concatenate %5, %6, %7, %8, %9, %10, %11, %12, %13, %14, %15, %16, %17, %18, %19, %20 in 0 : vector<16x1536xbf16>, vector<16x1536xbf16>, vector<16x1536xbf16>, vector<16x1536xbf16>, vector<16x1536xbf16>, vector<16x1536xbf16>, vector<16x1536xbf16>, vector<16x1536xbf16>, vector<16x1536xbf16>, vector<16x1536xbf16>, vector<16x1536xbf16>, vector<16x1536xbf16>, vector<16x1536xbf16>, vector<16x1536xbf16>, vector<16x1536xbf16>, vector<16x1536xbf16> -> vector<256x1536xbf16>
    %33 = tpu.concatenate %21, %22, %23, %24, %25, %26, %27, %28, %29, %30, %31 in 0 : vector<16x1536xbf16>, vector<16x1536xbf16>, vector<16x1536xbf16>, vector<16x1536xbf16>, vector<16x1536xbf16>, vector<16x1536xbf16>, vector<16x1536xbf16>, vector<16x1536xbf16>, vector<16x1536xbf16>, vector<16x1536xbf16>, vector<16x1536xbf16> -> vector<176x1536xbf16>
    %34 = tpu.concatenate %32, %33 in 0 : vector<256x1536xbf16>, vector<176x1536xbf16> -> vector<432x1536xbf16>
    %c0_5 = arith.constant 0 : index
    %c0_6 = arith.constant 0 : index
    %35 = vector.load %arg4[%c0_5, %c0_6] : memref<2x432xbf16, #tpu.memory_space<vmem>>, vector<2x432xbf16>
    %cst = arith.constant dense<0.000000e+00> : vector<2x1536xf32>
    %36 = tpu.matmul %35, %34, %cst {dimension_numbers = #tpu.dot_dimension_numbers<[1], [0], [0], [1], [0, 0, 1, 1], [], []>} : vector<2x432xbf16>, vector<432x1536xbf16>, vector<2x1536xf32> -> vector<2x1536xf32>
    %c0_7 = arith.constant 0 : index
    %c0_8 = arith.constant 0 : index
    %37 = vector.load %arg5[%c0_7, %c0_8] : memref<2x1xf32, #tpu.memory_space<vmem>>, vector<2x1xf32>
    %38 = vector.broadcast %37 : vector<2x1xf32> to vector<2x1536xf32>
    %39 = arith.addf %36, %38 : vector<2x1536xf32>
    %cst_9 = arith.constant 0.000000e+00 : f32
    %40 = vector.broadcast %cst_9 : f32 to vector<2x1536xf32>
    %41 = arith.cmpf oge, %39, %40 : vector<2x1536xf32>
    %cst_10 = arith.constant 1.000000e-01 : f32
    %42 = vector.broadcast %cst_10 : f32 to vector<2x1536xf32>
    %43 = arith.mulf %42, %39 : vector<2x1536xf32>
    %44 = arith.select %41, %39, %43 : vector<2x1536xi1>, vector<2x1536xf32>
    %c0_11 = arith.constant 0 : index
    %c0_12 = arith.constant 0 : index
    %c0_13 = arith.constant 0 : index
    %45 = vector.load %arg6[%c0_11, %c0_12, %c0_13] : memref<1x2x1536xf32, #tpu.memory_space<vmem>>, vector<1x2x1536xf32>
    %46 = vector.shape_cast %45 : vector<1x2x1536xf32> to vector<2x1536xf32>
    %47 = vector.shape_cast %44 : vector<2x1536xf32> to vector<1x2x1536xf32>
    tpu.vector_store %arg6[%c0_11, %c0_12, %c0_13], %47 {strides = array<i32>} : memref<1x2x1536xf32, #tpu.memory_space<vmem>>, vector<1x2x1536xf32>,
    return
  }
  func.func @transform_0(%arg0: i32, %arg1: i32) -> (i32, i32, i32) {
    %c0_i32 = arith.constant 0 : i32
    %c0_i32_0 = arith.constant 0 : i32
    return %arg0, %c0_i32, %arg1 : i32, i32, i32
  }
  func.func @transform_1(%arg0: i32, %arg1: i32) -> (i32, i32, i32) {
    %c1_i32 = arith.constant 1 : i32
    %0 = arith.addi %arg1, %c1_i32 : i32
    %c2_i32 = arith.constant 2 : i32
    %1 = arith.muli %0, %c2_i32 : i32
    %c0_i32 = arith.constant 0 : i32
    %c0_i32_0 = arith.constant 0 : i32
    return %arg0, %c0_i32, %1 : i32, i32, i32
  }
  func.func @transform_2(%arg0: i32, %arg1: i32) -> (i32, i32) {
    %c0_i32 = arith.constant 0 : i32
    %c0_i32_0 = arith.constant 0 : i32
    %c0_i32_1 = arith.constant 0 : i32
    return %c0_i32, %c0_i32_0 : i32, i32
  }
  func.func @transform_3(%arg0: i32, %arg1: i32) -> (i32, i32) {
    %c0_i32 = arith.constant 0 : i32
    %c0_i32_0 = arith.constant 0 : i32
    %c0_i32_1 = arith.constant 0 : i32
    return %c0_i32, %c0_i32_0 : i32, i32
  }
  func.func @transform_4(%arg0: i32, %arg1: i32) -> (i32, i32, i32) {
    %c0_i32 = arith.constant 0 : i32
    %c0_i32_0 = arith.constant 0 : i32
    return %arg0, %c0_i32, %arg1 : i32, i32, i32
  }
}

</mosaic_0001>

<bundles_post_ra>
// kernel: tile.8
= control target key start
LH: loop header
LB: loop body
LE: loop exit
PB: predicated region body
PF: predicated region fallthrough
CT: control target
= control target key end

     0   :  { %s22_s0 = inlined_call_operand.vmem [shape: f32[2], index: 0, kind: input, shape index: {}]   ;;  %s23_s1 = inlined_call_operand.vmem [shape: f32[8,2], index: 1, kind: output, shape index: {}]  }
   0x1   :  { %v4_v0 = vld [vmem:[%s22_s0] ss:$0 sm:$0xff] }
   0x2   :  { %5 = vst [vmem:[%s23_s1] sm:$0xff] %v4_v0 }

// kernel: tile.0
= control target key start
LH: loop header
LB: loop body
LE: loop exit
PB: predicated region body
PF: predicated region fallthrough
CT: control target
= control target key end

     0   :  { %vm3_vm0 = vcmask 7168   ;;  %s13_s9 = smov 127   ;;  %s33_s0 = inlined_call_operand.vmem [shape: f32[8,2], index: 0, kind: input, shape index: {}]   ;;  %s34_s1 = inlined_call_operand.vmem [shape: f32[16,1], index: 1, kind: output, shape index: {}]  }
   0x1   :  { %v2_v0 = vld [vmem:[%s33_s0] sm:$0xff]  }
   0x2   :  { %4 = vst.msk [vmem:[%s34_s1] ss:$2 sm:$0xff] %vm3_vm0, %v2_v0   ;;  %6 = vrot.lane.b32.xlu0 %v2_v0, %s13_s9 }
  0x74   :  { %v7_v1 = vpop.permute.xlu0 %6  }
  0x75   :  { %11 = vst.msk [vmem:[%s34_s1 + $0x1] ss:$2 sm:$0xff] %vm3_vm0, %v7_v1  }

// kernel: expansion_block3d_forward.2
= control target key start
LH: loop header
LB: loop body
LE: loop exit
PB: predicated region body
PF: predicated region fallthrough
CT: control target
= control target key end

     0   :  { %s1479_s15 = smov 0   ;;  %s1481_s16 = smov 0   ;;  %s1567_s0 = inlined_call_operand.vmem [shape: bf16[2,16,700], index: 0, kind: input, shape index: {}, may-alias: {0,1}]   ;;  %s1568_s1 = inlined_call_operand.vmem [shape: bf16[2,16,700], index: 1, kind: input, shape index: {}, may-alias: {0,1}]   ;;  %s1569_s2 = inlined_call_operand.vmem [shape: bf16[16,128], index: 2, kind: input, shape index: {}]   ;;  %s1570_s3 = inlined_call_operand.vmem [shape: f32[16,1], index: 3, kind: input, shape index: {}]   ;;  %s1571_s4 = inlined_call_operand.vmem [shape: bf16[2,16,512], index: 4, kind: output, shape index: {}]  }
   0x1   :  { %s1483_s17 = smov 0   ;;  %s1485_s18 = smov 0  }
   0x2   :  { %s1487_s19 = smov 0  }
   0x3 LB: > { %s26_s20 = sadd.s32 1, %s1424_s18  ;;  %p42_p1 = scmp.ne.s32.totalorder %s1416_s16, %s1412_s15  ;;  %s1428_s19 = sphi %s1487_s19, %s14_s19   ;;  %s1424_s18 = sphi %s1485_s18, %s1576_s18   ;;  %s1420_s17 = sphi %s1483_s17, %s1575_s17   ;;  %s1416_s16 = sphi %s1481_s16, %s1574_s16   ;;  %s1412_s15 = sphi %s1479_s15, %s1573_s15  }
   0x4   : > { %p28_p0 = scmp.ge.s32.totalorder %s26_s20, 2  ;;  %p43_p2 = scmp.eq.s32.totalorder %s1428_s19, 0 }
   0x5   : > { %s35_s23 = sadd.s32 1, %s1416_s16  ;;  %p1244_p5 = scmp.ge.s32.totalorder %s1428_s19, 2 }
   0x6   : > { %s1578_s20 = smov (%p28_p0, %s26_s20), 0  ;;  %p1510_p3 = por %p43_p2, %p42_p1 }
   0x7   : > { %s30_s22 = ssub.s32 %s1424_s18, %s1578_s20  ;;  %176 = sbr.rel (%p1244_p5) target bundleno = 38 (0x26), region = 24 }
   0x8   : > { %p33_p4 = scmp.eq.s32.totalorder %s30_s22, 0 }
   0xa   : > { %s1518_s24 = scalar_select %p33_p4, %s1416_s16, %s35_s23  }
   0xe   : > { %179 = sbr.rel (!%p1510_p3) target bundleno = 31 (0x1f), region = 28  ;;  %s181_s25 = sand.u32 (%p1510_p3), 1, %s1416_s16  }
   0xf   : > { %s1283_s26 = smul.u32 (%p1510_p3), 48, %s1424_s18  ;;  %s1245_s27 = sshll.u32 (%p1510_p3), %s181_s25, 5 }
  0x10   : > { %s183_s5 = scalar_lea.vmem (%p1510_p3), [#allocation2], %s1245_s27   ;;  %s1438_s8 = smov (%p1510_p3), 0  }
  0x11   : > { %s193_s30 = scalar_lea.vmem (%p1510_p3), %s1567_s0, %s1283_s26   ;;  %s1430_s6 = smov (%p1510_p3), %s183_s5  }
  0x12   : > { %s1434_s7 = smov (%p1510_p3), %s193_s30   ;;  %s1442_s9 = smov (%p1510_p3), 0  }
  0x15 LB: >> { %v391_v0 = vld [vmem:[%s1436_s7] sm:$0xff]  ;;  %v393_v1 = vld [vmem:[%s1436_s7 + $0x18] sm:$0xff]  ;;  %s395_s10 = sadd.s32 1, %s1440_s8  ;;  %s385_s9 = sadd.s32 1, %s1444_s9   ;;  %s1444_s9 = sphi %s1442_s9, %s385_s9   ;;  %s1440_s8 = sphi %s1438_s8, %s1439_s8   ;;  %s1436_s7 = sphi %s1434_s7, %s400_s7   ;;  %s1432_s6 = sphi %s1430_s6, %s401_s6  }
  0x16   : >> { %392 = vst [vmem:[%s1432_s6] sm:$0xff] %v391_v0  ;;  %394 = vst [vmem:[%s1432_s6 + $0x10] sm:$0xff] %v393_v1  ;;  %p396_p6 = scmp.ge.s32.totalorder %s395_s10, 2  ;;  %p384_p7 = scmp.ge.s32.totalorder %s385_s9, 2 }
  0x18   : >> { %s1580_s10 = smov (%p396_p6, %s395_s10), 0  ;;  %387 = sbr.rel (!%p384_p7) target bundleno = 21 (0x15), region = 215 }
  0x19   : >> { %s1249_s11 = sshll.u32 %s1580_s10, 3  ;;  %s1439_s8 = smov %s1580_s10  }
  0x1a   : >> { %s400_s7 = scalar_lea.vmem %s193_s30, %s1249_s11   ;;  %s401_s6 = scalar_lea.vmem %s183_s5, %s1249_s11 [#allocation2]  }
  0x1f PF: > { %605 = sbr.rel (!%p1510_p3) target bundleno = 38 (0x26), region = 94  ;;  %s607_s12 = sand.u32 (%p1510_p3), 1, %s1416_s16  }
  0x20   : > { %s1258_s13 = smul.u32 (%p1510_p3), 48, %s1424_s18  ;;  %s1257_s14 = sshll.u32 (%p1510_p3), %s607_s12, 3 }
  0x21   : > { %s609_s26 = scalar_lea.vmem (%p1510_p3), [#allocation3], %s1257_s14 }
  0x22   : > { %s1112_s25 = scalar_lea.vmem (%p1510_p3), %s1568_s1, %s1258_s13 }
  0x23   : > { %v1259_v2 = vld [vmem:[%s1112_s25 + $0x10] sm:$0xf] (%p1510_p3)  ;;  %v1260_v3 = vld [vmem:[%s1112_s25 + $0x28] sm:$0xf] (%p1510_p3) }
  0x24   : > { %632 = vst [vmem:[%s609_s26] sm:$0xf] (%p1510_p3), %v1259_v2  ;;  %634 = vst [vmem:[%s609_s26 + $0x4] sm:$0xf] (%p1510_p3), %v1260_v3 }
  0x26 PF: > { %p1261_p8 = scmp.ge.s32.totalorder %s1428_s19, 1  ;;  %p660_p9 = scmp.lt.s32.totalorder %s1428_s19, 3 }
  0x28   : > { %p661_p10 = pnand %p1261_p8, %p660_p9 }
  0x29   : > { %s667_s21 = sand.u32 (!%p661_p10), 1, %s1412_s15   ;;  %s1446_s30 = smov (!%p661_p10), 127   ;;  %v1452_v9 = vmov (!%p661_p10), 0   ;;  %v891_v10 = vld [vmem:[%s1570_s3] sm:$0xff] (!%p661_p10)  ;;  %v892_v11 = vld [vmem:[%s1570_s3 + $0x8] sm:$0xff] (!%p661_p10)  ;;  %vm766_vm0 = vcmask (!%p661_p10), 1039360  }
  0x2a   : > { %664 = sbr.rel (%p661_p10) target bundleno = 458 (0x1ca), region = 135  ;;  %s1262_s27 = sshll.u32 (!%p661_p10), %s667_s21, 5  ;;  %984 = vmatprep.mubr.bf16.mxu1 (!%p661_p10), %v1452_v9  ;;  %941 = vmatprep.mubr.bf16.mxu0 (!%p661_p10), %v1452_v9  ;;  %vm785_vm1 = vcmask (!%p661_p10), 965632   ;;  %vm804_vm2 = vcmask (!%p661_p10), 957440   ;;  %vm823_vm3 = vcmask (!%p661_p10), 228352   ;;  %vm842_vm4 = vcmask (!%p661_p10), 220160  }
  0x2b   : > { %s1263_s28 = sshll.u32 (!%p661_p10), %s667_s21, 3  ;;  %s669_s29 = scalar_lea.vmem (!%p661_p10), [#allocation2], %s1262_s27  ;;  %1364 = vset.pattern.permute.xlu1 (!%p661_p10), %v1452_v9  ;;  %1365 = vset.pattern.permute.xlu0 (!%p661_p10), %v1452_v9  ;;  %vm861_vm5 = vcmask (!%p661_p10), 146432   ;;  %vm880_vm6 = vcmask (!%p661_p10), 138240   ;;  %v1373_v9 = vld [vmem:[%s1569_s2] sm:$0xff] (!%p661_p10)  }
  0x2c   : > { %v1366_v4 = vld [vmem:[%s669_s29 + $0xc] ss:$16 sps:$4 sm:$0xff] (!%p661_p10)   ;;  %v1368_v5 = vld [vmem:[%s669_s29 + $0x4] ss:$16 sps:$4 sm:$0xff] (!%p661_p10)   ;;  %s676_s5 = scalar_lea.vmem (!%p661_p10), [#allocation3], %s1263_s28  ;;  %s1447_s6 = smov (!%p661_p10), 118  }
  0x2d   : > { %762 = vrot.lane.b32.xlu1 (!%p661_p10), %v1366_v4, %s1446_s30  ;;  %v1370_v6 = vld [vmem:[%s676_s5] sm:$0xff] (!%p661_p10)   ;;  %952 = vmatprep.subr.bf16.mxu1 (!%p661_p10), %v1366_v4  ;;  %s1448_s15 = smov (!%p661_p10), 117   ;;  %s1449_s7 = smov (!%p661_p10), 28  }
  0x2e   : > { %758 = vrot.lane.b32.xlu0 (!%p661_p10), %v1368_v5, %s1446_s30  ;;  %v1371_v7 = vld [vmem:[%s669_s29 + $0x8] ss:$16 sps:$4 sm:$0xff] (!%p661_p10)   ;;  %v1372_v8 = vld [vmem:[%s669_s29] ss:$16 sps:$4 sm:$0xff] (!%p661_p10)   ;;  %909 = vmatprep.subr.bf16.mxu0 (!%p661_p10), %v1368_v5  ;;  %s1450_s8 = smov (!%p661_p10), 27   ;;  %s1451_s9 = smov (!%p661_p10), 18  }
  0x2f   : > { %953 = vmatpush1.bf16.msra.mxu1 (!%p661_p10), %v1371_v7  ;;  %910 = vmatpush1.bf16.msra.mxu0 (!%p661_p10), %v1372_v8  ;;  %s1453_s10 = smov (!%p661_p10), 17   ;;  %p715_p11 = scmp.lt.s32.totalorder (!%p661_p10), %s1420_s17, 1 }
  0x31   : > { %764 = vrot.lane.b32.xlu1 %v1370_v6, %s1446_s30  ;;  %s1582_s17 = smov (!%p715_p11, %s1420_s17), 1 }
  0x32   : > { %760 = vrot.lane.b32.xlu0 %v1371_v7, %s1446_s30  ;;  %s1278_s25 = sshll.u32 %s1582_s17, 5 }
  0x33   : > { %s722_s27 = scalar_lea.vmem %s1571_s4, %s1278_s25 }
  0x35   : > { %777 = vrot.lane.b32.xlu1 %v1368_v5, %s1447_s6 }
  0x36   : > { %756 = vrot.lane.b32.xlu0 %v1372_v8, %s1446_s30 }
  0x39   : > { %781 = vrot.lane.b32.xlu1 %v1366_v4, %s1447_s6 }
  0x3a   : > { %779 = vrot.lane.b32.xlu0 %v1371_v7, %s1447_s6 }
  0x3d   : > { %775 = vrot.lane.b32.xlu1 %v1372_v8, %s1447_s6 }
  0x3e   : > { %783 = vrot.lane.b32.xlu0 %v1370_v6, %s1447_s6 }
  0x41   : > { %798 = vrot.lane.b32.xlu1 %v1371_v7, %s1448_s15 }
  0x42   : > { %796 = vrot.lane.b32.xlu0 %v1368_v5, %s1448_s15 }
  0x45   : > { %802 = vrot.lane.b32.xlu1 %v1370_v6, %s1448_s15 }
  0x46   : > { %800 = vrot.lane.b32.xlu0 %v1366_v4, %s1448_s15 }
  0x49   : > { %815 = vrot.lane.b32.xlu1 %v1368_v5, %s1449_s7 }
  0x4a   : > { %794 = vrot.lane.b32.xlu0 %v1372_v8, %s1448_s15 }
  0x4d   : > { %819 = vrot.lane.b32.xlu1 %v1366_v4, %s1449_s7 }
  0x4e   : > { %817 = vrot.lane.b32.xlu0 %v1371_v7, %s1449_s7 }
  0x51   : > { %813 = vrot.lane.b32.xlu1 %v1372_v8, %s1449_s7 }
  0x52   : > { %821 = vrot.lane.b32.xlu0 %v1370_v6, %s1449_s7 }
  0x55   : > { %836 = vrot.lane.b32.xlu1 %v1371_v7, %s1450_s8 }
  0x56   : > { %834 = vrot.lane.b32.xlu0 %v1368_v5, %s1450_s8 }
  0x59   : > { %840 = vrot.lane.b32.xlu1 %v1370_v6, %s1450_s8 }
  0x5a   : > { %838 = vrot.lane.b32.xlu0 %v1366_v4, %s1450_s8 }
  0x5d   : > { %853 = vrot.lane.b32.xlu1 %v1368_v5, %s1451_s9 }
  0x5e   : > { %832 = vrot.lane.b32.xlu0 %v1372_v8, %s1450_s8 }
  0x61   : > { %857 = vrot.lane.b32.xlu1 %v1366_v4, %s1451_s9 }
  0x62   : > { %855 = vrot.lane.b32.xlu0 %v1371_v7, %s1451_s9 }
  0x65   : > { %851 = vrot.lane.b32.xlu1 %v1372_v8, %s1451_s9 }
  0x66   : > { %859 = vrot.lane.b32.xlu0 %v1370_v6, %s1451_s9 }
  0x69   : > { %874 = vrot.lane.b32.xlu1 %v1371_v7, %s1453_s10 }
  0x6a   : > { %872 = vrot.lane.b32.xlu0 %v1368_v5, %s1453_s10 }
  0x6d   : > { %878 = vrot.lane.b32.xlu1 %v1370_v6, %s1453_s10 }
  0x6e   : > { %876 = vrot.lane.b32.xlu0 %v1366_v4, %s1453_s10 }
  0x71   : > { %895 = vperm.xlu1 %1364, %v891_v10  }
  0x72   : > { %870 = vrot.lane.b32.xlu0 %v1372_v8, %s1453_s10 }
  0x76   : > { %900 = vperm.xlu0 %1365, %v892_v11  }
  0x9f   : > { %v763_v12 = vpop.permute.xlu1 %762 }
  0xa0   : > { %v759_v13 = vpop.permute.xlu0 %758 }
  0xa3   : > { %v765_v14 = vpop.permute.xlu1 %764 }
  0xa4   : > { %v761_v15 = vpop.permute.xlu0 %760  ;;  %v770_v16 = vsel %vm766_vm0, %v763_v12, %v765_v14 }
  0xa5   : > { %v768_v17 = vsel %vm766_vm0, %v759_v13, %v761_v15  ;;  %954 = vmatprep.subr.bf16.mxu1 %v770_v16  ;;  %v769_v18 = vsel %vm766_vm0, %v761_v15, %v763_v12 }
  0xa6   : > { %911 = vmatprep.subr.bf16.mxu0 %v768_v17  ;;  %955 = vmatpush1.bf16.msra.mxu1 %v769_v18 }
  0xa7   : > { %v778_v19 = vpop.permute.xlu1 %777 }
  0xa8   : > { %v757_v20 = vpop.permute.xlu0 %756 }
  0xa9   : > { %v767_v21 = vsel %vm766_vm0, %v757_v20, %v759_v13 }
  0xaa   : > { %912 = vmatpush1.bf16.msra.mxu0 %v767_v21 }
  0xab   : > { %v782_v22 = vpop.permute.xlu1 %781 }
  0xac   : > { %v780_v23 = vpop.permute.xlu0 %779 }
  0xad   : > { %v787_v24 = vsel %vm785_vm1, %v778_v19, %v780_v23  ;;  %v788_v29 = vsel %vm785_vm1, %v780_v23, %v782_v22 }
  0xae   : > { %913 = vmatprep.subr.bf16.mxu0 %v787_v24 }
  0xaf   : > { %v776_v25 = vpop.permute.xlu1 %775 }
  0xb0   : > { %v784_v26 = vpop.permute.xlu0 %783  ;;  %v786_v27 = vsel %vm785_vm1, %v776_v25, %v778_v19 }
  0xb1   : > { %914 = vmatpush1.bf16.msra.mxu0 %v786_v27  ;;  %v789_v28 = vsel %vm785_vm1, %v782_v22, %v784_v26 }
  0xb2   : > { %956 = vmatprep.subr.bf16.mxu1 %v789_v28 }
  0xb3   : > { %957 = vmatpush1.bf16.msra.mxu1 %v788_v29  ;;  %v799_v30 = vpop.permute.xlu1 %798 }
  0xb4   : > { %v797_v31 = vpop.permute.xlu0 %796 }
  0xb5   : > { %v806_v32 = vsel %vm804_vm2, %v797_v31, %v799_v30 }
  0xb6   : > { %915 = vmatprep.subr.bf16.mxu0 %v806_v32 }
  0xb7   : > { %v803_v33 = vpop.permute.xlu1 %802 }
  0xb8   : > { %v801_v34 = vpop.permute.xlu0 %800 }
  0xb9   : > { %v808_v35 = vsel %vm804_vm2, %v801_v34, %v803_v33  ;;  %v807_v36 = vsel %vm804_vm2, %v799_v30, %v801_v34 }
  0xba   : > { %958 = vmatprep.subr.bf16.mxu1 %v808_v35 }
  0xbb   : > { %959 = vmatpush1.bf16.msra.mxu1 %v807_v36  ;;  %v816_v37 = vpop.permute.xlu1 %815 }
  0xbc   : > { %v795_v38 = vpop.permute.xlu0 %794 }
  0xbd   : > { %v805_v39 = vsel %vm804_vm2, %v795_v38, %v797_v31 }
  0xbe   : > { %916 = vmatpush1.bf16.msra.mxu0 %v805_v39 }
  0xbf   : > { %v820_v40 = vpop.permute.xlu1 %819 }
  0xc0   : > { %v818_v41 = vpop.permute.xlu0 %817 }
  0xc1   : > { %v825_v42 = vsel %vm823_vm3, %v816_v37, %v818_v41  ;;  %v826_v47 = vsel %vm823_vm3, %v818_v41, %v820_v40 }
  0xc2   : > { %917 = vmatprep.subr.bf16.mxu0 %v825_v42 }
  0xc3   : > { %v814_v43 = vpop.permute.xlu1 %813 }
  0xc4   : > { %v822_v44 = vpop.permute.xlu0 %821  ;;  %v824_v45 = vsel %vm823_vm3, %v814_v43, %v816_v37 }
  0xc5   : > { %918 = vmatpush1.bf16.msra.mxu0 %v824_v45  ;;  %v827_v46 = vsel %vm823_vm3, %v820_v40, %v822_v44 }
  0xc6   : > { %960 = vmatprep.subr.bf16.mxu1 %v827_v46 }
  0xc7   : > { %961 = vmatpush1.bf16.msra.mxu1 %v826_v47  ;;  %v837_v48 = vpop.permute.xlu1 %836 }
  0xc8   : > { %v835_v49 = vpop.permute.xlu0 %834 }
  0xc9   : > { %v844_v50 = vsel %vm842_vm4, %v835_v49, %v837_v48 }
  0xca   : > { %919 = vmatprep.subr.bf16.mxu0 %v844_v50 }
  0xcb   : > { %v841_v51 = vpop.permute.xlu1 %840 }
  0xcc   : > { %v839_v52 = vpop.permute.xlu0 %838 }
  0xcd   : > { %v846_v53 = vsel %vm842_vm4, %v839_v52, %v841_v51  ;;  %v845_v54 = vsel %vm842_vm4, %v837_v48, %v839_v52 }
  0xce   : > { %962 = vmatprep.subr.bf16.mxu1 %v846_v53 }
  0xcf   : > { %963 = vmatpush1.bf16.msra.mxu1 %v845_v54  ;;  %v854_v55 = vpop.permute.xlu1 %853 }
  0xd0   : > { %v833_v56 = vpop.permute.xlu0 %832 }
  0xd1   : > { %v843_v57 = vsel %vm842_vm4, %v833_v56, %v835_v49 }
  0xd2   : > { %920 = vmatpush1.bf16.msra.mxu0 %v843_v57 }
  0xd3   : > { %v858_v58 = vpop.permute.xlu1 %857 }
  0xd4   : > { %v856_v59 = vpop.permute.xlu0 %855 }
  0xd5   : > { %v863_v60 = vsel %vm861_vm5, %v854_v55, %v856_v59  ;;  %v864_v1 = vsel %vm861_vm5, %v856_v59, %v858_v58 }
  0xd6   : > { %921 = vmatprep.subr.bf16.mxu0 %v863_v60 }
  0xd7   : > { %v852_v61 = vpop.permute.xlu1 %851 }
  0xd8   : > { %v860_v62 = vpop.permute.xlu0 %859  ;;  %v862_v63 = vsel %vm861_vm5, %v852_v61, %v854_v55 }
  0xd9   : > { %922 = vmatpush1.bf16.msra.mxu0 %v862_v63  ;;  %v865_v0 = vsel %vm861_vm5, %v858_v58, %v860_v62 }
  0xda   : > { %964 = vmatprep.subr.bf16.mxu1 %v865_v0 }
  0xdb   : > { %965 = vmatpush1.bf16.msra.mxu1 %v864_v1  ;;  %v875_v2 = vpop.permute.xlu1 %874 }
  0xdc   : > { %v873_v3 = vpop.permute.xlu0 %872 }
  0xdd   : > { %v882_v4 = vsel %vm880_vm6, %v873_v3, %v875_v2 }
  0xde   : > { %923 = vmatprep.subr.bf16.mxu0 %v882_v4 }
  0xdf   : > { %v879_v5 = vpop.permute.xlu1 %878 }
  0xe0   : > { %v877_v6 = vpop.permute.xlu0 %876 }
  0xe1   : > { %v884_v7 = vsel %vm880_vm6, %v877_v6, %v879_v5  ;;  %v883_v8 = vsel %vm880_vm6, %v875_v2, %v877_v6 }
  0xe2   : > { %966 = vmatprep.subr.bf16.mxu1 %v884_v7 }
  0xe3   : > { %967 = vmatpush1.bf16.msra.mxu1 %v883_v8 }
  0xe4   : > { %v871_v10 = vpop.permute.xlu0 %870 }
  0xe5   : > { %v881_v11 = vsel %vm880_vm6, %v871_v10, %v873_v3 }
  0xe6   : > { %924 = vmatpush1.bf16.msra.mxu0 %v881_v11  ;;  %985 = vmatmul.mubr.bf16.vlgmr.msra.gmra.mrb[0].mxu1 %v1373_v9 }
  0xe9   : > { %942 = vmatmul.mubr.bf16.vlgmr.msra.gmra.mrb[0].mxu0 %v1373_v9 }
  0xf0   : > { %v896_v12 = vpop.permute.xlu1 %895 }
  0xf5   : > { %v901_v14 = vpop.permute.xlu0 %900 }
 0x1b9   : > { %v986_v13 = vpop.f32.mrb[0].mxu1 }
 0x1ba   : > { %v987_v15 = vadd.f32 %v986_v13, %v896_v12  ;;  %v988_v16 = vpop.f32.mrb[1].mxu1 }
 0x1bb   : > { %v989_v17 = vadd.f32 %v988_v16, %v896_v12  ;;  %v990_v18 = vpop.f32.mrb[2].mxu1 }
 0x1bc   : > { %vm997_vm7 = vcmp.ge.f32.partialorder %v987_v15, 0.0  ;;  %v1005_v19 = vmul.f32 0.1, %v987_v15  ;;  %v991_v20 = vadd.f32 %v990_v18, %v901_v14  ;;  %v943_v21 = vpop.f32.mrb[0].mxu0  ;;  %v992_v22 = vpop.f32.mrb[3].mxu1 }
 0x1bd   : > { %vm998_vm8 = vcmp.ge.f32.partialorder %v989_v17, 0.0  ;;  %v1006_v23 = vmul.f32 0.1, %v989_v17  ;;  %v944_v24 = vadd.f32 %v943_v21, %v896_v12  ;;  %v993_v25 = vadd.f32 %v992_v22, %v901_v14  ;;  %v945_v26 = vpop.f32.mrb[1].mxu0 }
 0x1be   : > { %v1013_v27 = vsel %vm997_vm7, %v987_v15, %v1005_v19  ;;  %vm1001_vm9 = vcmp.ge.f32.partialorder %v991_v20, 0.0  ;;  %v1009_v28 = vmul.f32 0.1, %v991_v20  ;;  %v946_v29 = vadd.f32 %v945_v26, %v896_v12  ;;  %v947_v30 = vpop.f32.mrb[2].mxu0 }
 0x1bf   : > { %v1014_v31 = vsel %vm998_vm8, %v989_v17, %v1006_v23  ;;  %vm995_vm10 = vcmp.ge.f32.partialorder %v944_v24, 0.0  ;;  %v1003_v32 = vmul.f32 0.1, %v944_v24  ;;  %vm1002_vm11 = vcmp.ge.f32.partialorder %v993_v25, 0.0  ;;  %v949_v33 = vpop.f32.mrb[3].mxu0 }
 0x1c0   : > { %v1280_v34 = vpack.c.bf16 %v1014_v31, %v1013_v27  ;;  %v1010_v35 = vmul.f32 0.1, %v993_v25  ;;  %v1017_v36 = vsel %vm1001_vm9, %v991_v20, %v1009_v28  ;;  %vm996_vm12 = vcmp.ge.f32.partialorder %v946_v29, 0.0 }
 0x1c1   : > { %v1011_v37 = vsel %vm995_vm10, %v944_v24, %v1003_v32  ;;  %v1004_v38 = vmul.f32 0.1, %v946_v29  ;;  %v948_v39 = vadd.f32 %v947_v30, %v901_v14  ;;  %v950_v40 = vadd.f32 %v949_v33, %v901_v14 }
 0x1c2   : > { %1044 = vst [vmem:[%s722_s27 + $0x8] sm:$0xff] %v1280_v34  ;;  %v1018_v41 = vsel %vm1002_vm11, %v993_v25, %v1010_v35 }
 0x1c3   : > { %v1282_v42 = vpack.c.bf16 %v1018_v41, %v1017_v36  ;;  %v1012_v43 = vsel %vm996_vm12, %v946_v29, %v1004_v38  ;;  %vm999_vm13 = vcmp.ge.f32.partialorder %v948_v39, 0.0  ;;  %v1007_v44 = vmul.f32 0.1, %v948_v39 }
 0x1c4   : > { %v1279_v45 = vpack.c.bf16 %v1012_v43, %v1011_v37  ;;  %vm1000_vm14 = vcmp.ge.f32.partialorder %v950_v40, 0.0  ;;  %v1008_v46 = vmul.f32 0.1, %v950_v40 }
 0x1c5   : > { %1046 = vst [vmem:[%s722_s27 + $0x18] sm:$0xff] %v1282_v42  ;;  %v1015_v47 = vsel %vm999_vm13, %v948_v39, %v1007_v44 }
 0x1c6   : > { %1043 = vst [vmem:[%s722_s27] sm:$0xff] %v1279_v45  ;;  %v1016_v48 = vsel %vm1000_vm14, %v950_v40, %v1008_v46 }
 0x1c7   : > { %v1281_v49 = vpack.c.bf16 %v1016_v48, %v1015_v47 }
 0x1c9   : > { %1045 = vst [vmem:[%s722_s27 + $0x10] sm:$0xff] %v1281_v49 }
 0x1ca PF: > { %s14_s19 = sadd.s32 1, %s1428_s19   ;;  %s1573_s15 = smov %s1416_s16 }
 0x1cb   : > { %p11_p12 = scmp.ge.s32.totalorder %s14_s19, 4   ;;  %s1574_s16 = smov %s1518_s24 }
 0x1cc   : > { %s1575_s17 = smov %s1424_s18  ;;  %s1576_s18 = smov %s1578_s20 }
 0x1cd   :  { %13 = sbr.rel (!%p11_p12) target bundleno = 3 (0x3), region = 248 }

// kernel: expansion_block3d_forward.3
= control target key start
LH: loop header
LB: loop body
LE: loop exit
PB: predicated region body
PF: predicated region fallthrough
CT: control target
= control target key end

     0   :  { %s4577_s15 = smov 0   ;;  %s4579_s16 = smov 0   ;;  %s6662_s0 = inlined_call_operand.vmem [shape: bf16[2,16,3888], index: 0, kind: input, shape index: {}, may-alias: {0,1}]   ;;  %s6663_s1 = inlined_call_operand.vmem [shape: bf16[2,16,3888], index: 1, kind: input, shape index: {}, may-alias: {0,1}]   ;;  %s6664_s2 = inlined_call_operand.vmem [shape: bf16[2,432], index: 2, kind: input, shape index: {}]   ;;  %s6665_s3 = inlined_call_operand.vmem [shape: f32[2,1], index: 3, kind: input, shape index: {}]   ;;  %s6666_s4 = inlined_call_operand.vmem [shape: f32[2,2,3072], index: 4, kind: output, shape index: {}]  }
   0x1   :  { %s4581_s17 = smov 0   ;;  %s4583_s18 = smov 0  }
   0x2   :  { %s4585_s19 = smov 0   ;;  %s4587_s20 = smov 0  }
   0x3   :  { %s4589_s21 = smov 0   ;;  %s4591_s22 = smov 0  }
   0x4   :  { %s4593_s23 = smov 0  }
   0x5 LB: > { %s23_s24 = sadd.s32 1, %s4484_s21  ;;  %s26_s25 = sadd.s32 1, %s4488_s22  ;;  %s4492_s23 = sphi %s4593_s23, %s14_s23   ;;  %s4488_s22 = sphi %s4591_s22, %s6992_s22   ;;  %s4484_s21 = sphi %s4589_s21, %s6991_s21   ;;  %s4480_s20 = sphi %s4587_s20, %s6990_s20   ;;  %s4476_s19 = sphi %s4585_s19, %s6989_s19   ;;  %s4472_s18 = sphi %s4583_s18, %s6988_s18   ;;  %s4468_s17 = sphi %s4581_s17, %s6987_s17   ;;  %s4464_s16 = sphi %s4579_s16, %s6986_s16   ;;  %s4460_s15 = sphi %s4577_s15, %s6985_s15  }
   0x6   : > { %p24_p0 = scmp.ge.s32.totalorder %s23_s24, 2  ;;  %s35_s26 = sadd.s32 1, %s4472_s18 }
   0x7   : > { %p42_p1 = scmp.ne.s32.totalorder %s4472_s18, %s4468_s17  ;;  %p43_p2 = scmp.eq.s32.totalorder %s4492_s23, 0 }
   0x8   : > { %s6994_s24 = smov (%p24_p0, %s23_s24), 0  ;;  %s6996_s25 = smov (!%p24_p0, %s26_s25), %s4488_s22 }
   0x9   : > { %6751 = sst [smem:[#allocation4_spill]] %s6994_s24  ;;  %s31_s27 = ssub.s32 %s4484_s21, %s6994_s24 }
   0xa   : > { %p4635_p3 = por %p43_p2, %p42_p1  ;;  %p28_p4 = scmp.ge.s32.totalorder %s6996_s25, 2 }
   0xb   : > { %s3830_s29 = sshll.u32 %s4484_s21, 1  ;;  %s3832_s5 = sshll.u32 %s6994_s24, 1 }
   0xc   : > { %s3831_s30 = sadd.s32 2, %s3830_s29  ;;  %s6998_s25 = smov (%p28_p4, %s6996_s25), 0 }
   0xd   : > { %6753 = sst [smem:[#allocation5_spill]] %s6998_s25  ;;  %s3833_s6 = sadd.s32 2, %s3832_s5 }
   0xe   : > { %s67_s7 = sadd.s32 1, %s4464_s16  ;;  %s30_s8 = ssub.s32 %s4488_s22, %s6998_s25 }
   0xf   : > { %s63_s9 = ssub.s32 %s3831_s30, %s3833_s6  ;;  %s32_s10 = sor.u32 %s31_s27, %s30_s8 }
  0x10   : > { %s64_s11 = sor.u32 %s63_s9, %s30_s8  ;;  %p33_p5 = scmp.eq.s32.totalorder %s32_s10, 0 }
  0x11   : > { %p65_p6 = scmp.eq.s32.totalorder %s64_s11, 0  ;;  %p74_p7 = scmp.ne.s32.totalorder %s4464_s16, %s4460_s15 }
  0x12   : > { %s4649_s12 = scalar_select %p33_p5, %s4472_s18, %s35_s26  }
  0x13   : > { %s4652_s13 = scalar_select %p65_p6, %s4464_s16, %s67_s7  }
  0x14   : > { %p4656_p8 = por %p74_p7, %p43_p2  ;;  %p3744_p9 = scmp.ge.s32.totalorder %s4492_s23, 4 }
  0x16   : > { %176 = sbr.rel (%p3744_p9) target bundleno = 68 (0x44), region = 24 }
  0x1d   : > { %179 = sbr.rel (!%p4635_p3) target bundleno = 48 (0x30), region = 28  ;;  %s181_s27 = sand.u32 (%p4635_p3), 1, %s4472_s18  }
  0x1e   : > { %s184_s29 = smul.u32 (%p4635_p3), 12, %s4484_s21  ;;  %s4502_s28 = smov (%p4635_p3), 0  }
  0x1f   : > { %s4665_s26 = smul.u32 (%p4635_p3), 96, %s181_s27  ;;  %s4506_s24 = smov (%p4635_p3), 0  }
  0x20   : > { %s3881_s30 = smul.u32 (%p4635_p3), 62, %s4488_s22 }
  0x21   : > { %s183_s10 = scalar_lea.vmem (%p4635_p3), [#allocation2], %s4665_s26  }
  0x22   : > { %s191_s5 = sadd.s32 (%p4635_p3), %s3881_s30, %s184_s29  ;;  %s4494_s11 = smov (%p4635_p3), %s183_s10  }
  0x23   : > { %s3747_s6 = sshll.u32 (%p4635_p3), %s191_s5, 2 }
  0x24   : > { %s193_s9 = scalar_lea.vmem %s6662_s0, %s3747_s6  }
  0x25   : > { %s4498_s25 = smov %s193_s9  }
  0x26 LB: >> { %v391_v0 = vld [vmem:[%s4500_s25] sm:$0xff]  ;;  %s395_s27 = sadd.s32 1, %s4504_s28  ;;  %s385_s24 = sadd.s32 1, %s4508_s24   ;;  %s4508_s24 = sphi %s4506_s24, %s385_s24   ;;  %s4504_s28 = sphi %s4502_s28, %s4503_s28   ;;  %s4500_s25 = sphi %s4498_s25, %s400_s25   ;;  %s4496_s11 = sphi %s4494_s11, %s401_s11  }
  0x27   : >> { %v393_v1 = vld [vmem:[%s4500_s25 + $0x7c] sm:$0xff]  ;;  %392 = vst [vmem:[%s4496_s11] sm:$0xff] %v391_v0  ;;  %p396_p10 = scmp.ge.s32.totalorder %s395_s27, 6  ;;  %p384_p11 = scmp.ge.s32.totalorder %s385_s24, 6 }
  0x28   : >> { %394 = vst [vmem:[%s4496_s11 + $0x30] sm:$0xff] %v393_v1 }
  0x29   : >> { %s7000_s27 = smov (%p396_p10, %s395_s27), 0  ;;  %387 = sbr.rel (!%p384_p11) target bundleno = 38 (0x26), region = 258 }
  0x2a   : >> { %s3758_s29 = sshll.u32 %s7000_s27, 3  ;;  %s4503_s28 = smov %s7000_s27  }
  0x2b   : >> { %s400_s25 = scalar_lea.vmem %s193_s9, %s3758_s29   ;;  %s401_s11 = scalar_lea.vmem %s183_s10, %s3758_s29 [#allocation2]  }
  0x30 PF: > { %605 = sbr.rel (!%p4656_p8) target bundleno = 68 (0x44), region = 94  ;;  %s607_s26 = sand.u32 (%p4656_p8), 1, %s4464_s16  }
  0x31   : > { %s4675_s30 = smul.u32 (%p4656_p8), 48, %s607_s26  ;;  %s4518_s27 = smov (%p4656_p8), 0  }
  0x32   : > { %s3514_s5 = smul.u32 (%p4656_p8), 12, %s4484_s21  ;;  %s4522_s29 = smov (%p4656_p8), 0  }
  0x33   : > { %s3515_s6 = smul.u32 (%p4656_p8), 62, %s4488_s22  ;;  %s609_s9 = scalar_lea.vmem (%p4656_p8), [#allocation3], %s4675_s30  }
  0x34   : > { %s4510_s10 = smov (%p4656_p8), %s609_s9  }
  0x35   : > { %s3516_s7 = sadd.s32 (%p4656_p8), %s3515_s6, %s3514_s5 }
  0x36   : > { %s3774_s8 = sshll.u32 (%p4656_p8), %s3516_s7, 2 }
  0x37   : > { %s4682_s24 = scalar_lea.vmem %s6663_s1, %s3774_s8 }
  0x38   : > { %s3526_s14 = scalar_lea.vmem %s4682_s24, 48  }
  0x39   : > { %s4514_s28 = smov %s3526_s14  }
  0x3a LB: >> { %v819_v2 = vld [vmem:[%s4516_s28] sm:$0xff]  ;;  %s823_s26 = sadd.s32 1, %s4520_s27  ;;  %s813_s29 = sadd.s32 1, %s4524_s29   ;;  %s4524_s29 = sphi %s4522_s29, %s813_s29   ;;  %s4520_s27 = sphi %s4518_s27, %s4519_s27   ;;  %s4516_s28 = sphi %s4514_s28, %s3530_s28   ;;  %s4512_s10 = sphi %s4510_s10, %s829_s10  }
  0x3b   : >> { %v821_v3 = vld [vmem:[%s4516_s28 + $0x7c] sm:$0xff]  ;;  %820 = vst [vmem:[%s4512_s10] sm:$0xff] %v819_v2  ;;  %p824_p12 = scmp.ge.s32.totalorder %s823_s26, 3  ;;  %p812_p13 = scmp.ge.s32.totalorder %s813_s29, 3 }
  0x3c   : >> { %822 = vst [vmem:[%s4512_s10 + $0x18] sm:$0xff] %v821_v3 }
  0x3d   : >> { %s7002_s26 = smov (%p824_p12, %s823_s26), 0  ;;  %815 = sbr.rel (!%p812_p13) target bundleno = 58 (0x3a), region = 302 }
  0x3e   : >> { %s3785_s30 = sshll.u32 %s7002_s26, 3  ;;  %s4519_s27 = smov %s7002_s26  }
  0x3f   : >> { %s3529_s5 = scalar_lea.vmem %s4682_s24, %s3785_s30  ;;  %s829_s10 = scalar_lea.vmem %s609_s9, %s3785_s30 [#allocation3]  }
  0x40   : >> { %s3530_s28 = scalar_lea.vmem %s3529_s5, 48  }
  0x44 PF: > { %p3801_p0 = scmp.ge.s32.totalorder %s4492_s23, 1  ;;  %p1032_p1 = scmp.lt.s32.totalorder %s4492_s23, 5 }
  0x46   : > { %p1033_p2 = pnand %p3801_p0, %p1032_p1 }
  0x48   : > { %1036 = sbr.rel (%p1033_p2) target bundleno = 1316 (0x524), region = 160 }
  0x4f   : > { %s1039_s6 = sand.u32 1, %s4468_s17   ;;  %s1046_s11 = sand.u32 1, %s4460_s15   ;;  %vm1230_vm0 = vcmask 1039360   ;;  %vm1281_vm1 = vcmask 1031168   ;;  %vm1332_vm2 = vcmask 900096   ;;  %vm1383_vm3 = vcmask 891904  }
  0x50   : > { %s3883_s7 = smul.u32 96, %s1039_s6  ;;  %s4526_s24 = smov 127   ;;  %vm6749_vm4 = vcmask 883712   ;;  %vm6747_vm5 = vcmask 752640   ;;  %vm6750_vm6 = vcmask 744448   ;;  %vm6729_vm7 = vcmask 736256  }
  0x51   : > { %s3884_s25 = smul.u32 48, %s1046_s11  ;;  %s4527_s17 = smov 126   ;;  %vm1638_vm8 = vcmask 490496   ;;  %vm1689_vm9 = vcmask 482304   ;;  %vm6728_vm10 = vcmask 474112   ;;  %vm2001_vm11 = vcmask 793600  }
  0x52   : > { %s4690_s8 = scalar_lea.vmem [#allocation2], %s3883_s7  ;;  %s4528_s9 = smov 110   ;;  %vm2040_vm12 = vcmask 785408   ;;  %vm6746_vm13 = vcmask 777216   ;;  %vm6748_vm14 = vcmask 646144   ;;  %vm6730_vm15 = vcmask 637952  }
  0x53   : > { %v4694_v4 = vld [vmem:[%s4690_s8 + $0x8] ss:$48 sps:$4 sm:$0xff]   ;;  %v4699_v5 = vld [vmem:[%s4690_s8] ss:$48 sps:$4 sm:$0xff]   ;;  %v4702_v6 = vld [vmem:[%s4690_s8 + $0xc] ss:$48 sps:$4 sm:$0xff]  }
  0x54   : > { %1208 = vrot.lane.b32.xlu1 %v4694_v4, %s4526_s24  ;;  %v4705_v7 = vld [vmem:[%s4690_s8 + $0x4] ss:$48 sps:$4 sm:$0xff]   ;;  %1204 = vrot.lane.b32.xlu0 %v4699_v5, %s4526_s24  ;;  %s4712_s15 = scalar_lea.vmem [#allocation3], %s3884_s25  ;;  %v4723_v9 = vld [vmem:[%s4690_s8 + $0x10] ss:$48 sps:$4 sm:$0xff]   ;;  %s4529_s14 = smov 109  }
  0x55   : > { %v4708_v8 = vld [vmem:[%s4690_s8 + $0x14] ss:$48 sps:$4 sm:$0xff]   ;;  %2856 = vmatprep.subr.bf16.mxu0 %v4705_v7  ;;  %2938 = vmatprep.subr.bf16.mxu1 %v4702_v6  ;;  %v4726_v10 = vld [vmem:[%s4690_s8 + $0x1c] ss:$48 sps:$4 sm:$0xff]   ;;  %v4731_v11 = vld [vmem:[%s4690_s8 + $0x18] ss:$48 sps:$4 sm:$0xff]  }
  0x56   : > { %2857 = vmatpush1.bf16.msra.mxu0 %v4699_v5  ;;  %2939 = vmatpush1.bf16.msra.mxu1 %v4694_v4  ;;  %v4736_v12 = vld [vmem:[%s4690_s8 + $0x24] ss:$48 sps:$4 sm:$0xff]   ;;  %v4741_v13 = vld [vmem:[%s4690_s8 + $0x20] ss:$48 sps:$4 sm:$0xff]   ;;  %v4746_v14 = vld [vmem:[%s4690_s8 + $0x2c] ss:$48 sps:$4 sm:$0xff]  }
  0x57   : > { %v4751_v15 = vld [vmem:[%s4690_s8 + $0x28] ss:$48 sps:$4 sm:$0xff]   ;;  %s4530_s10 = smov 108   ;;  %s4531_s28 = smov 92  }
  0x58   : > { %1210 = vrot.lane.b32.xlu1 %v4702_v6, %s4526_s24  ;;  %1206 = vrot.lane.b32.xlu0 %v4705_v7, %s4526_s24  ;;  %v4760_v16 = vld [vmem:[%s4712_s15] ss:$24 sps:$4 sm:$0xff]   ;;  %s4532_s27 = smov 91   ;;  %s4533_s29 = smov 90  }
  0x59   : > { %s4534_s26 = smov 60   ;;  %s6713_s30 = smov 59  }
  0x5a   : > { %s6715_s5 = smov 58   ;;  %s4537_s6 = smov 97  }
  0x5b   : > { %s4538_s7 = smov 96   ;;  %s4539_s11 = smov 95  }
  0x5c   : > { %1214 = vrot.lane.b32.xlu1 %v4708_v8, %s4526_s24  ;;  %1212 = vrot.lane.b32.xlu0 %v4723_v9, %s4526_s24  ;;  %s4540_s25 = smov 79   ;;  %p1092_p3 = scmp.lt.s32.totalorder %s4480_s20, 1 }
  0x5e   : > { %s7004_s20 = smov (!%p1092_p3, %s4480_s20), 1 }
  0x60   : > { %1218 = vrot.lane.b32.xlu1 %v4726_v10, %s4526_s24  ;;  %1216 = vrot.lane.b32.xlu0 %v4731_v11, %s4526_s24 }
  0x64   : > { %1222 = vrot.lane.b32.xlu1 %v4736_v12, %s4526_s24  ;;  %1220 = vrot.lane.b32.xlu0 %v4741_v13, %s4526_s24 }
  0x68   : > { %1226 = vrot.lane.b32.xlu1 %v4746_v14, %s4526_s24  ;;  %1224 = vrot.lane.b32.xlu0 %v4751_v15, %s4526_s24 }
  0x6c   : > { %1255 = vrot.lane.b32.xlu1 %v4699_v5, %s4527_s17  ;;  %1228 = vrot.lane.b32.xlu0 %v4760_v16, %s4526_s24 }
  0x70   : > { %1259 = vrot.lane.b32.xlu1 %v4694_v4, %s4527_s17  ;;  %1257 = vrot.lane.b32.xlu0 %v4705_v7, %s4527_s17 }
  0x74   : > { %1263 = vrot.lane.b32.xlu1 %v4723_v9, %s4527_s17  ;;  %1261 = vrot.lane.b32.xlu0 %v4702_v6, %s4527_s17 }
  0x78   : > { %1267 = vrot.lane.b32.xlu1 %v4731_v11, %s4527_s17  ;;  %1265 = vrot.lane.b32.xlu0 %v4708_v8, %s4527_s17 }
  0x7c   : > { %1271 = vrot.lane.b32.xlu1 %v4741_v13, %s4527_s17  ;;  %1269 = vrot.lane.b32.xlu0 %v4726_v10, %s4527_s17 }
  0x80   : > { %1275 = vrot.lane.b32.xlu1 %v4751_v15, %s4527_s17  ;;  %1273 = vrot.lane.b32.xlu0 %v4736_v12, %s4527_s17 }
  0x84   : > { %1279 = vrot.lane.b32.xlu1 %v4760_v16, %s4527_s17  ;;  %1277 = vrot.lane.b32.xlu0 %v4746_v14, %s4527_s17  ;;  %s4541_s17 = smov 78  }
  0x88   : > { %1308 = vrot.lane.b32.xlu1 %v4705_v7, %s4528_s9  ;;  %1306 = vrot.lane.b32.xlu0 %v4699_v5, %s4528_s9 }
  0x8c   : > { %1312 = vrot.lane.b32.xlu1 %v4702_v6, %s4528_s9  ;;  %1310 = vrot.lane.b32.xlu0 %v4694_v4, %s4528_s9 }
  0x90   : > { %1316 = vrot.lane.b32.xlu1 %v4708_v8, %s4528_s9  ;;  %1314 = vrot.lane.b32.xlu0 %v4723_v9, %s4528_s9 }
  0x94   : > { %1320 = vrot.lane.b32.xlu1 %v4726_v10, %s4528_s9  ;;  %1318 = vrot.lane.b32.xlu0 %v4731_v11, %s4528_s9 }
  0x98   : > { %1324 = vrot.lane.b32.xlu1 %v4736_v12, %s4528_s9  ;;  %1322 = vrot.lane.b32.xlu0 %v4741_v13, %s4528_s9 }
  0x9c   : > { %1328 = vrot.lane.b32.xlu1 %v4746_v14, %s4528_s9  ;;  %1326 = vrot.lane.b32.xlu0 %v4751_v15, %s4528_s9 }
  0xa0   : > { %1357 = vrot.lane.b32.xlu1 %v4699_v5, %s4529_s14  ;;  %1330 = vrot.lane.b32.xlu0 %v4760_v16, %s4528_s9  ;;  %s4542_s9 = smov 77  }
  0xa4   : > { %1361 = vrot.lane.b32.xlu1 %v4694_v4, %s4529_s14  ;;  %1359 = vrot.lane.b32.xlu0 %v4705_v7, %s4529_s14 }
  0xa8   : > { %1365 = vrot.lane.b32.xlu1 %v4723_v9, %s4529_s14  ;;  %1363 = vrot.lane.b32.xlu0 %v4702_v6, %s4529_s14 }
  0xac   : > { %1369 = vrot.lane.b32.xlu1 %v4731_v11, %s4529_s14  ;;  %1367 = vrot.lane.b32.xlu0 %v4708_v8, %s4529_s14 }
  0xb0   : > { %1373 = vrot.lane.b32.xlu1 %v4741_v13, %s4529_s14  ;;  %1371 = vrot.lane.b32.xlu0 %v4726_v10, %s4529_s14 }
  0xb4   : > { %1377 = vrot.lane.b32.xlu1 %v4751_v15, %s4529_s14  ;;  %1375 = vrot.lane.b32.xlu0 %v4736_v12, %s4529_s14 }
  0xb8   : > { %1381 = vrot.lane.b32.xlu1 %v4760_v16, %s4529_s14  ;;  %1379 = vrot.lane.b32.xlu0 %v4746_v14, %s4529_s14  ;;  %s4543_s14 = smov 61  }
  0xbc   : > { %1410 = vrot.lane.b32.xlu1 %v4705_v7, %s4530_s10  ;;  %1408 = vrot.lane.b32.xlu0 %v4699_v5, %s4530_s10 }
  0xc0   : > { %1414 = vrot.lane.b32.xlu1 %v4702_v6, %s4530_s10  ;;  %1412 = vrot.lane.b32.xlu0 %v4694_v4, %s4530_s10 }
  0xc4   : > { %1418 = vrot.lane.b32.xlu1 %v4708_v8, %s4530_s10  ;;  %1416 = vrot.lane.b32.xlu0 %v4723_v9, %s4530_s10 }
  0xc6   : > { %v1209_v17 = vpop.permute.xlu1 %1208  ;;  %v1205_v18 = vpop.permute.xlu0 %1204 }
  0xc8   : > { %1422 = vrot.lane.b32.xlu1 %v4726_v10, %s4530_s10  ;;  %1420 = vrot.lane.b32.xlu0 %v4731_v11, %s4530_s10 }
  0xca   : > { %v1211_v19 = vpop.permute.xlu1 %1210  ;;  %v1207_v20 = vpop.permute.xlu0 %1206 }
  0xcb   : > { %v1232_v21 = vsel %vm1230_vm0, %v1207_v20, %v1209_v17  ;;  %v1231_v22 = vsel %vm1230_vm0, %v1205_v18, %v1207_v20  ;;  %v4841_v27 = vsel %vm1230_vm0, %v1209_v17, %v1211_v19 }
  0xcc   : > { %1426 = vrot.lane.b32.xlu1 %v4736_v12, %s4530_s10  ;;  %1424 = vrot.lane.b32.xlu0 %v4741_v13, %s4530_s10 }
  0xcd   : > { %2858 = vmatprep.subr.bf16.mxu0 %v1232_v21 }
  0xce   : > { %v4823_v23 = vpop.permute.xlu1 %1214  ;;  %2859 = vmatpush1.bf16.msra.mxu0 %v1231_v22  ;;  %v4829_v24 = vpop.permute.xlu0 %1212 }
  0xcf   : > { %v4833_v25 = vsel %vm1230_vm0, %v1211_v19, %v4829_v24 }
  0xd0   : > { %1430 = vrot.lane.b32.xlu1 %v4746_v14, %s4530_s10  ;;  %1428 = vrot.lane.b32.xlu0 %v4751_v15, %s4530_s10 }
  0xd1   : > { %2940 = vmatprep.subr.bf16.mxu1 %v4833_v25 }
  0xd2   : > { %v4835_v26 = vpop.permute.xlu1 %1218  ;;  %2941 = vmatpush1.bf16.msra.mxu1 %v4841_v27  ;;  %v4846_v28 = vpop.permute.xlu0 %1216 }
  0xd4   : > { %1459 = vrot.lane.b32.xlu1 %v4699_v5, %s4531_s28  ;;  %1432 = vrot.lane.b32.xlu0 %v4760_v16, %s4530_s10  ;;  %s4544_s10 = smov 42  }
  0xd6   : > { %v4848_v29 = vpop.permute.xlu1 %1222  ;;  %v4854_v30 = vpop.permute.xlu0 %1220 }
  0xd8   : > { %1463 = vrot.lane.b32.xlu1 %v4694_v4, %s4531_s28  ;;  %1461 = vrot.lane.b32.xlu0 %v4705_v7, %s4531_s28 }
  0xda   : > { %v4856_v31 = vpop.permute.xlu1 %1226  ;;  %v4862_v32 = vpop.permute.xlu0 %1224 }
  0xdc   : > { %1467 = vrot.lane.b32.xlu1 %v4723_v9, %s4531_s28  ;;  %1465 = vrot.lane.b32.xlu0 %v4702_v6, %s4531_s28 }
  0xde   : > { %v1256_v33 = vpop.permute.xlu1 %1255  ;;  %v4868_v34 = vpop.permute.xlu0 %1228 }
  0xdf   : > { %6755 = vst [vmem:[#allocation6_spill] sm:$0xff] %v4868_v34 }
  0xe0   : > { %1471 = vrot.lane.b32.xlu1 %v4731_v11, %s4531_s28  ;;  %1469 = vrot.lane.b32.xlu0 %v4708_v8, %s4531_s28 }
  0xe2   : > { %v1260_v35 = vpop.permute.xlu1 %1259  ;;  %v1258_v36 = vpop.permute.xlu0 %1257 }
  0xe3   : > { %v1283_v37 = vsel %vm1281_vm1, %v1258_v36, %v1260_v35  ;;  %v1282_v38 = vsel %vm1281_vm1, %v1256_v33, %v1258_v36 }
  0xe4   : > { %1475 = vrot.lane.b32.xlu1 %v4741_v13, %s4531_s28  ;;  %1473 = vrot.lane.b32.xlu0 %v4726_v10, %s4531_s28 }
  0xe5   : > { %2860 = vmatprep.subr.bf16.mxu0 %v1283_v37 }
  0xe6   : > { %v4876_v39 = vpop.permute.xlu1 %1263  ;;  %2861 = vmatpush1.bf16.msra.mxu0 %v1282_v38  ;;  %v1262_v40 = vpop.permute.xlu0 %1261 }
  0xe7   : > { %v1285_v41 = vsel %vm1281_vm1, %v1262_v40, %v4876_v39  ;;  %v1284_v42 = vsel %vm1281_vm1, %v1260_v35, %v1262_v40 }
  0xe8   : > { %1479 = vrot.lane.b32.xlu1 %v4751_v15, %s4531_s28  ;;  %1477 = vrot.lane.b32.xlu0 %v4736_v12, %s4531_s28 }
  0xe9   : > { %2942 = vmatprep.subr.bf16.mxu1 %v1285_v41 }
  0xea   : > { %v4885_v43 = vpop.permute.xlu1 %1267  ;;  %2943 = vmatpush1.bf16.msra.mxu1 %v1284_v42  ;;  %v4891_v44 = vpop.permute.xlu0 %1265 }
  0xec   : > { %1483 = vrot.lane.b32.xlu1 %v4760_v16, %s4531_s28  ;;  %1481 = vrot.lane.b32.xlu0 %v4746_v14, %s4531_s28  ;;  %s4545_s28 = smov 41  }
  0xee   : > { %v4893_v45 = vpop.permute.xlu1 %1271  ;;  %v4899_v46 = vpop.permute.xlu0 %1269 }
  0xf0   : > { %1512 = vrot.lane.b32.xlu1 %v4705_v7, %s4532_s27  ;;  %1510 = vrot.lane.b32.xlu0 %v4699_v5, %s4532_s27 }
  0xf2   : > { %v4901_v47 = vpop.permute.xlu1 %1275  ;;  %v4907_v48 = vpop.permute.xlu0 %1273 }
  0xf3   : > { %6756 = vst [vmem:[#allocation7_spill] sm:$0xff] %v4901_v47  ;;  %6757 = vst [vmem:[#allocation8_spill] sm:$0xff] %v4907_v48 }
  0xf4   : > { %1516 = vrot.lane.b32.xlu1 %v4702_v6, %s4532_s27  ;;  %1514 = vrot.lane.b32.xlu0 %v4694_v4, %s4532_s27 }
  0xf6   : > { %v4909_v49 = vpop.permute.xlu1 %1279  ;;  %v4915_v50 = vpop.permute.xlu0 %1277 }
  0xf7   : > { %6758 = vst [vmem:[#allocation9_spill] sm:$0xff] %v4909_v49  ;;  %6759 = vst [vmem:[#allocation10_spill] sm:$0xff] %v4915_v50 }
  0xf8   : > { %1520 = vrot.lane.b32.xlu1 %v4708_v8, %s4532_s27  ;;  %1518 = vrot.lane.b32.xlu0 %v4723_v9, %s4532_s27 }
  0xfa   : > { %v1309_v51 = vpop.permute.xlu1 %1308  ;;  %v1307_v52 = vpop.permute.xlu0 %1306 }
  0xfb   : > { %v1333_v57 = vsel %vm1332_vm2, %v1307_v52, %v1309_v51 }
  0xfc   : > { %1524 = vrot.lane.b32.xlu1 %v4726_v10, %s4532_s27  ;;  %1522 = vrot.lane.b32.xlu0 %v4731_v11, %s4532_s27 }
  0xfe   : > { %v1313_v53 = vpop.permute.xlu1 %1312  ;;  %v1311_v54 = vpop.permute.xlu0 %1310 }
  0xff   : > { %v1334_v55 = vsel %vm1332_vm2, %v1309_v51, %v1311_v54  ;;  %v1335_v61 = vsel %vm1332_vm2, %v1311_v54, %v1313_v53 }
 0x100   : > { %1528 = vrot.lane.b32.xlu1 %v4736_v12, %s4532_s27  ;;  %1526 = vrot.lane.b32.xlu0 %v4741_v13, %s4532_s27 }
 0x101   : > { %2862 = vmatprep.subr.bf16.mxu0 %v1334_v55  ;;  %v5024_v55 = vld [vmem:[%s4712_s15 + $0x4] ss:$24 sps:$4 sm:$0xff]  }
 0x102   : > { %v4926_v56 = vpop.permute.xlu1 %1316  ;;  %2863 = vmatpush1.bf16.msra.mxu0 %v1333_v57  ;;  %v4933_v58 = vpop.permute.xlu0 %1314 }
 0x103   : > { %v1336_v59 = vsel %vm1332_vm2, %v1313_v53, %v4933_v58 }
 0x104   : > { %1532 = vrot.lane.b32.xlu1 %v4746_v14, %s4532_s27  ;;  %1530 = vrot.lane.b32.xlu0 %v4751_v15, %s4532_s27 }
 0x105   : > { %2944 = vmatprep.subr.bf16.mxu1 %v1336_v59 }
 0x106   : > { %v4937_v60 = vpop.permute.xlu1 %1320  ;;  %2945 = vmatpush1.bf16.msra.mxu1 %v1335_v61  ;;  %v4944_v62 = vpop.permute.xlu0 %1318 }
 0x108   : > { %1561 = vrot.lane.b32.xlu1 %v4699_v5, %s4533_s29  ;;  %1534 = vrot.lane.b32.xlu0 %v4760_v16, %s4532_s27  ;;  %s4546_s27 = smov 40  }
 0x10a   : > { %v4946_v63 = vpop.permute.xlu1 %1324  ;;  %v4952_v0 = vpop.permute.xlu0 %1322 }
 0x10b   : > { %6760 = vst [vmem:[#allocation11_spill] sm:$0xff] %v4946_v63 }
 0x10c   : > { %1565 = vrot.lane.b32.xlu1 %v4694_v4, %s4533_s29  ;;  %1563 = vrot.lane.b32.xlu0 %v4705_v7, %s4533_s29 }
 0x10e   : > { %v4954_v1 = vpop.permute.xlu1 %1328  ;;  %v4960_v2 = vpop.permute.xlu0 %1326 }
 0x10f   : > { %6761 = vst [vmem:[#allocation12_spill] sm:$0xff] %v4954_v1  ;;  %6762 = vst [vmem:[#allocation13_spill] sm:$0xff] %v4960_v2 }
 0x110   : > { %1569 = vrot.lane.b32.xlu1 %v4723_v9, %s4533_s29  ;;  %1567 = vrot.lane.b32.xlu0 %v4702_v6, %s4533_s29 }
 0x112   : > { %v1358_v3 = vpop.permute.xlu1 %1357  ;;  %v4966_v5 = vpop.permute.xlu0 %1330 }
 0x113   : > { %6763 = vst [vmem:[#allocation14_spill] sm:$0xff] %v4966_v5 }
 0x114   : > { %1573 = vrot.lane.b32.xlu1 %v4731_v11, %s4533_s29  ;;  %1571 = vrot.lane.b32.xlu0 %v4708_v8, %s4533_s29 }
 0x116   : > { %v1362_v17 = vpop.permute.xlu1 %1361  ;;  %v1360_v7 = vpop.permute.xlu0 %1359 }
 0x117   : > { %v1385_v18 = vsel %vm1383_vm3, %v1360_v7, %v1362_v17  ;;  %v1384_v19 = vsel %vm1383_vm3, %v1358_v3, %v1360_v7 }
 0x118   : > { %1577 = vrot.lane.b32.xlu1 %v4741_v13, %s4533_s29  ;;  %1575 = vrot.lane.b32.xlu0 %v4726_v10, %s4533_s29 }
 0x119   : > { %2864 = vmatprep.subr.bf16.mxu0 %v1385_v18 }
 0x11a   : > { %v4974_v20 = vpop.permute.xlu1 %1365  ;;  %2865 = vmatpush1.bf16.msra.mxu0 %v1384_v19  ;;  %v1364_v21 = vpop.permute.xlu0 %1363 }
 0x11b   : > { %v1387_v22 = vsel %vm1383_vm3, %v1364_v21, %v4974_v20  ;;  %v1386_v33 = vsel %vm1383_vm3, %v1362_v17, %v1364_v21  ;;  %v4267_v21 = vld [vmem:[%s4712_s15 + $0x8] ss:$24 sps:$4 sm:$0xff]  }
 0x11c   : > { %1581 = vrot.lane.b32.xlu1 %v4751_v15, %s4533_s29  ;;  %1579 = vrot.lane.b32.xlu0 %v4736_v12, %s4533_s29 }
 0x11d   : > { %2946 = vmatprep.subr.bf16.mxu1 %v1387_v22 }
 0x11e   : > { %v4983_v35 = vpop.permute.xlu1 %1369  ;;  %2947 = vmatpush1.bf16.msra.mxu1 %v1386_v33  ;;  %v4989_v36 = vpop.permute.xlu0 %1367 }
 0x120   : > { %1585 = vrot.lane.b32.xlu1 %v4760_v16, %s4533_s29  ;;  %1583 = vrot.lane.b32.xlu0 %v4746_v14, %s4533_s29  ;;  %s4548_s29 = smov 24  }
 0x122   : > { %v4991_v37 = vpop.permute.xlu1 %1373  ;;  %v4997_v38 = vpop.permute.xlu0 %1371 }
 0x124   : > { %1614 = vrot.lane.b32.xlu1 %v4702_v6, %s4534_s26  ;;  %1612 = vrot.lane.b32.xlu0 %v4694_v4, %s4534_s26 }
 0x126   : > { %v4999_v40 = vpop.permute.xlu1 %1377  ;;  %v5005_v41 = vpop.permute.xlu0 %1375 }
 0x127   : > { %6764 = vst [vmem:[#allocation15_spill] sm:$0xff] %v4999_v40  ;;  %6765 = vst [vmem:[#allocation16_spill] sm:$0xff] %v5005_v41 }
 0x128   : > { %1618 = vrot.lane.b32.xlu1 %v4708_v8, %s4534_s26  ;;  %1616 = vrot.lane.b32.xlu0 %v4723_v9, %s4534_s26 }
 0x12a   : > { %v5007_v42 = vpop.permute.xlu1 %1381  ;;  %v5013_v51 = vpop.permute.xlu0 %1379 }
 0x12b   : > { %6766 = vst [vmem:[#allocation17_spill] sm:$0xff] %v5007_v42  ;;  %6767 = vst [vmem:[#allocation18_spill] sm:$0xff] %v5013_v51 }
 0x12c   : > { %1622 = vrot.lane.b32.xlu1 %v4726_v10, %s4534_s26  ;;  %1620 = vrot.lane.b32.xlu0 %v4731_v11, %s4534_s26 }
 0x12e   : > { %v1411_v52 = vpop.permute.xlu1 %1410  ;;  %v1409_v53 = vpop.permute.xlu0 %1408 }
 0x12f   : > { %v1435_v3 = vsel %vm6749_vm4, %v1409_v53, %v1411_v52 }
 0x130   : > { %1626 = vrot.lane.b32.xlu1 %v4736_v12, %s4534_s26  ;;  %1624 = vrot.lane.b32.xlu0 %v4741_v13, %s4534_s26 }
 0x132   : > { %v1415_v54 = vpop.permute.xlu1 %1414  ;;  %v1413_v57 = vpop.permute.xlu0 %1412 }
 0x133   : > { %v1436_v59 = vsel %vm6749_vm4, %v1411_v52, %v1413_v57  ;;  %v1437_v19 = vsel %vm6749_vm4, %v1413_v57, %v1415_v54 }
 0x134   : > { %1630 = vrot.lane.b32.xlu1 %v4746_v14, %s4534_s26  ;;  %1628 = vrot.lane.b32.xlu0 %v4751_v15, %s4534_s26 }
 0x135   : > { %2866 = vmatprep.subr.bf16.mxu0 %v1436_v59 }
 0x136   : > { %v5027_v61 = vpop.permute.xlu1 %1418  ;;  %2867 = vmatpush1.bf16.msra.mxu0 %v1435_v3  ;;  %v5034_v17 = vpop.permute.xlu0 %1416 }
 0x137   : > { %v1438_v7 = vsel %vm6749_vm4, %v1415_v54, %v5034_v17 }
 0x138   : > { %1634 = vrot.lane.b32.xlu1 %v5024_v55, %s4534_s26  ;;  %1632 = vrot.lane.b32.xlu0 %v4760_v16, %s4534_s26 }
 0x139   : > { %2948 = vmatprep.subr.bf16.mxu1 %v1438_v7 }
 0x13a   : > { %v5038_v18 = vpop.permute.xlu1 %1422  ;;  %2949 = vmatpush1.bf16.msra.mxu1 %v1437_v19  ;;  %v5046_v22 = vpop.permute.xlu0 %1420 }
 0x13b   : > { %6768 = vst [vmem:[#allocation19_spill] sm:$0xff] %v5038_v18 }
 0x13c   : > { %1663 = vrot.lane.b32.xlu1 %v4694_v4, %s6713_s30  ;;  %1636 = vrot.lane.b32.xlu0 %v4267_v21, %s4534_s26 }
 0x13e   : > { %v5048_v33 = vpop.permute.xlu1 %1426  ;;  %v5053_v52 = vpop.permute.xlu0 %1424 }
 0x13f   : > { %6769 = vst [vmem:[#allocation20_spill] sm:$0xff] %v5048_v33 }
 0x140   : > { %1667 = vrot.lane.b32.xlu1 %v4723_v9, %s6713_s30  ;;  %1665 = vrot.lane.b32.xlu0 %v4702_v6, %s6713_s30 }
 0x142   : > { %v5055_v53 = vpop.permute.xlu1 %1430  ;;  %v5061_v54 = vpop.permute.xlu0 %1428 }
 0x143   : > { %6770 = vst [vmem:[#allocation21_spill] sm:$0xff] %v5055_v53  ;;  %6771 = vst [vmem:[#allocation22_spill] sm:$0xff] %v5061_v54 }
 0x144   : > { %1671 = vrot.lane.b32.xlu1 %v4731_v11, %s6713_s30  ;;  %1669 = vrot.lane.b32.xlu0 %v4708_v8, %s6713_s30 }
 0x146   : > { %v1460_v57 = vpop.permute.xlu1 %1459  ;;  %v5067_v59 = vpop.permute.xlu0 %1432 }
 0x147   : > { %6772 = vst [vmem:[#allocation23_spill] sm:$0xff] %v5067_v59 }
 0x148   : > { %1675 = vrot.lane.b32.xlu1 %v4741_v13, %s6713_s30  ;;  %1673 = vrot.lane.b32.xlu0 %v4726_v10, %s6713_s30 }
 0x14a   : > { %v1464_v3 = vpop.permute.xlu1 %1463  ;;  %v1462_v7 = vpop.permute.xlu0 %1461 }
 0x14b   : > { %v1487_v19 = vsel %vm6747_vm5, %v1462_v7, %v1464_v3  ;;  %v1486_v53 = vsel %vm6747_vm5, %v1460_v57, %v1462_v7 }
 0x14c   : > { %1679 = vrot.lane.b32.xlu1 %v4751_v15, %s6713_s30  ;;  %1677 = vrot.lane.b32.xlu0 %v4736_v12, %s6713_s30 }
 0x14d   : > { %2868 = vmatprep.subr.bf16.mxu0 %v1487_v19 }
 0x14e   : > { %v5075_v33 = vpop.permute.xlu1 %1467  ;;  %2869 = vmatpush1.bf16.msra.mxu0 %v1486_v53  ;;  %v1466_v59 = vpop.permute.xlu0 %1465 }
 0x14f   : > { %6773 = vst [vmem:[#allocation24_spill] sm:$0xff] %v5075_v33  ;;  %v1489_v54 = vsel %vm6747_vm5, %v1466_v59, %v5075_v33  ;;  %v1488_v51 = vsel %vm6747_vm5, %v1464_v3, %v1466_v59 }
 0x150   : > { %1683 = vrot.lane.b32.xlu1 %v4760_v16, %s6713_s30  ;;  %1681 = vrot.lane.b32.xlu0 %v4746_v14, %s6713_s30 }
 0x151   : > { %2950 = vmatprep.subr.bf16.mxu1 %v1489_v54 }
 0x152   : > { %v5084_v42 = vpop.permute.xlu1 %1471  ;;  %2951 = vmatpush1.bf16.msra.mxu1 %v1488_v51  ;;  %v5089_v57 = vpop.permute.xlu0 %1469 }
 0x154   : > { %1687 = vrot.lane.b32.xlu1 %v4267_v21, %s6713_s30  ;;  %1685 = vrot.lane.b32.xlu0 %v5024_v55, %s6713_s30  ;;  %s4549_s30 = smov 23  }
 0x156   : > { %v5091_v53 = vpop.permute.xlu1 %1475  ;;  %v5097_v59 = vpop.permute.xlu0 %1473 }
 0x157   : > { %6774 = vst [vmem:[#allocation25_spill] sm:$0xff] %v5091_v53  ;;  %6775 = vst [vmem:[#allocation26_spill] sm:$0xff] %v5097_v59 }
 0x158   : > { %1716 = vrot.lane.b32.xlu1 %v4702_v6, %s6715_s5  ;;  %1714 = vrot.lane.b32.xlu0 %v4694_v4, %s6715_s5 }
 0x15a   : > { %v5099_v3 = vpop.permute.xlu1 %1479  ;;  %v5105_v51 = vpop.permute.xlu0 %1477 }
 0x15b   : > { %6776 = vst [vmem:[#allocation27_spill] sm:$0xff] %v5099_v3  ;;  %6777 = vst [vmem:[#allocation28_spill] sm:$0xff] %v5105_v51 }
 0x15c   : > { %1720 = vrot.lane.b32.xlu1 %v4708_v8, %s6715_s5  ;;  %1718 = vrot.lane.b32.xlu0 %v4723_v9, %s6715_s5 }
 0x15e   : > { %v5107_v21 = vpop.permute.xlu1 %1483  ;;  %v5113_v54 = vpop.permute.xlu0 %1481 }
 0x15f   : > { %6778 = vst [vmem:[#allocation29_spill] sm:$0xff] %v5107_v21  ;;  %6779 = vst [vmem:[#allocation30_spill] sm:$0xff] %v5113_v54 }
 0x160   : > { %1724 = vrot.lane.b32.xlu1 %v4726_v10, %s6715_s5  ;;  %1722 = vrot.lane.b32.xlu0 %v4731_v11, %s6715_s5 }
 0x162   : > { %v1513_v7 = vpop.permute.xlu1 %1512  ;;  %v1511_v19 = vpop.permute.xlu0 %1510 }
 0x163   : > { %v1537_v41 = vsel %vm6750_vm6, %v1511_v19, %v1513_v7 }
 0x164   : > { %1728 = vrot.lane.b32.xlu1 %v4736_v12, %s6715_s5  ;;  %1726 = vrot.lane.b32.xlu0 %v4741_v13, %s6715_s5 }
 0x166   : > { %v1517_v3 = vpop.permute.xlu1 %1516  ;;  %v1515_v21 = vpop.permute.xlu0 %1514 }
 0x167   : > { %v1538_v51 = vsel %vm6750_vm6, %v1513_v7, %v1515_v21 }
 0x168   : > { %1732 = vrot.lane.b32.xlu1 %v4746_v14, %s6715_s5  ;;  %1730 = vrot.lane.b32.xlu0 %v4751_v15, %s6715_s5  ;;  %v1539_v15 = vsel %vm6750_vm6, %v1515_v21, %v1517_v3 }
 0x169   : > { %2870 = vmatprep.subr.bf16.mxu0 %v1538_v51 }
 0x16a   : > { %v5124_v54 = vpop.permute.xlu1 %1520  ;;  %2871 = vmatpush1.bf16.msra.mxu0 %v1537_v41  ;;  %v5131_v40 = vpop.permute.xlu0 %1518 }
 0x16b   : > { %6780 = vst [vmem:[#allocation31_spill] sm:$0xff] %v5124_v54  ;;  %6781 = vst [vmem:[#allocation32_spill] sm:$0xff] %v5131_v40  ;;  %v1540_v14 = vsel %vm6750_vm6, %v1517_v3, %v5131_v40  ;;  %v2836_v40 = vlaneseq }
 0x16c   : > { %1736 = vrot.lane.b32.xlu1 %v5024_v55, %s6715_s5  ;;  %1734 = vrot.lane.b32.xlu0 %v4760_v16, %s6715_s5  ;;  %s6892_s5 = smov 59  }
 0x16d   : > { %2952 = vmatprep.subr.bf16.mxu1 %v1540_v14  ;;  %v5341_v54 = vshrl.u32 %v2836_v40, 7 }
 0x16e   : > { %v5135_v1 = vpop.permute.xlu1 %1524  ;;  %2953 = vmatpush1.bf16.msra.mxu1 %v1539_v15  ;;  %v5142_v41 = vpop.permute.xlu0 %1522 }
 0x16f   : > { %6782 = vst [vmem:[#allocation33_spill] sm:$0xff] %v5135_v1  ;;  %6783 = vst [vmem:[#allocation34_spill] sm:$0xff] %v5142_v41 }
 0x170   : > { %1977 = vrot.lane.b32.xlu1 %v4731_v11, %s4537_s6  ;;  %1975 = vrot.lane.b32.xlu0 %v4708_v8, %s4537_s6  ;;  %6809 = vst [vmem:[#allocation60_spill] sm:$0xff] %v5341_v54 }
 0x172   : > { %v5144_v51 = vpop.permute.xlu1 %1528  ;;  %v5150_v7 = vpop.permute.xlu0 %1526 }
 0x173   : > { %6784 = vst [vmem:[#allocation35_spill] sm:$0xff] %v5144_v51  ;;  %6785 = vst [vmem:[#allocation36_spill] sm:$0xff] %v5150_v7 }
 0x174   : > { %1981 = vrot.lane.b32.xlu1 %v4741_v13, %s4537_s6  ;;  %1979 = vrot.lane.b32.xlu0 %v4726_v10, %s4537_s6 }
 0x176   : > { %v5152_v16 = vpop.permute.xlu1 %1532  ;;  %v5158_v3 = vpop.permute.xlu0 %1530 }
 0x177   : > { %6786 = vst [vmem:[#allocation37_spill] sm:$0xff] %v5152_v16  ;;  %6787 = vst [vmem:[#allocation38_spill] sm:$0xff] %v5158_v3 }
 0x178   : > { %2014 = vrot.lane.b32.xlu1 %v4708_v8, %s4538_s7  ;;  %1983 = vrot.lane.b32.xlu0 %v4736_v12, %s4537_s6 }
 0x17a   : > { %v1562_v21 = vpop.permute.xlu1 %1561  ;;  %v5164_v19 = vpop.permute.xlu0 %1534 }
 0x17b   : > { %6788 = vst [vmem:[#allocation39_spill] sm:$0xff] %v5164_v19 }
 0x17c   : > { %2018 = vrot.lane.b32.xlu1 %v4726_v10, %s4538_s7  ;;  %2016 = vrot.lane.b32.xlu0 %v4731_v11, %s4538_s7 }
 0x17e   : > { %v1566_v14 = vpop.permute.xlu1 %1565  ;;  %v1564_v15 = vpop.permute.xlu0 %1563 }
 0x17f   : > { %v1589_v16 = vsel %vm6729_vm7, %v1564_v15, %v1566_v14  ;;  %v1588_v51 = vsel %vm6729_vm7, %v1562_v21, %v1564_v15 }
 0x180   : > { %2022 = vrot.lane.b32.xlu1 %v4736_v12, %s4538_s7  ;;  %2020 = vrot.lane.b32.xlu0 %v4741_v13, %s4538_s7 }
 0x181   : > { %2872 = vmatprep.subr.bf16.mxu0 %v1589_v16 }
 0x182   : > { %v5172_v3 = vpop.permute.xlu1 %1569  ;;  %2873 = vmatpush1.bf16.msra.mxu0 %v1588_v51  ;;  %v1568_v19 = vpop.permute.xlu0 %1567 }
 0x183   : > { %6789 = vst [vmem:[#allocation40_spill] sm:$0xff] %v5172_v3  ;;  %v1591_v5 = vsel %vm6729_vm7, %v1568_v19, %v5172_v3  ;;  %v1590_v63 = vsel %vm6729_vm7, %v1566_v14, %v1568_v19  ;;  %vm6737_vm7 = vcmask 498688  }
 0x184   : > { %2055 = vrot.lane.b32.xlu1 %v4731_v11, %s4539_s11  ;;  %2053 = vrot.lane.b32.xlu0 %v4708_v8, %s4539_s11 }
 0x185   : > { %2954 = vmatprep.subr.bf16.mxu1 %v1591_v5 }
 0x186   : > { %v5181_v2 = vpop.permute.xlu1 %1573  ;;  %2955 = vmatpush1.bf16.msra.mxu1 %v1590_v63  ;;  %v5187_v51 = vpop.permute.xlu0 %1571 }
 0x187   : > { %6790 = vst [vmem:[#allocation41_spill] sm:$0xff] %v5181_v2  ;;  %6791 = vst [vmem:[#allocation42_spill] sm:$0xff] %v5187_v51  ;;  %v4547_v51 = vmov 1966171168  }
 0x188   : > { %2059 = vrot.lane.b32.xlu1 %v4741_v13, %s4539_s11  ;;  %2057 = vrot.lane.b32.xlu0 %v4726_v10, %s4539_s11  ;;  %v2834_v2 = vunpack.c.l.s4 %v4547_v51  ;;  %v3821_v51 = vld.sshfl [vmem:[%s6664_s2] sm:$0x33 pattern:$0x75316420] }
 0x18a   : > { %v5189_v16 = vpop.permute.xlu1 %1577  ;;  %v5195_v21 = vpop.permute.xlu0 %1575  ;;  %v2835_v53 = vunpack.c.0.s8 %v2834_v2 }
 0x18b   : > { %6792 = vst [vmem:[#allocation43_spill] sm:$0xff] %v5189_v16  ;;  %6793 = vst [vmem:[#allocation44_spill] sm:$0xff] %v5195_v21 }
 0x18c   : > { %2092 = vrot.lane.b32.xlu1 %v4708_v8, %s4540_s25  ;;  %2061 = vrot.lane.b32.xlu0 %v4736_v12, %s4539_s11 }
 0x18e   : > { %v5197_v19 = vpop.permute.xlu1 %1581  ;;  %v5203_v63 = vpop.permute.xlu0 %1579 }
 0x18f   : > { %6794 = vst [vmem:[#allocation45_spill] sm:$0xff] %v5197_v19  ;;  %6795 = vst [vmem:[#allocation46_spill] sm:$0xff] %v5203_v63 }
 0x190   : > { %2096 = vrot.lane.b32.xlu1 %v4726_v10, %s4540_s25  ;;  %2094 = vrot.lane.b32.xlu0 %v4731_v11, %s4540_s25 }
 0x192   : > { %v5205_v5 = vpop.permute.xlu1 %1585  ;;  %v5211_v14 = vpop.permute.xlu0 %1583 }
 0x193   : > { %6796 = vst [vmem:[#allocation47_spill] sm:$0xff] %v5205_v5  ;;  %6797 = vst [vmem:[#allocation48_spill] sm:$0xff] %v5211_v14 }
 0x194   : > { %2100 = vrot.lane.b32.xlu1 %v4736_v12, %s4540_s25  ;;  %2098 = vrot.lane.b32.xlu0 %v4741_v13, %s4540_s25 }
 0x196   : > { %v1615_v15 = vpop.permute.xlu1 %1614  ;;  %v1613_v19 = vpop.permute.xlu0 %1612 }
 0x197   : > { %v1639_v49 = vsel %vm1638_vm8, %v1613_v19, %v1615_v15 }
 0x198   : > { %2133 = vrot.lane.b32.xlu1 %v4731_v11, %s4541_s17  ;;  %2131 = vrot.lane.b32.xlu0 %v4708_v8, %s4541_s17 }
 0x19a   : > { %v5217_v63 = vpop.permute.xlu1 %1618  ;;  %v1617_v5 = vpop.permute.xlu0 %1616 }
 0x19b   : > { %v1640_v14 = vsel %vm1638_vm8, %v1615_v15, %v1617_v5 }
 0x19c   : > { %2137 = vrot.lane.b32.xlu1 %v4741_v13, %s4541_s17  ;;  %2135 = vrot.lane.b32.xlu0 %v4726_v10, %s4541_s17 }
 0x19d   : > { %2874 = vmatprep.subr.bf16.mxu0 %v1640_v14 }
 0x19e   : > { %v5224_v50 = vpop.permute.xlu1 %1622  ;;  %2875 = vmatpush1.bf16.msra.mxu0 %v1639_v49  ;;  %v5231_v48 = vpop.permute.xlu0 %1620  ;;  %v1641_v49 = vsel %vm1638_vm8, %v1617_v5, %v5217_v63 }
 0x19f   : > { %v5236_v47 = vsel %vm1638_vm8, %v5217_v63, %v5231_v48 }
 0x1a0   : > { %2170 = vrot.lane.b32.xlu1 %v4708_v8, %s4542_s9  ;;  %2139 = vrot.lane.b32.xlu0 %v4736_v12, %s4541_s17 }
 0x1a1   : > { %2956 = vmatprep.subr.bf16.mxu1 %v5236_v47 }
 0x1a2   : > { %v5238_v34 = vpop.permute.xlu1 %1626  ;;  %2957 = vmatpush1.bf16.msra.mxu1 %v1641_v49  ;;  %v5247_v19 = vpop.permute.xlu0 %1624 }
 0x1a4   : > { %2174 = vrot.lane.b32.xlu1 %v4726_v10, %s4542_s9  ;;  %2172 = vrot.lane.b32.xlu0 %v4731_v11, %s4542_s9 }
 0x1a6   : > { %v5249_v14 = vpop.permute.xlu1 %1630  ;;  %v5255_v15 = vpop.permute.xlu0 %1628 }
 0x1a7   : > { %6798 = vst [vmem:[#allocation49_spill] sm:$0xff] %v5249_v14  ;;  %6799 = vst [vmem:[#allocation50_spill] sm:$0xff] %v5255_v15 }
 0x1a8   : > { %2178 = vrot.lane.b32.xlu1 %v4736_v12, %s4542_s9  ;;  %2176 = vrot.lane.b32.xlu0 %v4741_v13, %s4542_s9 }
 0x1aa   : > { %v5257_v21 = vpop.permute.xlu1 %1634  ;;  %v5263_v5 = vpop.permute.xlu0 %1632 }
 0x1ab   : > { %6800 = vst [vmem:[#allocation51_spill] sm:$0xff] %v5257_v21  ;;  %6801 = vst [vmem:[#allocation52_spill] sm:$0xff] %v5263_v5 }
 0x1ac   : > { %2211 = vrot.lane.b32.xlu1 %v4731_v11, %s4543_s14  ;;  %2209 = vrot.lane.b32.xlu0 %v4708_v8, %s4543_s14 }
 0x1ae   : > { %v1664_v49 = vpop.permute.xlu1 %1663  ;;  %v5269_v14 = vpop.permute.xlu0 %1636 }
 0x1af   : > { %6802 = vst [vmem:[#allocation53_spill] sm:$0xff] %v5269_v14 }
 0x1b0   : > { %2215 = vrot.lane.b32.xlu1 %v4741_v13, %s4543_s14  ;;  %2213 = vrot.lane.b32.xlu0 %v4726_v10, %s4543_s14 }
 0x1b2   : > { %v1668_v15 = vpop.permute.xlu1 %1667  ;;  %v1666_v21 = vpop.permute.xlu0 %1665 }
 0x1b3   : > { %v1691_v5 = vsel %vm1689_vm9, %v1666_v21, %v1668_v15  ;;  %v1690_v16 = vsel %vm1689_vm9, %v1664_v49, %v1666_v21 }
 0x1b4   : > { %1767 = vrot.lane.b32.xlu1 %v4702_v6, %s4544_s10  ;;  %2217 = vrot.lane.b32.xlu0 %v4736_v12, %s4543_s14 }
 0x1b5   : > { %2876 = vmatprep.subr.bf16.mxu0 %v1691_v5 }
 0x1b6   : > { %v5277_v3 = vpop.permute.xlu1 %1671  ;;  %2877 = vmatpush1.bf16.msra.mxu0 %v1690_v16  ;;  %v5283_v10 = vpop.permute.xlu0 %1669 }
 0x1b7   : > { %v5288_v13 = vsel %vm1689_vm9, %v5283_v10, %v5277_v3  ;;  %v1692_v21 = vsel %vm1689_vm9, %v1668_v15, %v5283_v10 }
 0x1b8   : > { %1771 = vrot.lane.b32.xlu1 %v4708_v8, %s4544_s10  ;;  %1769 = vrot.lane.b32.xlu0 %v4723_v9, %s4544_s10 }
 0x1b9   : > { %2958 = vmatprep.subr.bf16.mxu1 %v5288_v13 }
 0x1ba   : > { %v5292_v49 = vpop.permute.xlu1 %1675  ;;  %2959 = vmatpush1.bf16.msra.mxu1 %v1692_v21  ;;  %v5299_v12 = vpop.permute.xlu0 %1673 }
 0x1bc   : > { %1765 = vrot.lane.b32.xlu1 %v4694_v4, %s4544_s10  ;;  %1773 = vrot.lane.b32.xlu0 %v4731_v11, %s4544_s10 }
 0x1be   : > { %v5301_v16 = vpop.permute.xlu1 %1679  ;;  %v5307_v15 = vpop.permute.xlu0 %1677 }
 0x1bf   : > { %6803 = vst [vmem:[#allocation54_spill] sm:$0xff] %v5301_v16 }
 0x1c0   : > { %1820 = vrot.lane.b32.xlu1 %v4723_v9, %s4545_s28  ;;  %1818 = vrot.lane.b32.xlu0 %v4702_v6, %s4545_s28 }
 0x1c2   : > { %v5309_v5 = vpop.permute.xlu1 %1683  ;;  %v5315_v21 = vpop.permute.xlu0 %1681 }
 0x1c3   : > { %6804 = vst [vmem:[#allocation55_spill] sm:$0xff] %v5309_v5  ;;  %6805 = vst [vmem:[#allocation56_spill] sm:$0xff] %v5315_v21 }
 0x1c4   : > { %1824 = vrot.lane.b32.xlu1 %v4731_v11, %s4545_s28  ;;  %1822 = vrot.lane.b32.xlu0 %v4708_v8, %s4545_s28 }
 0x1c6   : > { %v5317_v14 = vpop.permute.xlu1 %1687  ;;  %v5323_v16 = vpop.permute.xlu0 %1685 }
 0x1c7   : > { %6806 = vst [vmem:[#allocation57_spill] sm:$0xff] %v5317_v14  ;;  %6807 = vst [vmem:[#allocation58_spill] sm:$0xff] %v5323_v16 }
 0x1c8   : > { %1869 = vrot.lane.b32.xlu1 %v4702_v6, %s4546_s27  ;;  %1816 = vrot.lane.b32.xlu0 %v4694_v4, %s4545_s28 }
 0x1ca   : > { %v1717_v5 = vpop.permute.xlu1 %1716  ;;  %v1715_v1 = vpop.permute.xlu0 %1714 }
 0x1cb   : > { %v1741_v59 = vsel %vm6728_vm10, %v1715_v1, %v1717_v5  ;;  %v2832_v1 = vcombine.high %v3821_v51, %v3821_v51 }
 0x1cc   : > { %1873 = vrot.lane.b32.xlu1 %v4708_v8, %s4546_s27  ;;  %1871 = vrot.lane.b32.xlu0 %v4723_v9, %s4546_s27 }
 0x1ce   : > { %v1721_v21 = vpop.permute.xlu1 %1720  ;;  %v1719_v14 = vpop.permute.xlu0 %1718 }
 0x1cf   : > { %v1742_v7 = vsel %vm6728_vm10, %v1717_v5, %v1719_v14  ;;  %v1743_v2 = vsel %vm6728_vm10, %v1719_v14, %v1721_v21 }
 0x1d0   : > { %1867 = vrot.lane.b32.xlu1 %v4694_v4, %s4546_s27  ;;  %1875 = vrot.lane.b32.xlu0 %v4731_v11, %s4546_s27 }
 0x1d1   : > { %2878 = vmatprep.subr.bf16.mxu0 %v1742_v7 }
 0x1d2   : > { %v5334_v16 = vpop.permute.xlu1 %1724  ;;  %2879 = vmatpush1.bf16.msra.mxu0 %v1741_v59  ;;  %v5343_v41 = vpop.permute.xlu0 %1722  ;;  %v2838_v59 = vsub.s32 %v2835_v53, %v5341_v54 }
 0x1d3   : > { %6808 = vst [vmem:[#allocation59_spill] sm:$0xff] %v5334_v16  ;;  %6810 = vst [vmem:[#allocation61_spill] sm:$0xff] %v5343_v41  ;;  %v1744_v16 = vsel %vm6728_vm10, %v1721_v21, %v5343_v41  ;;  %vm6733_vm10 = vcmask 629760  }
 0x1d4   : > { %1922 = vrot.lane.b32.xlu1 %v4723_v9, %s4548_s29  ;;  %1920 = vrot.lane.b32.xlu0 %v4702_v6, %s4548_s29  ;;  %v5358_v40 = vrot.slane %v2832_v1, %v2838_v59  ;;  %v5362_v41 = vrot.slane %v3821_v51, %v2838_v59  ;;  %v5391_v1 = vsel %vm1230_vm0, %v4829_v24, %v4823_v23 }
 0x1d5   : > { %2960 = vmatprep.subr.bf16.mxu1 %v1744_v16 }
 0x1d6   : > { %v5350_v7 = vpop.permute.xlu1 %1728  ;;  %2961 = vmatpush1.bf16.msra.mxu1 %v1743_v2  ;;  %v5360_v5 = vpop.permute.xlu0 %1726  ;;  %2888 = vmatprep.mubr.bf16.mxu0 %v5358_v40 }
 0x1d7   : > { %6811 = vst [vmem:[#allocation62_spill] sm:$0xff] %v5350_v7  ;;  %6812 = vst [vmem:[#allocation63_spill] sm:$0xff] %v5360_v5  ;;  %2970 = vmatprep.mubr.bf16.mxu1 %v5358_v40 }
 0x1d8   : > { %1926 = vrot.lane.b32.xlu1 %v4731_v11, %s4548_s29  ;;  %1924 = vrot.lane.b32.xlu0 %v4708_v8, %s4548_s29 }
 0x1da   : > { %v5364_v7 = vpop.permute.xlu1 %1732  ;;  %v5372_v53 = vpop.permute.xlu0 %1730 }
 0x1db   : > { %6813 = vst [vmem:[#allocation64_spill] sm:$0xff] %v5364_v7  ;;  %6814 = vst [vmem:[#allocation65_spill] sm:$0xff] %v5372_v53 }
 0x1dc   : > { %2268 = vrot.lane.b32.xlu1 %v4702_v6, %s4549_s30  ;;  %1918 = vrot.lane.b32.xlu0 %v4694_v4, %s4548_s29 }
 0x1de   : > { %v5374_v14 = vpop.permute.xlu1 %1736  ;;  %v5380_v16 = vpop.permute.xlu0 %1734 }
 0x1df   : > { %6815 = vst [vmem:[#allocation66_spill] sm:$0xff] %v5374_v14  ;;  %6816 = vst [vmem:[#allocation67_spill] sm:$0xff] %v5380_v16 }
 0x1e0   : > { %2272 = vrot.lane.b32.xlu1 %v4708_v8, %s4549_s30  ;;  %2270 = vrot.lane.b32.xlu0 %v4723_v9, %s4549_s30 }
 0x1e2   : > { %v1978_v21 = vpop.permute.xlu1 %1977  ;;  %v1976_v6 = vpop.permute.xlu0 %1975 }
 0x1e4   : > { %2266 = vrot.lane.b32.xlu1 %v4694_v4, %s4549_s30  ;;  %2274 = vrot.lane.b32.xlu0 %v4731_v11, %s4549_s30  ;;  %v5400_v4 = vsel %vm1230_vm0, %v4846_v28, %v4835_v26  ;;  %v5409_v11 = vsel %vm1230_vm0, %v4823_v23, %v4846_v28 }
 0x1e6   : > { %v1982_v51 = vpop.permute.xlu1 %1981  ;;  %v1980_v8 = vpop.permute.xlu0 %1979 }
 0x1e7   : > { %v2004_v14 = vsel %vm2001_vm11, %v1980_v8, %v1982_v51  ;;  %v2003_v28 = vsel %vm2001_vm11, %v1978_v21, %v1980_v8 }
 0x1e8   : > { %2296 = vrot.lane.b32.xlu1 %v5391_v1, %s4549_s30  ;;  %2294 = vrot.lane.b32.xlu0 %v4833_v25, %s4549_s30  ;;  %v2002_v25 = vsel %vm2001_vm11, %v1976_v6, %v1978_v21 }
 0x1ea   : > { %v2015_v59 = vpop.permute.xlu1 %2014  ;;  %v5404_v9 = vpop.permute.xlu0 %1983 }
 0x1eb   : > { %v2005_v16 = vsel %vm2001_vm11, %v1982_v51, %v5404_v9 }
 0x1ec   : > { %2300 = vrot.lane.b32.xlu1 %v5400_v4, %s4549_s30  ;;  %2298 = vrot.lane.b32.xlu0 %v5409_v11, %s4549_s30 }
 0x1ee   : > { %v2019_v24 = vpop.permute.xlu1 %2018  ;;  %v2017_v2 = vpop.permute.xlu0 %2016 }
 0x1ef   : > { %v2041_v21 = vsel %vm2040_vm12, %v2015_v59, %v2017_v2 }
 0x1f0   : > { %2320 = vrot.lane.b32.xlu1 %v2002_v25, %s4549_s30  ;;  %2292 = vrot.lane.b32.xlu0 %v4841_v27, %s4549_s30  ;;  %v2042_v27 = vsel %vm2040_vm12, %v2017_v2, %v2019_v24 }
 0x1f2   : > { %v5415_v54 = vpop.permute.xlu1 %2022  ;;  %v2021_v23 = vpop.permute.xlu0 %2020 }
 0x1f4   : > { %2324 = vrot.lane.b32.xlu1 %v2004_v14, %s4549_s30  ;;  %2322 = vrot.lane.b32.xlu0 %v2003_v28, %s4549_s30 }
 0x1f6   : > { %v2056_v7 = vpop.permute.xlu1 %2055  ;;  %v2054_v25 = vpop.permute.xlu0 %2053 }
 0x1f8   : > { %2318 = vrot.lane.b32.xlu1 %v1976_v6, %s4549_s30  ;;  %2326 = vrot.lane.b32.xlu0 %v2005_v16, %s4549_s30  ;;  %v2044_v6 = vsel %vm2040_vm12, %v2021_v23, %v5415_v54  ;;  %v2043_v16 = vsel %vm2040_vm12, %v2019_v24, %v2021_v23 }
 0x1fa   : > { %v2060_v53 = vpop.permute.xlu1 %2059  ;;  %v2058_v14 = vpop.permute.xlu0 %2057 }
 0x1fb   : > { %v2081_v33 = vsel %vm6746_vm13, %v2056_v7, %v2058_v14 }
 0x1fc   : > { %2348 = vrot.lane.b32.xlu1 %v2042_v27, %s4549_s30  ;;  %2346 = vrot.lane.b32.xlu0 %v2041_v21, %s4549_s30  ;;  %v2080_v27 = vsel %vm6746_vm13, %v2054_v25, %v2056_v7  ;;  %v2082_v21 = vsel %vm6746_vm13, %v2058_v14, %v2060_v53 }
 0x1fe   : > { %v2093_v8 = vpop.permute.xlu1 %2092  ;;  %v5434_v51 = vpop.permute.xlu0 %2061 }
 0x200   : > { %2352 = vrot.lane.b32.xlu1 %v2044_v6, %s4549_s30  ;;  %2350 = vrot.lane.b32.xlu0 %v2043_v16, %s4549_s30  ;;  %v2083_v16 = vsel %vm6746_vm13, %v2060_v53, %v5434_v51 }
 0x202   : > { %v2097_v28 = vpop.permute.xlu1 %2096  ;;  %v2095_v2 = vpop.permute.xlu0 %2094 }
 0x203   : > { %v2119_v7 = vsel %vm6748_vm14, %v2093_v8, %v2095_v2 }
 0x204   : > { %2372 = vrot.lane.b32.xlu1 %v2080_v27, %s4549_s30  ;;  %2344 = vrot.lane.b32.xlu0 %v2015_v59, %s4549_s30  ;;  %v2120_v59 = vsel %vm6748_vm14, %v2095_v2, %v2097_v28 }
 0x206   : > { %v5440_v5 = vpop.permute.xlu1 %2100  ;;  %v2099_v6 = vpop.permute.xlu0 %2098 }
 0x207   : > { %6817 = vst [vmem:[#allocation68_spill] sm:$0xff] %v5440_v5 }
 0x208   : > { %2376 = vrot.lane.b32.xlu1 %v2082_v21, %s4549_s30  ;;  %2374 = vrot.lane.b32.xlu0 %v2081_v33, %s4549_s30  ;;  %v2122_v33 = vsel %vm6748_vm14, %v2099_v6, %v5440_v5 }
 0x20a   : > { %v2134_v24 = vpop.permute.xlu1 %2133  ;;  %v2132_v23 = vpop.permute.xlu0 %2131 }
 0x20c   : > { %2370 = vrot.lane.b32.xlu1 %v2054_v25, %s4549_s30  ;;  %2378 = vrot.lane.b32.xlu0 %v2083_v16, %s4549_s30  ;;  %v2121_v25 = vsel %vm6748_vm14, %v2097_v28, %v2099_v6 }
 0x20e   : > { %v2138_v27 = vpop.permute.xlu1 %2137  ;;  %v2136_v21 = vpop.permute.xlu0 %2135 }
 0x20f   : > { %v2159_v5 = vsel %vm6730_vm15, %v2134_v24, %v2136_v21 }
 0x210   : > { %2400 = vrot.lane.b32.xlu1 %v2120_v59, %s4549_s30  ;;  %2398 = vrot.lane.b32.xlu0 %v2119_v7, %s4549_s30  ;;  %v2158_v59 = vsel %vm6730_vm15, %v2132_v23, %v2134_v24  ;;  %v2160_v7 = vsel %vm6730_vm15, %v2136_v21, %v2138_v27 }
 0x212   : > { %v2171_v14 = vpop.permute.xlu1 %2170  ;;  %v5458_v53 = vpop.permute.xlu0 %2139 }
 0x213   : > { %6818 = vst [vmem:[#allocation69_spill] sm:$0xff] %v5458_v53 }
 0x214   : > { %2404 = vrot.lane.b32.xlu1 %v2122_v33, %s4549_s30  ;;  %2402 = vrot.lane.b32.xlu0 %v2121_v25, %s4549_s30  ;;  %v2161_v25 = vsel %vm6730_vm15, %v2138_v27, %v5458_v53  ;;  %vm6734_vm15 = vcmask 343040  }
 0x216   : > { %v2175_v16 = vpop.permute.xlu1 %2174  ;;  %v2173_v2 = vpop.permute.xlu0 %2172 }
 0x217   : > { %v2197_v24 = vsel %vm6733_vm10, %v2171_v14, %v2173_v2 }
 0x218   : > { %2424 = vrot.lane.b32.xlu1 %v2158_v59, %s4549_s30  ;;  %2396 = vrot.lane.b32.xlu0 %v2093_v8, %s4549_s30  ;;  %v2198_v8 = vsel %vm6733_vm10, %v2173_v2, %v2175_v16 }
 0x21a   : > { %v5464_v18 = vpop.permute.xlu1 %2178  ;;  %v2177_v33 = vpop.permute.xlu0 %2176 }
 0x21b   : > { %6819 = vst [vmem:[#allocation70_spill] sm:$0xff] %v5464_v18  ;;  %v2199_v27 = vsel %vm6733_vm10, %v2175_v16, %v2177_v33 }
 0x21c   : > { %2428 = vrot.lane.b32.xlu1 %v2160_v7, %s4549_s30  ;;  %2426 = vrot.lane.b32.xlu0 %v2159_v5, %s4549_s30  ;;  %v2200_v5 = vsel %vm6733_vm10, %v2177_v33, %v5464_v18  ;;  %vm6735_vm10 = vcmask 334848  }
 0x21e   : > { %v2212_v28 = vpop.permute.xlu1 %2211  ;;  %v2210_v6 = vpop.permute.xlu0 %2209 }
 0x220   : > { %2422 = vrot.lane.b32.xlu1 %v2132_v23, %s4549_s30  ;;  %2430 = vrot.lane.b32.xlu0 %v2161_v25, %s4549_s30 }
 0x222   : > { %v2216_v59 = vpop.permute.xlu1 %2215  ;;  %v2214_v7 = vpop.permute.xlu0 %2213 }
 0x223   : > { %v2237_v33 = vsel %vm6737_vm7, %v2212_v28, %v2214_v7 }
 0x224   : > { %2452 = vrot.lane.b32.xlu1 %v2198_v8, %s4549_s30  ;;  %2450 = vrot.lane.b32.xlu0 %v2197_v24, %s4549_s30  ;;  %v2236_v8 = vsel %vm6737_vm7, %v2210_v6, %v2212_v28 }
 0x226   : > { %v1768_v21 = vpop.permute.xlu1 %1767  ;;  %v5482_v23 = vpop.permute.xlu0 %2217 }
 0x228   : > { %2456 = vrot.lane.b32.xlu1 %v2200_v5, %s4549_s30  ;;  %2454 = vrot.lane.b32.xlu0 %v2199_v27, %s4549_s30  ;;  %v2238_v5 = vsel %vm6737_vm7, %v2214_v7, %v2216_v59  ;;  %v5510_v7 = vsel %vm1638_vm8, %v5231_v48, %v5224_v50 }
 0x22a   : > { %v1772_v25 = vpop.permute.xlu1 %1771  ;;  %v1770_v2 = vpop.permute.xlu0 %1769 }
 0x22b   : > { %v1793_v24 = vsel %vm6734_vm15, %v1768_v21, %v1770_v2 }
 0x22c   : > { %2476 = vrot.lane.b32.xlu1 %v2236_v8, %s4549_s30  ;;  %2448 = vrot.lane.b32.xlu0 %v2171_v14, %s4549_s30  ;;  %v1794_v14 = vsel %vm6734_vm15, %v1770_v2, %v1772_v25 }
 0x22d   : > { %2880 = vmatprep.subr.bf16.mxu0 %v1793_v24  ;;  %v5522_v24 = vsel %vm1638_vm8, %v5247_v19, %v5238_v34 }
 0x22e   : > { %v1766_v53 = vpop.permute.xlu1 %1765  ;;  %v5493_v16 = vpop.permute.xlu0 %1773 }
 0x22f   : > { %v1792_v18 = vsel %vm6734_vm15, %v1766_v53, %v1768_v21  ;;  %v1795_v27 = vsel %vm6734_vm15, %v1772_v25, %v5493_v16  ;;  %vm6736_vm15 = vcmask 326656  }
 0x230   : > { %2480 = vrot.lane.b32.xlu1 %v2238_v5, %s4549_s30  ;;  %2881 = vmatpush1.bf16.msra.mxu0 %v1792_v18  ;;  %v2239_v18 = vsel %vm6737_vm7, %v2216_v59, %v5482_v23  ;;  %v5529_v5 = vsel %vm1638_vm8, %v5224_v50, %v5247_v19  ;;  %v5542_v50 = vsel %vm1689_vm9, %v5299_v12, %v5292_v49  ;;  %vm2552_vm7 = vcmask 187392  }
 0x231   : > { %2478 = vrot.lane.b32.xlu0 %v2237_v33, %s4549_s30  ;;  %2962 = vmatprep.subr.bf16.mxu1 %v1795_v27 }
 0x232   : > { %v1821_v8 = vpop.permute.xlu1 %1820  ;;  %2963 = vmatpush1.bf16.msra.mxu1 %v1794_v14  ;;  %v1819_v53 = vpop.permute.xlu0 %1818 }
 0x233   : > { %v1844_v21 = vsel %vm6735_vm10, %v1819_v53, %v1821_v8 }
 0x234   : > { %2474 = vrot.lane.b32.xlu1 %v2210_v6, %s4549_s30  ;;  %2882 = vmatprep.subr.bf16.mxu0 %v1844_v21 }
 0x235   : > { %2482 = vrot.lane.b32.xlu0 %v2239_v18, %s4549_s30 }
 0x236   : > { %v5504_v28 = vpop.permute.xlu1 %1824  ;;  %v1823_v6 = vpop.permute.xlu0 %1822 }
 0x237   : > { %v1846_v25 = vsel %vm6735_vm10, %v1823_v6, %v5504_v28  ;;  %v1845_v59 = vsel %vm6735_vm10, %v1821_v8, %v1823_v6 }
 0x238   : > { %2504 = vrot.lane.b32.xlu1 %v5510_v7, %s4549_s30  ;;  %2964 = vmatprep.subr.bf16.mxu1 %v1846_v25 }
 0x239   : > { %2502 = vrot.lane.b32.xlu0 %v5236_v47, %s4549_s30  ;;  %2965 = vmatpush1.bf16.msra.mxu1 %v1845_v59  ;;  %v5572_v59 = vld [vmem:[%s4690_s8 + $0x2c] ss:$48 sps:$4 sm:$0xff]  }
 0x23a   : > { %v1870_v2 = vpop.permute.xlu1 %1869  ;;  %v1817_v48 = vpop.permute.xlu0 %1816 }
 0x23b   : > { %v1843_v33 = vsel %vm6735_vm10, %v1817_v48, %v1819_v53  ;;  %v5552_v53 = vsel %vm1689_vm9, %v5277_v3, %v5299_v12  ;;  %vm1944_vm10 = vcmask 195584   ;;  %v5564_v3 = vsel %vm1689_vm9, %v5292_v49, %v5307_v15 }
 0x23c   : > { %2508 = vrot.lane.b32.xlu1 %v5522_v24, %s4549_s30  ;;  %2883 = vmatpush1.bf16.msra.mxu0 %v1843_v33  ;;  %v5580_v33 = vld [vmem:[%s4690_s8 + $0x28] ss:$48 sps:$4 sm:$0xff]  }
 0x23d   : > { %2506 = vrot.lane.b32.xlu0 %v5529_v5, %s4549_s30 }
 0x23e   : > { %v1874_v27 = vpop.permute.xlu1 %1873  ;;  %v1872_v47 = vpop.permute.xlu0 %1871 }
 0x23f   : > { %v1895_v8 = vsel %vm6736_vm15, %v1870_v2, %v1872_v47  ;;  %v1896_v21 = vsel %vm6736_vm15, %v1872_v47, %v1874_v27  ;;  %v5588_v47 = vcombine.high %v5358_v40, %v5358_v40 }
 0x240   : > { %2528 = vrot.lane.b32.xlu1 %v5288_v13, %s4549_s30  ;;  %2884 = vmatprep.subr.bf16.mxu0 %v1895_v8 }
 0x241   : > { %2500 = vrot.lane.b32.xlu0 %v5217_v63, %s4549_s30 }
 0x242   : > { %v1868_v14 = vpop.permute.xlu1 %1867  ;;  %v5547_v13 = vpop.permute.xlu0 %1875 }
 0x243   : > { %v1894_v19 = vsel %vm6736_vm15, %v1868_v14, %v1870_v2  ;;  %v1897_v63 = vsel %vm6736_vm15, %v1874_v27, %v5547_v13  ;;  %vm2852_vm15 = vcmask 392192  }
 0x244   : > { %2532 = vrot.lane.b32.xlu1 %v5542_v50, %s4549_s30  ;;  %2885 = vmatpush1.bf16.msra.mxu0 %v1894_v19  ;;  %v5592_v19 = vld [vmem:[%s4712_s15] ss:$24 sps:$4 sm:$0xff]  }
 0x245   : > { %2530 = vrot.lane.b32.xlu0 %v5552_v53, %s4549_s30  ;;  %2966 = vmatprep.subr.bf16.mxu1 %v1897_v63 }
 0x246   : > { %v1923_v18 = vpop.permute.xlu1 %1922  ;;  %2967 = vmatpush1.bf16.msra.mxu1 %v1896_v21  ;;  %v1921_v6 = vpop.permute.xlu0 %1920 }
 0x247   : > { %v1946_v12 = vsel %vm1944_vm10, %v1921_v6, %v1923_v18 }
 0x248   : > { %2526 = vrot.lane.b32.xlu1 %v5283_v10, %s4549_s30  ;;  %2886 = vmatprep.subr.bf16.mxu0 %v1946_v12 }
 0x249   : > { %2534 = vrot.lane.b32.xlu0 %v5564_v3, %s4549_s30 }
 0x24a   : > { %v5567_v25 = vpop.permute.xlu1 %1926  ;;  %v1925_v10 = vpop.permute.xlu0 %1924 }
 0x24b   : > { %v1948_v2 = vsel %vm1944_vm10, %v1925_v10, %v5567_v25  ;;  %v1947_v49 = vsel %vm1944_vm10, %v1923_v18, %v1925_v10 }
 0x24c   : > { %1987 = vrot.lane.b32.xlu1 %v5572_v59, %s4537_s6  ;;  %2968 = vmatprep.subr.bf16.mxu1 %v1948_v2 }
 0x24d   : > { %1985 = vrot.lane.b32.xlu0 %v5580_v33, %s4537_s6  ;;  %2969 = vmatpush1.bf16.msra.mxu1 %v1947_v49 }
 0x24e   : > { %v2269_v48 = vpop.permute.xlu1 %2268  ;;  %v1919_v27 = vpop.permute.xlu0 %1918 }
 0x24f   : > { %v1945_v8 = vsel %vm1944_vm10, %v1919_v27, %v1921_v6 }
 0x250   : > { %1991 = vrot.lane.b32.xlu1 %v5024_v55, %s4537_s6  ;;  %2887 = vmatpush1.bf16.msra.mxu0 %v1945_v8 }
 0x251   : > { %1989 = vrot.lane.b32.xlu0 %v5592_v19, %s4537_s6  ;;  %2971 = vmatmul.mubr.bf16.vlgmr.msra.gmra.mrb[0].mxu1 %v5362_v41 }
 0x252   : > { %v2273_v14 = vpop.permute.xlu1 %2272  ;;  %v2271_v63 = vpop.permute.xlu0 %2270  ;;  %3823 = vmatprep.mubr.msk.bf16.mxu1 %vm2852_vm15, %v5588_v47 }
 0x253   : > { %v2554_v18 = vsel %vm2552_vm7, %v2269_v48, %v2271_v63  ;;  %2889 = vmatmul.mubr.bf16.vlgmr.msra.gmra.mrb[0].mxu0 %v5362_v41  ;;  %v2555_v49 = vsel %vm2552_vm7, %v2271_v63, %v2273_v14 }
 0x254   : > { %2026 = vrot.lane.b32.xlu1 %v5572_v59, %s4538_s7  ;;  %2897 = vmatprep.subr.bf16.mxu0 %v2554_v18 }
 0x255   : > { %2024 = vrot.lane.b32.xlu0 %v5580_v33, %s4538_s7  ;;  %3822 = vmatprep.mubr.msk.bf16.mxu0 %vm2852_vm15, %v5588_v47 }
 0x256   : > { %v2267_v21 = vpop.permute.xlu1 %2266  ;;  %v5608_v12 = vpop.permute.xlu0 %2274 }
 0x257   : > { %v2553_v6 = vsel %vm2552_vm7, %v2267_v21, %v2269_v48  ;;  %v2556_v10 = vsel %vm2552_vm7, %v2273_v14, %v5608_v12 }
 0x258   : > { %2030 = vrot.lane.b32.xlu1 %v5024_v55, %s4538_s7  ;;  %2898 = vmatpush1.bf16.msra.mxu0 %v2553_v6 }
 0x259   : > { %2028 = vrot.lane.b32.xlu0 %v5592_v19, %s4538_s7  ;;  %2979 = vmatprep.subr.bf16.mxu1 %v2556_v10 }
 0x25a   : > { %v2297_v2 = vpop.permute.xlu1 %2296  ;;  %2980 = vmatpush1.bf16.msra.mxu1 %v2555_v49  ;;  %v2295_v48 = vpop.permute.xlu0 %2294 }
 0x25b   : > { %v2566_v27 = vsel %vm2552_vm7, %v2295_v48, %v2297_v2 }
 0x25c   : > { %2065 = vrot.lane.b32.xlu1 %v5572_v59, %s4539_s11  ;;  %2899 = vmatprep.subr.bf16.mxu0 %v2566_v27 }
 0x25d   : > { %2063 = vrot.lane.b32.xlu0 %v5580_v33, %s4539_s11 }
 0x25e   : > { %v5620_v8 = vpop.permute.xlu1 %2300  ;;  %v2299_v18 = vpop.permute.xlu0 %2298 }
 0x25f   : > { %6820 = vst [vmem:[#allocation71_spill] sm:$0xff] %v5620_v8  ;;  %v2568_v14 = vsel %vm2552_vm7, %v2299_v18, %v5620_v8  ;;  %v2567_v63 = vsel %vm2552_vm7, %v2297_v2, %v2299_v18 }
 0x260   : > { %2069 = vrot.lane.b32.xlu1 %v5024_v55, %s4539_s11  ;;  %2981 = vmatprep.subr.bf16.mxu1 %v2568_v14 }
 0x261   : > { %2067 = vrot.lane.b32.xlu0 %v5592_v19, %s4539_s11  ;;  %2982 = vmatpush1.bf16.msra.mxu1 %v2567_v63 }
 0x262   : > { %v2321_v21 = vpop.permute.xlu1 %2320  ;;  %v2293_v6 = vpop.permute.xlu0 %2292 }
 0x263   : > { %v2565_v10 = vsel %vm2552_vm7, %v2293_v6, %v2295_v48 }
 0x264   : > { %2104 = vrot.lane.b32.xlu1 %v5572_v59, %s4540_s25  ;;  %2900 = vmatpush1.bf16.msra.mxu0 %v2565_v10  ;;  %v5652_v10 = vld [vmem:[%s4712_s15 + $0x4] ss:$24 sps:$4 sm:$0xff]  }
 0x265   : > { %2102 = vrot.lane.b32.xlu0 %v5580_v33, %s4540_s25 }
 0x266   : > { %v2325_v49 = vpop.permute.xlu1 %2324  ;;  %v2323_v2 = vpop.permute.xlu0 %2322 }
 0x267   : > { %v2578_v27 = vsel %vm2552_vm7, %v2321_v21, %v2323_v2  ;;  %v2579_v6 = vsel %vm2552_vm7, %v2323_v2, %v2325_v49 }
 0x268   : > { %2108 = vrot.lane.b32.xlu1 %v5024_v55, %s4540_s25  ;;  %2901 = vmatprep.subr.bf16.mxu0 %v2578_v27 }
 0x269   : > { %2106 = vrot.lane.b32.xlu0 %v5592_v19, %s4540_s25 }
 0x26a   : > { %v2319_v18 = vpop.permute.xlu1 %2318  ;;  %v5644_v48 = vpop.permute.xlu0 %2326 }
 0x26b   : > { %v2577_v14 = vsel %vm2552_vm7, %v2319_v18, %v2321_v21  ;;  %6821 = vst [vmem:[#allocation72_spill] sm:$0xff] %v5644_v48  ;;  %v2580_v55 = vsel %vm2552_vm7, %v2325_v49, %v5644_v48 }
 0x26c   : > { %2143 = vrot.lane.b32.xlu1 %v5572_v59, %s4541_s17  ;;  %2902 = vmatpush1.bf16.msra.mxu0 %v2577_v14 }
 0x26d   : > { %2141 = vrot.lane.b32.xlu0 %v5580_v33, %s4541_s17  ;;  %2983 = vmatprep.subr.bf16.mxu1 %v2580_v55 }
 0x26e   : > { %v2349_v63 = vpop.permute.xlu1 %2348  ;;  %2984 = vmatpush1.bf16.msra.mxu1 %v2579_v6  ;;  %v2347_v21 = vpop.permute.xlu0 %2346 }
 0x26f   : > { %v2590_v27 = vsel %vm2552_vm7, %v2347_v21, %v2349_v63 }
 0x270   : > { %2147 = vrot.lane.b32.xlu1 %v5652_v10, %s4541_s17  ;;  %2903 = vmatprep.subr.bf16.mxu0 %v2590_v27 }
 0x271   : > { %2145 = vrot.lane.b32.xlu0 %v5592_v19, %s4541_s17 }
 0x272   : > { %v5657_v18 = vpop.permute.xlu1 %2352  ;;  %v2351_v14 = vpop.permute.xlu0 %2350 }
 0x273   : > { %6822 = vst [vmem:[#allocation73_spill] sm:$0xff] %v5657_v18  ;;  %v2592_v49 = vsel %vm2552_vm7, %v2351_v14, %v5657_v18  ;;  %v2591_v2 = vsel %vm2552_vm7, %v2349_v63, %v2351_v14  ;;  %v5694_v18 = vld [vmem:[%s4690_s8 + $0x1c] ss:$48 sps:$4 sm:$0xff]  }
 0x274   : > { %2182 = vrot.lane.b32.xlu1 %v5572_v59, %s4542_s9  ;;  %2985 = vmatprep.subr.bf16.mxu1 %v2592_v49 }
 0x275   : > { %2180 = vrot.lane.b32.xlu0 %v5580_v33, %s4542_s9  ;;  %2986 = vmatpush1.bf16.msra.mxu1 %v2591_v2 }
 0x276   : > { %v2373_v55 = vpop.permute.xlu1 %2372  ;;  %v2345_v6 = vpop.permute.xlu0 %2344 }
 0x277   : > { %v2589_v27 = vsel %vm2552_vm7, %v2345_v6, %v2347_v21 }
 0x278   : > { %2186 = vrot.lane.b32.xlu1 %v5652_v10, %s4542_s9  ;;  %2904 = vmatpush1.bf16.msra.mxu0 %v2589_v27 }
 0x279   : > { %2184 = vrot.lane.b32.xlu0 %v5592_v19, %s4542_s9 }
 0x27a   : > { %v2377_v48 = vpop.permute.xlu1 %2376  ;;  %v2375_v63 = vpop.permute.xlu0 %2374 }
 0x27b   : > { %v2602_v14 = vsel %vm2552_vm7, %v2373_v55, %v2375_v63  ;;  %v2603_v27 = vsel %vm2552_vm7, %v2375_v63, %v2377_v48 }
 0x27c   : > { %2221 = vrot.lane.b32.xlu1 %v5572_v59, %s4543_s14  ;;  %2905 = vmatprep.subr.bf16.mxu0 %v2602_v14  ;;  %v4277_v14 = vld [vmem:[%s4690_s8 + $0x20] ss:$48 sps:$4 sm:$0xff]  }
 0x27d   : > { %2219 = vrot.lane.b32.xlu0 %v5580_v33, %s4543_s14 }
 0x27e   : > { %v2371_v49 = vpop.permute.xlu1 %2370  ;;  %v5681_v2 = vpop.permute.xlu0 %2378 }
 0x27f   : > { %v2601_v21 = vsel %vm2552_vm7, %v2371_v49, %v2373_v55  ;;  %6823 = vst [vmem:[#allocation74_spill] sm:$0xff] %v5681_v2  ;;  %v2604_v59 = vsel %vm2552_vm7, %v2377_v48, %v5681_v2 }
 0x280   : > { %2225 = vrot.lane.b32.xlu1 %v5652_v10, %s4543_s14  ;;  %2906 = vmatpush1.bf16.msra.mxu0 %v2601_v21 }
 0x281   : > { %2223 = vrot.lane.b32.xlu0 %v5592_v19, %s4543_s14  ;;  %2987 = vmatprep.subr.bf16.mxu1 %v2604_v59 }
 0x282   : > { %v2401_v6 = vpop.permute.xlu1 %2400  ;;  %2988 = vmatpush1.bf16.msra.mxu1 %v2603_v27  ;;  %v2399_v55 = vpop.permute.xlu0 %2398  ;;  %v4279_v27 = vld [vmem:[%s4690_s8 + $0x24] ss:$48 sps:$4 sm:$0xff]  }
 0x283   : > { %v2614_v49 = vsel %vm2552_vm7, %v2399_v55, %v2401_v6 }
 0x284   : > { %1777 = vrot.lane.b32.xlu1 %v4277_v14, %s4544_s10  ;;  %2907 = vmatprep.subr.bf16.mxu0 %v2614_v49 }
 0x285   : > { %1775 = vrot.lane.b32.xlu0 %v5694_v18, %s4544_s10 }
 0x286   : > { %v5691_v21 = vpop.permute.xlu1 %2404  ;;  %v2403_v19 = vpop.permute.xlu0 %2402 }
 0x287   : > { %6824 = vst [vmem:[#allocation75_spill] sm:$0xff] %v5691_v21  ;;  %v2616_v48 = vsel %vm2552_vm7, %v2403_v19, %v5691_v21  ;;  %v2615_v63 = vsel %vm2552_vm7, %v2401_v6, %v2403_v19 }
 0x288   : > { %1781 = vrot.lane.b32.xlu1 %v5580_v33, %s4544_s10  ;;  %2989 = vmatprep.subr.bf16.mxu1 %v2616_v48 }
 0x289   : > { %1779 = vrot.lane.b32.xlu0 %v4279_v27, %s4544_s10  ;;  %2990 = vmatpush1.bf16.msra.mxu1 %v2615_v63 }
 0x28a   : > { %v2425_v59 = vpop.permute.xlu1 %2424  ;;  %v2397_v2 = vpop.permute.xlu0 %2396 }
 0x28b   : > { %v2613_v49 = vsel %vm2552_vm7, %v2397_v2, %v2399_v55 }
 0x28c   : > { %1828 = vrot.lane.b32.xlu1 %v4277_v14, %s4545_s28  ;;  %2908 = vmatpush1.bf16.msra.mxu0 %v2613_v49 }
 0x28d   : > { %1826 = vrot.lane.b32.xlu0 %v5694_v18, %s4545_s28 }
 0x28e   : > { %v2429_v8 = vpop.permute.xlu1 %2428  ;;  %v2427_v6 = vpop.permute.xlu0 %2426 }
 0x28f   : > { %v2626_v19 = vsel %vm2552_vm7, %v2425_v59, %v2427_v6  ;;  %v2627_v49 = vsel %vm2552_vm7, %v2427_v6, %v2429_v8 }
 0x290   : > { %1832 = vrot.lane.b32.xlu1 %v5580_v33, %s4545_s28  ;;  %2909 = vmatprep.subr.bf16.mxu0 %v2626_v19 }
 0x291   : > { %1830 = vrot.lane.b32.xlu0 %v4279_v27, %s4545_s28 }
 0x292   : > { %v2423_v21 = vpop.permute.xlu1 %2422  ;;  %v5715_v2 = vpop.permute.xlu0 %2430 }
 0x293   : > { %v2625_v48 = vsel %vm2552_vm7, %v2423_v21, %v2425_v59  ;;  %6825 = vst [vmem:[#allocation76_spill] sm:$0xff] %v5715_v2  ;;  %v2628_v55 = vsel %vm2552_vm7, %v2429_v8, %v5715_v2 }
 0x294   : > { %1879 = vrot.lane.b32.xlu1 %v4277_v14, %s4546_s27  ;;  %2910 = vmatpush1.bf16.msra.mxu0 %v2625_v48 }
 0x295   : > { %1877 = vrot.lane.b32.xlu0 %v5694_v18, %s4546_s27  ;;  %2991 = vmatprep.subr.bf16.mxu1 %v2628_v55 }
 0x296   : > { %v2453_v63 = vpop.permute.xlu1 %2452  ;;  %2992 = vmatpush1.bf16.msra.mxu1 %v2627_v49  ;;  %v2451_v21 = vpop.permute.xlu0 %2450 }
 0x297   : > { %v2638_v59 = vsel %vm2552_vm7, %v2451_v21, %v2453_v63 }
 0x298   : > { %1883 = vrot.lane.b32.xlu1 %v5580_v33, %s4546_s27  ;;  %2911 = vmatprep.subr.bf16.mxu0 %v2638_v59 }
 0x299   : > { %1881 = vrot.lane.b32.xlu0 %v4279_v27, %s4546_s27 }
 0x29a   : > { %v5725_v19 = vpop.permute.xlu1 %2456  ;;  %v2455_v48 = vpop.permute.xlu0 %2454 }
 0x29b   : > { %6826 = vst [vmem:[#allocation77_spill] sm:$0xff] %v5725_v19  ;;  %v2640_v55 = vsel %vm2552_vm7, %v2455_v48, %v5725_v19  ;;  %v2639_v8 = vsel %vm2552_vm7, %v2453_v63, %v2455_v48 }
 0x29c   : > { %1930 = vrot.lane.b32.xlu1 %v4277_v14, %s4548_s29  ;;  %2993 = vmatprep.subr.bf16.mxu1 %v2640_v55 }
 0x29d   : > { %1928 = vrot.lane.b32.xlu0 %v5694_v18, %s4548_s29  ;;  %2994 = vmatpush1.bf16.msra.mxu1 %v2639_v8 }
 0x29e   : > { %v2477_v6 = vpop.permute.xlu1 %2476  ;;  %v2449_v49 = vpop.permute.xlu0 %2448 }
 0x29f   : > { %v2637_v59 = vsel %vm2552_vm7, %v2449_v49, %v2451_v21 }
 0x2a0   : > { %1934 = vrot.lane.b32.xlu1 %v5580_v33, %s4548_s29  ;;  %2912 = vmatpush1.bf16.msra.mxu0 %v2637_v59  ;;  %v5754_v59 = vsel %vm1230_vm0, %v4854_v30, %v4848_v29 }
 0x2a1   : > { %1932 = vrot.lane.b32.xlu0 %v4279_v27, %s4548_s29 }
 0x2a2   : > { %v2481_v2 = vpop.permute.xlu1 %2480 }
 0x2a3   : > { %v2479_v19 = vpop.permute.xlu0 %2478 }
 0x2a4   : > { %2278 = vrot.lane.b32.xlu1 %v4277_v14, %s4549_s30  ;;  %v2650_v63 = vsel %vm2552_vm7, %v2477_v6, %v2479_v19  ;;  %v2651_v49 = vsel %vm2552_vm7, %v2479_v19, %v2481_v2 }
 0x2a5   : > { %2276 = vrot.lane.b32.xlu0 %v5694_v18, %s4549_s30  ;;  %2913 = vmatprep.subr.bf16.mxu0 %v2650_v63 }
 0x2a6   : > { %v2475_v48 = vpop.permute.xlu1 %2474 }
 0x2a7   : > { %v2649_v55 = vsel %vm2552_vm7, %v2475_v48, %v2477_v6  ;;  %v5745_v21 = vpop.permute.xlu0 %2482  ;;  %v1238_v6 = vsel %vm1230_vm0, %v4835_v26, %v4854_v30  ;;  %v5775_v26 = vsel %vm1230_vm0, %v4848_v29, %v4862_v32 }
 0x2a8   : > { %2282 = vrot.lane.b32.xlu1 %v5580_v33, %s4549_s30  ;;  %2914 = vmatpush1.bf16.msra.mxu0 %v2649_v55  ;;  %v2652_v8 = vsel %vm2552_vm7, %v2481_v2, %v5745_v21  ;;  %v5768_v2 = vsel %vm1230_vm0, %v4862_v32, %v4856_v31 }
 0x2a9   : > { %2280 = vrot.lane.b32.xlu0 %v4279_v27, %s4549_s30  ;;  %2995 = vmatprep.subr.bf16.mxu1 %v2652_v8  ;;  %6827 = vst [vmem:[#allocation78_spill] sm:$0xff] %v5768_v2 }
 0x2aa   : > { %v2505_v14 = vpop.permute.xlu1 %2504  ;;  %2996 = vmatpush1.bf16.msra.mxu1 %v2651_v49 }
 0x2ab   : > { %v2503_v33 = vpop.permute.xlu0 %2502 }
 0x2ac   : > { %2304 = vrot.lane.b32.xlu1 %v5754_v59, %s4549_s30  ;;  %v2662_v63 = vsel %vm2552_vm7, %v2503_v33, %v2505_v14 }
 0x2ad   : > { %2302 = vrot.lane.b32.xlu0 %v1238_v6, %s4549_s30  ;;  %2915 = vmatprep.subr.bf16.mxu0 %v2662_v63 }
 0x2ae   : > { %v5762_v27 = vpop.permute.xlu1 %2508 }
 0x2af   : > { %v2507_v19 = vpop.permute.xlu0 %2506 }
 0x2b0   : > { %2308 = vrot.lane.b32.xlu1 %v5768_v2, %s4549_s30  ;;  %v2664_v30 = vsel %vm2552_vm7, %v2507_v19, %v5762_v27  ;;  %v2663_v48 = vsel %vm2552_vm7, %v2505_v14, %v2507_v19  ;;  %v5787_v19 = vcombine.high %v5362_v41, %v5362_v41 }
 0x2b1   : > { %2306 = vrot.lane.b32.xlu0 %v5775_v26, %s4549_s30  ;;  %2997 = vmatprep.subr.bf16.mxu1 %v2664_v30 }
 0x2b2   : > { %v2529_v55 = vpop.permute.xlu1 %2528  ;;  %2998 = vmatpush1.bf16.msra.mxu1 %v2663_v48  ;;  %v4280_v48 = vld [vmem:[%s4690_s8 + $0x14] ss:$48 sps:$4 sm:$0xff]  }
 0x2b3   : > { %v2501_v8 = vpop.permute.xlu0 %2500 }
 0x2b4   : > { %v2661_v49 = vsel %vm2552_vm7, %v2501_v8, %v2503_v33 }
 0x2b5   : > { %2916 = vmatpush1.bf16.msra.mxu0 %v2661_v49 }
 0x2b6   : > { %v2533_v63 = vpop.permute.xlu1 %2532 }
 0x2b7   : > { %v2531_v2 = vpop.permute.xlu0 %2530 }
 0x2b8   : > { %v2674_v29 = vsel %vm2552_vm7, %v2529_v55, %v2531_v2  ;;  %v2675_v49 = vsel %vm2552_vm7, %v2531_v2, %v2533_v63 }
 0x2b9   : > { %2917 = vmatprep.subr.bf16.mxu0 %v2674_v29 }
 0x2ba   : > { %v2527_v32 = vpop.permute.xlu1 %2526 }
 0x2bb   : > { %v2673_v14 = vsel %vm2552_vm7, %v2527_v32, %v2529_v55  ;;  %v5789_v30 = vpop.permute.xlu0 %2534  ;;  %v4281_v55 = vld [vmem:[%s4690_s8 + $0x10] ss:$48 sps:$4 sm:$0xff]  }
 0x2bc   : > { %2918 = vmatpush1.bf16.msra.mxu0 %v2673_v14  ;;  %v2676_v33 = vsel %vm2552_vm7, %v2533_v63, %v5789_v30 }
 0x2bd   : > { %3020 = vmatprep.subr.bf16.mxu0 %v4280_v48  ;;  %2999 = vmatprep.subr.bf16.mxu1 %v2676_v33 }
 0x2be   : > { %v1988_v8 = vpop.permute.xlu1 %1987  ;;  %3000 = vmatpush1.bf16.msra.mxu1 %v2675_v49 }
 0x2bf   : > { %2930 = vmatmul.mubr.bf16.vlgmr.msra.gmra.mrb[0].mxu0 %v5787_v19  ;;  %v1986_v29 = vpop.permute.xlu0 %1985  ;;  %3102 = vmatprep.subr.bf16.mxu1 %v5694_v18  ;;  %v4282_v18 = vld [vmem:[%s4690_s8 + $0x18] ss:$48 sps:$4 sm:$0xff]  }
 0x2c0   : > { %3021 = vmatpush1.bf16.msra.mxu0 %v4281_v55  ;;  %v2007_v32 = vsel %vm2001_vm11, %v1986_v29, %v1988_v8  ;;  %v2006_v14 = vsel %vm2001_vm11, %v5404_v9, %v1986_v29  ;;  %3052 = vmatprep.mubr.bf16.mxu0 %v5358_v40 }
 0x2c1   : > { %3022 = vmatprep.subr.bf16.mxu0 %v5409_v11  ;;  %2330 = vrot.lane.b32.xlu1 %v2007_v32, %s4549_s30  ;;  %v1287_v11 = vsel %vm1281_vm1, %v4891_v44, %v4885_v43  ;;  %v1389_v32 = vsel %vm1383_vm3, %v4989_v36, %v4983_v35 }
 0x2c2   : > { %v5802_v48 = vpop.permute.xlu1 %1991  ;;  %2328 = vrot.lane.b32.xlu0 %v2006_v14, %s4549_s30  ;;  %3012 = vmatmul.mubr.bf16.vlgmr.msra.gmra.mrb[0].mxu1 %v5787_v19 }
 0x2c3   : > { %3103 = vmatpush1.bf16.msra.mxu1 %v4282_v18  ;;  %v1990_v2 = vpop.permute.xlu0 %1989  ;;  %3134 = vmatprep.mubr.bf16.mxu1 %v5358_v40  ;;  %v1440_v18 = vsel %vm6749_vm4, %v5027_v61, %v5046_v22 }
 0x2c4   : > { %3023 = vmatpush1.bf16.msra.mxu0 %v5391_v1  ;;  %3104 = vmatprep.subr.bf16.mxu1 %v1238_v6  ;;  %v2009_v9 = vsel %vm2001_vm11, %v1990_v2, %v5802_v48  ;;  %v2008_v63 = vsel %vm2001_vm11, %v1988_v8, %v1990_v2  ;;  %v1286_v1 = vsel %vm1281_vm1, %v4876_v39, %v4891_v44 }
 0x2c5   : > { %3024 = vmatprep.subr.bf16.mxu0 %v1287_v11  ;;  %2334 = vrot.lane.b32.xlu1 %v2009_v9, %s4549_s30  ;;  %v1338_v6 = vsel %vm1332_vm2, %v4926_v56, %v4944_v62  ;;  %v1289_v8 = vsel %vm1281_vm1, %v4899_v46, %v4893_v45  ;;  %v1337_v44 = vsel %vm1332_vm2, %v4933_v58, %v4926_v56 }
 0x2c6   : > { %v2027_v33 = vpop.permute.xlu1 %2026  ;;  %2332 = vrot.lane.b32.xlu0 %v2008_v63, %s4549_s30  ;;  %v1391_v2 = vsel %vm1383_vm3, %v4997_v38, %v4991_v37 }
 0x2c7   : > { %3105 = vmatpush1.bf16.msra.mxu1 %v5400_v4  ;;  %v2025_v49 = vpop.permute.xlu0 %2024  ;;  %v1288_v4 = vsel %vm1281_vm1, %v4885_v43, %v4899_v46  ;;  %v1388_v43 = vsel %vm1383_vm3, %v4974_v20, %v4989_v36  ;;  %v1339_v46 = vsel %vm1332_vm2, %v4944_v62, %v4937_v60  ;;  %v1390_v62 = vsel %vm1383_vm3, %v4983_v35, %v4997_v38  ;;  %v6829_v35 = vld [vmem:[#allocation24_spill] sm:$0xff] }
 0x2c8   : > { %3025 = vmatpush1.bf16.msra.mxu0 %v1286_v1  ;;  %3106 = vmatprep.subr.bf16.mxu1 %v1289_v8  ;;  %v2046_v55 = vsel %vm2040_vm12, %v2025_v49, %v2027_v33  ;;  %v2045_v29 = vsel %vm2040_vm12, %v5415_v54, %v2025_v49  ;;  %v1340_v54 = vsel %vm1332_vm2, %v4937_v60, %v4952_v0 }
 0x2c9   : > { %3026 = vmatprep.subr.bf16.mxu0 %v1338_v6  ;;  %2356 = vrot.lane.b32.xlu1 %v2046_v55, %s4549_s30  ;;  %v1439_v60 = vsel %vm6749_vm4, %v5034_v17, %v5027_v61  ;;  %v1490_v38 = vsel %vm6747_vm5, %v6829_v35, %v5089_v57  ;;  %v6830_v55 = vld [vmem:[#allocation34_spill] sm:$0xff]  ;;  %v6843_v35 = vld [vmem:[#allocation44_spill] sm:$0xff] }
 0x2ca   : > { %v5832_v39 = vpop.permute.xlu1 %2030  ;;  %2354 = vrot.lane.b32.xlu0 %v2045_v29, %s4549_s30  ;;  %v6831_v29 = vld [vmem:[#allocation31_spill] sm:$0xff] }
 0x2cb   : > { %3107 = vmatpush1.bf16.msra.mxu1 %v1288_v4  ;;  %v2029_v14 = vpop.permute.xlu0 %2028  ;;  %v6832_v4 = vld [vmem:[#allocation25_spill] sm:$0xff] }
 0x2cc   : > { %3027 = vmatpush1.bf16.msra.mxu0 %v1337_v44  ;;  %3108 = vmatprep.subr.bf16.mxu1 %v1340_v54  ;;  %v2048_v56 = vsel %vm2040_vm12, %v2029_v14, %v5832_v39  ;;  %v2047_v58 = vsel %vm2040_vm12, %v2027_v33, %v2029_v14  ;;  %v1491_v33 = vsel %vm6747_vm5, %v5089_v57, %v5084_v42  ;;  %v6834_v57 = vld [vmem:[#allocation68_spill] sm:$0xff] }
 0x2cd   : > { %3028 = vmatprep.subr.bf16.mxu0 %v1389_v32  ;;  %2360 = vrot.lane.b32.xlu1 %v2048_v56, %s4549_s30  ;;  %v1542_v44 = vsel %vm6750_vm6, %v6831_v29, %v6830_v55  ;;  %v6833_v32 = vld [vmem:[#allocation26_spill] sm:$0xff] }
 0x2ce   : > { %v2066_v11 = vpop.permute.xlu1 %2065  ;;  %2358 = vrot.lane.b32.xlu0 %v2047_v58, %s4549_s30  ;;  %v1493_v54 = vsel %vm6747_vm5, %v6833_v32, %v6832_v4 }
 0x2cf   : > { %3109 = vmatpush1.bf16.msra.mxu1 %v1339_v46  ;;  %v2064_v9 = vpop.permute.xlu0 %2063  ;;  %v1492_v46 = vsel %vm6747_vm5, %v5084_v42, %v6833_v32  ;;  %v6841_v42 = vld [vmem:[#allocation40_spill] sm:$0xff] }
 0x2d0   : > { %3029 = vmatpush1.bf16.msra.mxu0 %v1388_v43  ;;  %3110 = vmatprep.subr.bf16.mxu1 %v1391_v2  ;;  %v2085_v63 = vsel %vm6746_vm13, %v2064_v9, %v2066_v11  ;;  %v2084_v20 = vsel %vm6746_vm13, %v5434_v51, %v2064_v9  ;;  %v6828_v51 = vld [vmem:[#allocation19_spill] sm:$0xff]  ;;  %v6837_v2 = vld [vmem:[#allocation42_spill] sm:$0xff] }
 0x2d1   : > { %3030 = vmatprep.subr.bf16.mxu0 %v1440_v18  ;;  %2382 = vrot.lane.b32.xlu1 %v2085_v63, %s4549_s30  ;;  %v1442_v1 = vsel %vm6749_vm4, %v6828_v51, %v5053_v52  ;;  %v1441_v49 = vsel %vm6749_vm4, %v5046_v22, %v6828_v51  ;;  %v6835_v22 = vld [vmem:[#allocation32_spill] sm:$0xff]  ;;  %v6836_v18 = vld [vmem:[#allocation41_spill] sm:$0xff] }
 0x2d2   : > { %v5868_v36 = vpop.permute.xlu1 %2069  ;;  %2380 = vrot.lane.b32.xlu0 %v2084_v20, %s4549_s30  ;;  %v1541_v43 = vsel %vm6750_vm6, %v6835_v22, %v6831_v29  ;;  %v6839_v63 = vld [vmem:[#allocation36_spill] sm:$0xff]  ;;  %v6840_v20 = vld [vmem:[#allocation33_spill] sm:$0xff]  ;;  %v6852_v22 = vld [vmem:[#allocation59_spill] sm:$0xff] }
 0x2d3   : > { %3111 = vmatpush1.bf16.msra.mxu1 %v1390_v62  ;;  %v2068_v6 = vpop.permute.xlu0 %2067  ;;  %v6846_v29 = vld [vmem:[#allocation69_spill] sm:$0xff] }
 0x2d4   : > { %3031 = vmatpush1.bf16.msra.mxu0 %v1439_v60  ;;  %3112 = vmatprep.subr.bf16.mxu1 %v1442_v1  ;;  %v2087_v61 = vsel %vm6746_vm13, %v2068_v6, %v5868_v36  ;;  %v2086_v17 = vsel %vm6746_vm13, %v2066_v11, %v2068_v6  ;;  %vm6838_vm13 = vcmask 736256   ;;  %v1544_v60 = vsel %vm6750_vm6, %v6840_v20, %v6839_v63 }
 0x2d5   : > { %3032 = vmatprep.subr.bf16.mxu0 %v1491_v33  ;;  %2386 = vrot.lane.b32.xlu1 %v2087_v61, %s4549_s30  ;;  %v1593_v9 = vsel %vm6838_vm13, %v6837_v2, %v6836_v18  ;;  %v1592_v6 = vsel %vm6838_vm13, %v6841_v42, %v6837_v2  ;;  %v1543_v61 = vsel %vm6750_vm6, %v6830_v55, %v6840_v20  ;;  %vm6844_vm5 = vmmov %vm6838_vm13  ;;  %v6856_v2 = vld [vmem:[#allocation70_spill] sm:$0xff]  ;;  %vm6864_vm6 = vcmask 498688  }
 0x2d6   : > { %v2105_v8 = vpop.permute.xlu1 %2104  ;;  %2384 = vrot.lane.b32.xlu0 %v2086_v17, %s4549_s30  ;;  %v6842_v17 = vld [vmem:[#allocation43_spill] sm:$0xff]  ;;  %vm6848_vm13 = vmmov %vm6844_vm5 }
 0x2d7   : > { %3113 = vmatpush1.bf16.msra.mxu1 %v1441_v49  ;;  %v2103_v14 = vpop.permute.xlu0 %2102  ;;  %v1594_v55 = vsel %vm6848_vm13, %v6836_v18, %v6843_v35  ;;  %vm6855_vm13 = vcmask 629760  }
 0x2d8   : > { %3033 = vmatpush1.bf16.msra.mxu0 %v1490_v38  ;;  %3114 = vmatprep.subr.bf16.mxu1 %v1493_v54  ;;  %v2124_v56 = vsel %vm6748_vm14, %v2103_v14, %v2105_v8  ;;  %v2123_v58 = vsel %vm6748_vm14, %v6834_v57, %v2103_v14  ;;  %v1595_v38 = vsel %vm6844_vm5, %v6843_v35, %v6842_v17 }
 0x2d9   : > { %3034 = vmatprep.subr.bf16.mxu0 %v1542_v44  ;;  %2408 = vrot.lane.b32.xlu1 %v2124_v56, %s4549_s30 }
 0x2da   : > { %v5904_v11 = vpop.permute.xlu1 %2108  ;;  %2406 = vrot.lane.b32.xlu0 %v2123_v58, %s4549_s30 }
 0x2db   : > { %3115 = vmatpush1.bf16.msra.mxu1 %v1492_v46  ;;  %v2107_v62 = vpop.permute.xlu0 %2106 }
 0x2dc   : > { %3035 = vmatpush1.bf16.msra.mxu0 %v1541_v43  ;;  %3116 = vmatprep.subr.bf16.mxu1 %v1544_v60  ;;  %v2126_v33 = vsel %vm6748_vm14, %v2107_v62, %v5904_v11  ;;  %v2125_v51 = vsel %vm6748_vm14, %v2105_v8, %v2107_v62  ;;  %vm6845_vm14 = vcmask 637952   ;;  %v6861_v60 = vld [vmem:[#allocation62_spill] sm:$0xff] }
 0x2dd   : > { %3036 = vmatprep.subr.bf16.mxu0 %v1593_v9  ;;  %2412 = vrot.lane.b32.xlu1 %v2126_v33, %s4549_s30  ;;  %vm6847_vm4 = vmmov %vm6845_vm14 }
 0x2de   : > { %v2144_v1 = vpop.permute.xlu1 %2143  ;;  %2410 = vrot.lane.b32.xlu0 %v2125_v51, %s4549_s30  ;;  %vm6850_vm5 = vmmov %vm6847_vm4 }
 0x2df   : > { %3117 = vmatpush1.bf16.msra.mxu1 %v1543_v61  ;;  %v2142_v8 = vpop.permute.xlu0 %2141 }
 0x2e0   : > { %3037 = vmatpush1.bf16.msra.mxu0 %v1592_v6  ;;  %3118 = vmatprep.subr.bf16.mxu1 %v1595_v38  ;;  %v2163_v49 = vsel %vm6845_vm14, %v2142_v8, %v2144_v1  ;;  %v2162_v44 = vsel %vm6847_vm4, %v6846_v29, %v2142_v8  ;;  %vm6853_vm14 = vcmask 474112  }
 0x2e1   : > { %3038 = vmatprep.subr.bf16.mxu0 %v5529_v5  ;;  %2434 = vrot.lane.b32.xlu1 %v2163_v49, %s4549_s30  ;;  %v6849_v5 = vld [vmem:[#allocation50_spill] sm:$0xff] }
 0x2e2   : > { %v5938_v32 = vpop.permute.xlu1 %2147  ;;  %2432 = vrot.lane.b32.xlu0 %v2162_v44, %s4549_s30  ;;  %v1646_v54 = vsel %vm1638_vm8, %v5238_v34, %v6849_v5 }
 0x2e3   : > { %3119 = vmatpush1.bf16.msra.mxu1 %v1594_v55  ;;  %v2146_v14 = vpop.permute.xlu0 %2145 }
 0x2e4   : > { %3039 = vmatpush1.bf16.msra.mxu0 %v5510_v7  ;;  %3120 = vmatprep.subr.bf16.mxu1 %v1646_v54  ;;  %v2165_v56 = vsel %vm6847_vm4, %v2146_v14, %v5938_v32  ;;  %v2164_v57 = vsel %vm6850_vm5, %v2144_v1, %v2146_v14  ;;  %v6851_v7 = vld [vmem:[#allocation63_spill] sm:$0xff]  ;;  %vm6857_vm4 = vmmov %vm6855_vm13  ;;  %v6868_v14 = vld [vmem:[#allocation49_spill] sm:$0xff] }
 0x2e5   : > { %3040 = vmatprep.subr.bf16.mxu0 %v5542_v50  ;;  %2438 = vrot.lane.b32.xlu1 %v2165_v56, %s4549_s30  ;;  %v1746_v34 = vsel %vm6853_vm14, %v6852_v22, %v6851_v7  ;;  %v6854_v50 = vld [vmem:[#allocation54_spill] sm:$0xff]  ;;  %vm6859_vm5 = vmmov %vm6853_vm14 }
 0x2e6   : > { %v2183_v58 = vpop.permute.xlu1 %2182  ;;  %2436 = vrot.lane.b32.xlu0 %v2164_v57, %s4549_s30  ;;  %v1697_v43 = vsel %vm1689_vm9, %v5307_v15, %v6854_v50  ;;  %v6860_v15 = vld [vmem:[#allocation65_spill] sm:$0xff]  ;;  %vm6862_vm14 = vmmov %vm6859_vm5 }
 0x2e7   : > { %3121 = vmatpush1.bf16.msra.mxu1 %v5522_v24  ;;  %v2181_v46 = vpop.permute.xlu0 %2180  ;;  %v6858_v24 = vld [vmem:[#allocation61_spill] sm:$0xff]  ;;  %v1748_v62 = vsel %vm6862_vm14, %v6861_v60, %v6860_v15  ;;  %vm6865_vm14 = vmmov %vm6864_vm6 }
 0x2e8   : > { %3041 = vmatpush1.bf16.msra.mxu0 %v5552_v53  ;;  %3122 = vmatprep.subr.bf16.mxu1 %v1697_v43  ;;  %v2202_v18 = vsel %vm6855_vm13, %v2181_v46, %v2183_v58  ;;  %v2201_v9 = vsel %vm6857_vm4, %v6856_v2, %v2181_v46  ;;  %v1745_v53 = vsel %vm6859_vm5, %v6858_v24, %v6852_v22  ;;  %vm6863_vm13 = vmmov %vm6857_vm4  ;;  %v6871_v22 = vld [vmem:[#allocation51_spill] sm:$0xff] }
 0x2e9   : > { %3042 = vmatprep.subr.bf16.mxu0 %v1746_v34  ;;  %2460 = vrot.lane.b32.xlu1 %v2202_v18, %s4549_s30  ;;  %v6872_v34 = vld [vmem:[#allocation52_spill] sm:$0xff] }
 0x2ea   : > { %v5966_v20 = vpop.permute.xlu1 %2186  ;;  %2458 = vrot.lane.b32.xlu0 %v2201_v9, %s4549_s30  ;;  %v6018_v46 = vsel %vm1638_vm8, %v6868_v14, %v6872_v34  ;;  %v6875_v9 = vld [vmem:[#allocation56_spill] sm:$0xff] }
 0x2eb   : > { %3123 = vmatpush1.bf16.msra.mxu1 %v5564_v3  ;;  %v2185_v33 = vpop.permute.xlu0 %2184  ;;  %v1747_v3 = vsel %vm6859_vm5, %v6851_v7, %v6861_v60  ;;  %v6030_v24 = vsel %vm1689_vm9, %v6854_v50, %v6875_v9 }
 0x2ec   : > { %3043 = vmatpush1.bf16.msra.mxu0 %v1745_v53  ;;  %3124 = vmatprep.subr.bf16.mxu1 %v1748_v62  ;;  %v2204_v51 = vsel %vm6863_vm13, %v2185_v33, %v5966_v20  ;;  %v2203_v1 = vsel %vm6857_vm4, %v2183_v58, %v2185_v33  ;;  %vm6866_vm13 = vmmov %vm6864_vm6 }
 0x2ed   : > { %2464 = vrot.lane.b32.xlu1 %v2204_v51, %s4549_s30  ;;  %vm6867_vm4 = vmmov %vm6864_vm6  ;;  %v6878_v51 = vld [vmem:[#allocation58_spill] sm:$0xff] }
 0x2ee   : > { %v2222_v42 = vpop.permute.xlu1 %2221  ;;  %2462 = vrot.lane.b32.xlu0 %v2203_v1, %s4549_s30  ;;  %v6879_v1 = vld [vmem:[#allocation55_spill] sm:$0xff] }
 0x2ef   : > { %3125 = vmatpush1.bf16.msra.mxu1 %v1747_v3  ;;  %v2220_v6 = vpop.permute.xlu0 %2219  ;;  %v6043_v50 = vsel %vm1689_vm9, %v6879_v1, %v6878_v51 }
 0x2f0   : > { %v2241_v61 = vsel %vm6864_vm6, %v2220_v6, %v2222_v42  ;;  %v2240_v35 = vsel %vm6865_vm14, %v5482_v23, %v2220_v6  ;;  %v6000_v23 = vsel %vm1638_vm8, %v6849_v5, %v6868_v14  ;;  %vm6869_vm6 = vcmask 343040  }
 0x2f1   : > { %2486 = vrot.lane.b32.xlu1 %v2241_v61, %s4549_s30  ;;  %vm6870_vm5 = vmmov %vm6869_vm6  ;;  %v6013_v5 = vsel %vm1638_vm8, %v6872_v34, %v6871_v22 }
 0x2f2   : > { %v5988_v38 = vpop.permute.xlu1 %2225  ;;  %2484 = vrot.lane.b32.xlu0 %v2240_v35, %s4549_s30  ;;  %vm6873_vm14 = vmmov %vm6870_vm5 }
 0x2f3   : > { %v2224_v8 = vpop.permute.xlu0 %2223 }
 0x2f4   : > { %v2243_v49 = vsel %vm6866_vm13, %v2224_v8, %v5988_v38  ;;  %v2242_v29 = vsel %vm6867_vm4, %v2222_v42, %v2224_v8  ;;  %vm6874_vm13 = vmmov %vm6870_vm5  ;;  %vm6876_vm4 = vcmask 334848  }
 0x2f5   : > { %2490 = vrot.lane.b32.xlu1 %v2243_v49, %s4549_s30  ;;  %v6063_v49 = vld [vmem:[%s4712_s15 + $0x8] ss:$24 sps:$4 sm:$0xff]  }
 0x2f6   : > { %v1778_v44 = vpop.permute.xlu1 %1777  ;;  %2488 = vrot.lane.b32.xlu0 %v2242_v29, %s4549_s30  ;;  %v6070_v29 = vld [vmem:[%s4712_s15 + $0xc] ss:$24 sps:$4 sm:$0xff]  }
 0x2f7   : > { %v1776_v55 = vpop.permute.xlu0 %1775 }
 0x2f8   : > { %v1797_v56 = vsel %vm6869_vm6, %v1776_v55, %v1778_v44  ;;  %v1796_v57 = vsel %vm6870_vm5, %v5493_v16, %v1776_v55  ;;  %vm6877_vm6 = vmmov %vm6876_vm4 }
 0x2f9   : > { %2512 = vrot.lane.b32.xlu1 %v6000_v23, %s4549_s30  ;;  %3044 = vmatprep.subr.bf16.mxu0 %v1797_v56  ;;  %vm6880_vm5 = vmmov %vm6876_vm4  ;;  %v6080_v56 = vld [vmem:[%s4712_s15 + $0x14] ss:$24 sps:$4 sm:$0xff]  }
 0x2fa   : > { %v6005_v58 = vpop.permute.xlu1 %1781  ;;  %2510 = vrot.lane.b32.xlu0 %v1646_v54, %s4549_s30  ;;  %3045 = vmatpush1.bf16.msra.mxu0 %v1796_v57  ;;  %v6083_v57 = vld [vmem:[%s4712_s15 + $0x10] ss:$24 sps:$4 sm:$0xff]  }
 0x2fb   : > { %v1780_v7 = vpop.permute.xlu0 %1779 }
 0x2fc   : > { %v1799_v18 = vsel %vm6873_vm14, %v1780_v7, %v6005_v58  ;;  %v1798_v2 = vsel %vm6874_vm13, %v1778_v44, %v1780_v7  ;;  %vm6881_vm14 = vmmov %vm6876_vm4  ;;  %vm6882_vm13 = vcmask 326656  }
 0x2fd   : > { %2516 = vrot.lane.b32.xlu1 %v6013_v5, %s4549_s30  ;;  %3126 = vmatprep.subr.bf16.mxu1 %v1799_v18 }
 0x2fe   : > { %v1829_v16 = vpop.permute.xlu1 %1828  ;;  %2514 = vrot.lane.b32.xlu0 %v6018_v46, %s4549_s30  ;;  %3127 = vmatpush1.bf16.msra.mxu1 %v1798_v2 }
 0x2ff   : > { %v1827_v54 = vpop.permute.xlu0 %1826 }
 0x300   : > { %v1848_v53 = vsel %vm6876_vm4, %v1827_v54, %v1829_v16  ;;  %v1847_v60 = vsel %vm6877_vm6, %v5504_v28, %v1827_v54  ;;  %v6048_v28 = vsel %vm1689_vm9, %v6875_v9, %v6879_v1  ;;  %vm6883_vm4 = vmmov %vm6882_vm13 }
 0x301   : > { %2538 = vrot.lane.b32.xlu1 %v6030_v24, %s4549_s30  ;;  %3046 = vmatprep.subr.bf16.mxu0 %v1848_v53  ;;  %vm6884_vm6 = vmmov %vm6883_vm4 }
 0x302   : > { %v6035_v62 = vpop.permute.xlu1 %1832  ;;  %2536 = vrot.lane.b32.xlu0 %v1697_v43, %s4549_s30  ;;  %3047 = vmatpush1.bf16.msra.mxu0 %v1847_v60 }
 0x303   : > { %v1831_v33 = vpop.permute.xlu0 %1830 }
 0x304   : > { %v1850_v3 = vsel %vm6880_vm5, %v1831_v33, %v6035_v62  ;;  %v1849_v43 = vsel %vm6881_vm14, %v1829_v16, %v1831_v33  ;;  %vm6885_vm5 = vmmov %vm6883_vm4  ;;  %vm6919_vm14 = vcmask 777216  }
 0x305   : > { %2542 = vrot.lane.b32.xlu1 %v6043_v50, %s4549_s30  ;;  %3128 = vmatprep.subr.bf16.mxu1 %v1850_v3 }
 0x306   : > { %v1880_v42 = vpop.permute.xlu1 %1879  ;;  %2540 = vrot.lane.b32.xlu0 %v6048_v28, %s4549_s30  ;;  %3129 = vmatpush1.bf16.msra.mxu1 %v1849_v43 }
 0x307   : > { %v1878_v6 = vpop.permute.xlu0 %1877 }
 0x308   : > { %v1899_v61 = vsel %vm6882_vm13, %v1878_v6, %v1880_v42  ;;  %v1898_v35 = vsel %vm6883_vm4, %v5547_v13, %v1878_v6  ;;  %vm6927_vm4 = vcmask 744448  }
 0x309   : > { %1971 = vrot.lane.b32.xlu1 %v6063_v49, %s4526_s24  ;;  %3048 = vmatprep.subr.bf16.mxu0 %v1899_v61 }
 0x30a   : > { %v6060_v8 = vpop.permute.xlu1 %1883  ;;  %1969 = vrot.lane.b32.xlu0 %v5652_v10, %s4526_s24  ;;  %3049 = vmatpush1.bf16.msra.mxu0 %v1898_v35  ;;  %v6886_v35 = vld [vmem:[#allocation71_spill] sm:$0xff]  ;;  %s6890_s24 = smov 58  }
 0x30b   : > { %v1882_v44 = vpop.permute.xlu0 %1881 }
 0x30c   : > { %v1901_v14 = vsel %vm6884_vm6, %v1882_v44, %v6060_v8  ;;  %v1900_v13 = vsel %vm6885_vm5, %v1880_v42, %v1882_v44  ;;  %vm6928_vm6 = vmmov %vm6919_vm14 }
 0x30d   : > { %1995 = vrot.lane.b32.xlu1 %v6070_v29, %s4537_s6  ;;  %3130 = vmatprep.subr.bf16.mxu1 %v1901_v14  ;;  %vm6929_vm5 = vmmov %vm6928_vm6 }
 0x30e   : > { %v1931_v55 = vpop.permute.xlu1 %1930  ;;  %1993 = vrot.lane.b32.xlu0 %v6063_v49, %s4537_s6  ;;  %3131 = vmatpush1.bf16.msra.mxu1 %v1900_v13 }
 0x30f   : > { %v1929_v7 = vpop.permute.xlu0 %1928 }
 0x310   : > { %v1950_v34 = vsel %vm1944_vm10, %v1929_v7, %v1931_v55  ;;  %v1949_v16 = vsel %vm1944_vm10, %v5567_v25, %v1929_v7 }
 0x311   : > { %1999 = vrot.lane.b32.xlu1 %v6080_v56, %s4537_s6  ;;  %3050 = vmatprep.subr.bf16.mxu0 %v1950_v34 }
 0x312   : > { %v6088_v18 = vpop.permute.xlu1 %1934  ;;  %1997 = vrot.lane.b32.xlu0 %v6083_v57, %s4537_s6  ;;  %3051 = vmatpush1.bf16.msra.mxu0 %v1949_v16  ;;  %s3885_s6 = smul.u32 24, %s7004_s20 }
 0x313   : > { %v1933_v2 = vpop.permute.xlu0 %1932 }
 0x314   : > { %v1952_v9 = vsel %vm1944_vm10, %v1933_v2, %v6088_v18  ;;  %v1951_v53 = vsel %vm1944_vm10, %v1931_v55, %v1933_v2 }
 0x315   : > { %2034 = vrot.lane.b32.xlu1 %v6070_v29, %s4538_s7  ;;  %3053 = vmatmul.mubr.bf16.vlgmr.msra.gmra.mrb[4].mxu0 %v5362_v41 }
 0x316   : > { %v2279_v54 = vpop.permute.xlu1 %2278  ;;  %2032 = vrot.lane.b32.xlu0 %v6063_v49, %s4538_s7  ;;  %3132 = vmatprep.subr.bf16.mxu1 %v1952_v9 }
 0x317   : > { %v2277_v25 = vpop.permute.xlu0 %2276  ;;  %3133 = vmatpush1.bf16.msra.mxu1 %v1951_v53  ;;  %3824 = vmatprep.mubr.msk.bf16.mxu0 %vm2852_vm15, %v5588_v47 }
 0x318   : > { %v2558_v60 = vsel %vm2552_vm7, %v2277_v25, %v2279_v54  ;;  %v2557_v33 = vsel %vm2552_vm7, %v5608_v12, %v2277_v25 }
 0x319   : > { %2038 = vrot.lane.b32.xlu1 %v6080_v56, %s4538_s7  ;;  %3061 = vmatprep.subr.bf16.mxu0 %v2558_v60 }
 0x31a   : > { %v6107_v1 = vpop.permute.xlu1 %2282  ;;  %2036 = vrot.lane.b32.xlu0 %v6083_v57, %s4538_s7  ;;  %3135 = vmatmul.mubr.bf16.vlgmr.msra.gmra.mrb[4].mxu1 %v5362_v41 }
 0x31b   : > { %3062 = vmatpush1.bf16.msra.mxu0 %v2557_v33  ;;  %v2281_v42 = vpop.permute.xlu0 %2280  ;;  %3825 = vmatprep.mubr.msk.bf16.mxu1 %vm2852_vm15, %v5588_v47 }
 0x31c   : > { %v2560_v12 = vsel %vm2552_vm7, %v2281_v42, %v6107_v1  ;;  %v2559_v43 = vsel %vm2552_vm7, %v2279_v54, %v2281_v42  ;;  %v6887_v54 = vld [vmem:[#allocation72_spill] sm:$0xff] }
 0x31d   : > { %2073 = vrot.lane.b32.xlu1 %v6070_v29, %s4539_s11  ;;  %3143 = vmatprep.subr.bf16.mxu1 %v2560_v12 }
 0x31e   : > { %v2305_v3 = vpop.permute.xlu1 %2304  ;;  %2071 = vrot.lane.b32.xlu0 %v6063_v49, %s4539_s11  ;;  %3144 = vmatpush1.bf16.msra.mxu1 %v2559_v43  ;;  %v6888_v43 = vld [vmem:[#allocation73_spill] sm:$0xff] }
 0x31f   : > { %v2303_v6 = vpop.permute.xlu0 %2302 }
 0x320   : > { %v2570_v61 = vsel %vm2552_vm7, %v2303_v6, %v2305_v3  ;;  %v2569_v44 = vsel %vm2552_vm7, %v6886_v35, %v2303_v6 }
 0x321   : > { %2077 = vrot.lane.b32.xlu1 %v6080_v56, %s4539_s11  ;;  %3063 = vmatprep.subr.bf16.mxu0 %v2570_v61 }
 0x322   : > { %2075 = vrot.lane.b32.xlu0 %v6083_v57, %s4539_s11  ;;  %v6130_v55 = vpop.permute.xlu1 %2308  ;;  %3064 = vmatpush1.bf16.msra.mxu0 %v2569_v44 }
 0x323   : > { %v2307_v14 = vpop.permute.xlu0 %2306 }
 0x324   : > { %v2572_v13 = vsel %vm2552_vm7, %v2307_v14, %v6130_v55  ;;  %v2571_v7 = vsel %vm2552_vm7, %v2305_v3, %v2307_v14 }
 0x325   : > { %2112 = vrot.lane.b32.xlu1 %v6070_v29, %s4540_s25  ;;  %3145 = vmatprep.subr.bf16.mxu1 %v2572_v13 }
 0x326   : > { %2110 = vrot.lane.b32.xlu0 %v6063_v49, %s4540_s25  ;;  %3146 = vmatpush1.bf16.msra.mxu1 %v2571_v7 }
 0x329   : > { %2116 = vrot.lane.b32.xlu1 %v6080_v56, %s4540_s25 }
 0x32a   : > { %2114 = vrot.lane.b32.xlu0 %v6083_v57, %s4540_s25 }
 0x32d   : > { %2151 = vrot.lane.b32.xlu1 %v6070_v29, %s4541_s17 }
 0x32e   : > { %2149 = vrot.lane.b32.xlu0 %v6063_v49, %s4541_s17 }
 0x331   : > { %2155 = vrot.lane.b32.xlu1 %v6080_v56, %s4541_s17 }
 0x332   : > { %2153 = vrot.lane.b32.xlu0 %v6083_v57, %s4541_s17 }
 0x333   : > { %v2331_v34 = vpop.permute.xlu1 %2330 }
 0x334   : > { %v2329_v16 = vpop.permute.xlu0 %2328 }
 0x335   : > { %v2582_v2 = vsel %vm2552_vm7, %v2329_v16, %v2331_v34  ;;  %v2581_v9 = vsel %vm2552_vm7, %v6887_v54, %v2329_v16  ;;  %2190 = vrot.lane.b32.xlu1 %v6070_v29, %s4542_s9  ;;  %v6889_v16 = vld [vmem:[#allocation74_spill] sm:$0xff] }
 0x336   : > { %2188 = vrot.lane.b32.xlu0 %v6063_v49, %s4542_s9  ;;  %3065 = vmatprep.subr.bf16.mxu0 %v2582_v2 }
 0x337   : > { %3066 = vmatpush1.bf16.msra.mxu0 %v2581_v9  ;;  %v6158_v53 = vpop.permute.xlu1 %2334 }
 0x338   : > { %v2333_v25 = vpop.permute.xlu0 %2332 }
 0x339   : > { %v2584_v60 = vsel %vm2552_vm7, %v2333_v25, %v6158_v53  ;;  %v2583_v33 = vsel %vm2552_vm7, %v2331_v34, %v2333_v25  ;;  %2194 = vrot.lane.b32.xlu1 %v6080_v56, %s4542_s9 }
 0x33a   : > { %2192 = vrot.lane.b32.xlu0 %v6083_v57, %s4542_s9  ;;  %3147 = vmatprep.subr.bf16.mxu1 %v2584_v60 }
 0x33b   : > { %3148 = vmatpush1.bf16.msra.mxu1 %v2583_v33  ;;  %v2357_v42 = vpop.permute.xlu1 %2356  ;;  %v4550_v33 = vmov 0  }
 0x33c   : > { %v2355_v3 = vpop.permute.xlu0 %2354  ;;  %4244 = vset.pattern.permute.xlu1 %v4550_v33  ;;  %4245 = vset.pattern.permute.xlu0 %v4550_v33 }
 0x33d   : > { %v2594_v12 = vsel %vm2552_vm7, %v2355_v3, %v2357_v42  ;;  %v2593_v6 = vsel %vm2552_vm7, %v6888_v43, %v2355_v3  ;;  %2229 = vrot.lane.b32.xlu1 %v6070_v29, %s4543_s14  ;;  %v6891_v43 = vld [vmem:[#allocation75_spill] sm:$0xff] }
 0x33e   : > { %2227 = vrot.lane.b32.xlu0 %v6063_v49, %s4543_s14  ;;  %3067 = vmatprep.subr.bf16.mxu0 %v2594_v12 }
 0x33f   : > { %3068 = vmatpush1.bf16.msra.mxu0 %v2593_v6  ;;  %v6174_v61 = vpop.permute.xlu1 %2360 }
 0x340   : > { %v2359_v35 = vpop.permute.xlu0 %2358 }
 0x341   : > { %v2596_v44 = vsel %vm2552_vm7, %v2359_v35, %v6174_v61  ;;  %v2595_v14 = vsel %vm2552_vm7, %v2357_v42, %v2359_v35  ;;  %2233 = vrot.lane.b32.xlu1 %v6080_v56, %s4543_s14 }
 0x342   : > { %2231 = vrot.lane.b32.xlu0 %v6083_v57, %s4543_s14  ;;  %3149 = vmatprep.subr.bf16.mxu1 %v2596_v44 }
 0x343   : > { %3150 = vmatpush1.bf16.msra.mxu1 %v2595_v14  ;;  %v2383_v13 = vpop.permute.xlu1 %2382 }
 0x344   : > { %v2381_v7 = vpop.permute.xlu0 %2380 }
 0x345   : > { %v2606_v34 = vsel %vm2552_vm7, %v2381_v7, %v2383_v13  ;;  %v2605_v2 = vsel %vm2552_vm7, %v6889_v16, %v2381_v7  ;;  %2250 = vrot.lane.b32.xlu1 %v6083_v57, %s4534_s26  ;;  %v6212_v7 = vld [vmem:[%s4690_s8 + $0x2c] ss:$48 sps:$4 sm:$0xff]   ;;  %v6893_v16 = vld [vmem:[#allocation76_spill] sm:$0xff] }
 0x346   : > { %2248 = vrot.lane.b32.xlu0 %v6070_v29, %s4534_s26  ;;  %3069 = vmatprep.subr.bf16.mxu0 %v2606_v34 }
 0x347   : > { %3070 = vmatpush1.bf16.msra.mxu0 %v2605_v2  ;;  %v6190_v54 = vpop.permute.xlu1 %2386 }
 0x348   : > { %v2385_v9 = vpop.permute.xlu0 %2384 }
 0x349   : > { %v2608_v25 = vsel %vm2552_vm7, %v2385_v9, %v6190_v54  ;;  %v2607_v60 = vsel %vm2552_vm7, %v2383_v13, %v2385_v9  ;;  %1738 = vrot.lane.b32.xlu1 %v6063_v49, %s6890_s24  ;;  %v6224_v9 = vld [vmem:[%s4712_s15] ss:$24 sps:$4 sm:$0xff]  }
 0x34a   : > { %2252 = vrot.lane.b32.xlu0 %v6080_v56, %s4534_s26  ;;  %3151 = vmatprep.subr.bf16.mxu1 %v2608_v25  ;;  %s1091_s26 = smul.u32 12, %s4476_s19 }
 0x34b   : > { %3152 = vmatpush1.bf16.msra.mxu1 %v2607_v60  ;;  %v2409_v42 = vpop.permute.xlu1 %2408 }
 0x34c   : > { %v2407_v3 = vpop.permute.xlu0 %2406  ;;  %p1094_p4 = scmp.lt.s32.totalorder %s1091_s26, 23 }
 0x34d   : > { %v2618_v12 = vsel %vm2552_vm7, %v2407_v3, %v2409_v42  ;;  %v2617_v6 = vsel %vm2552_vm7, %v6891_v43, %v2407_v3  ;;  %2259 = vrot.lane.b32.xlu1 %v6083_v57, %s6892_s5 }
 0x34e   : > { %2257 = vrot.lane.b32.xlu0 %v6070_v29, %s6892_s5  ;;  %3071 = vmatprep.subr.bf16.mxu0 %v2618_v12  ;;  %v6894_v12 = vld [vmem:[#allocation77_spill] sm:$0xff]  ;;  %s7006_s26 = smov (!%p1094_p4, %s1091_s26), 23 }
 0x34f   : > { %3072 = vmatpush1.bf16.msra.mxu0 %v2617_v6  ;;  %v6206_v35 = vpop.permute.xlu1 %2412  ;;  %v4286_v6 = vld [vmem:[%s4712_s15 + $0x4] ss:$24 sps:$4 sm:$0xff]   ;;  %s1097_s19 = sadd.s32 %s3885_s6, %s7006_s26 }
 0x350   : > { %v2411_v44 = vpop.permute.xlu0 %2410  ;;  %s3802_s20 = sshll.u32 %s1097_s19, 1 }
 0x351   : > { %v2620_v14 = vsel %vm2552_vm7, %v2411_v44, %v6206_v35  ;;  %v2619_v13 = vsel %vm2552_vm7, %v2409_v42, %v2411_v44  ;;  %1783 = vrot.lane.b32.xlu1 %v6212_v7, %s4544_s10  ;;  %s6621_s25 = scalar_lea.vmem %s6666_s4, %s3802_s20 }
 0x352   : > { %2261 = vrot.lane.b32.xlu0 %v6080_v56, %s6892_s5  ;;  %3153 = vmatprep.subr.bf16.mxu1 %v2620_v14 }
 0x353   : > { %3154 = vmatpush1.bf16.msra.mxu1 %v2619_v13  ;;  %v2435_v29 = vpop.permute.xlu1 %2434 }
 0x354   : > { %v2433_v57 = vpop.permute.xlu0 %2432 }
 0x355   : > { %v2630_v34 = vsel %vm2552_vm7, %v2433_v57, %v2435_v29  ;;  %v2629_v2 = vsel %vm2552_vm7, %v6893_v16, %v2433_v57  ;;  %1787 = vrot.lane.b32.xlu1 %v5652_v10, %s4544_s10 }
 0x356   : > { %1785 = vrot.lane.b32.xlu0 %v6224_v9, %s4544_s10  ;;  %3073 = vmatprep.subr.bf16.mxu0 %v2630_v34 }
 0x357   : > { %3074 = vmatpush1.bf16.msra.mxu0 %v2629_v2  ;;  %v6228_v56 = vpop.permute.xlu1 %2438 }
 0x358   : > { %v2437_v25 = vpop.permute.xlu0 %2436 }
 0x359   : > { %v2632_v60 = vsel %vm2552_vm7, %v2437_v25, %v6228_v56  ;;  %v2631_v33 = vsel %vm2552_vm7, %v2435_v29, %v2437_v25  ;;  %1834 = vrot.lane.b32.xlu1 %v6212_v7, %s4545_s28 }
 0x35a   : > { %1789 = vrot.lane.b32.xlu0 %v6063_v49, %s4544_s10  ;;  %3155 = vmatprep.subr.bf16.mxu1 %v2632_v60 }
 0x35b   : > { %3156 = vmatpush1.bf16.msra.mxu1 %v2631_v33  ;;  %v2461_v10 = vpop.permute.xlu1 %2460 }
 0x35c   : > { %v2459_v42 = vpop.permute.xlu0 %2458 }
 0x35d   : > { %v2642_v3 = vsel %vm2552_vm7, %v2459_v42, %v2461_v10  ;;  %v2641_v43 = vsel %vm2552_vm7, %v6894_v12, %v2459_v42  ;;  %1838 = vrot.lane.b32.xlu1 %v4286_v6, %s4545_s28 }
 0x35e   : > { %1836 = vrot.lane.b32.xlu0 %v6224_v9, %s4545_s28  ;;  %3075 = vmatprep.subr.bf16.mxu0 %v2642_v3 }
 0x35f   : > { %3076 = vmatpush1.bf16.msra.mxu0 %v2641_v43  ;;  %v6244_v44 = vpop.permute.xlu1 %2464 }
 0x360   : > { %v2463_v14 = vpop.permute.xlu0 %2462 }
 0x361   : > { %v2644_v13 = vsel %vm2552_vm7, %v2463_v14, %v6244_v44  ;;  %v2643_v29 = vsel %vm2552_vm7, %v2461_v10, %v2463_v14  ;;  %1885 = vrot.lane.b32.xlu1 %v6212_v7, %s4546_s27 }
 0x362   : > { %1840 = vrot.lane.b32.xlu0 %v6063_v49, %s4545_s28  ;;  %3157 = vmatprep.subr.bf16.mxu1 %v2644_v13 }
 0x363   : > { %3158 = vmatpush1.bf16.msra.mxu1 %v2643_v29  ;;  %v2487_v57 = vpop.permute.xlu1 %2486 }
 0x364   : > { %v2485_v34 = vpop.permute.xlu0 %2484 }
 0x365   : > { %v2654_v16 = vsel %vm2552_vm7, %v2485_v34, %v2487_v57  ;;  %v2653_v2 = vsel %vm2552_vm7, %v5745_v21, %v2485_v34  ;;  %1889 = vrot.lane.b32.xlu1 %v4286_v6, %s4546_s27 }
 0x366   : > { %1887 = vrot.lane.b32.xlu0 %v6224_v9, %s4546_s27  ;;  %3077 = vmatprep.subr.bf16.mxu0 %v2654_v16 }
 0x367   : > { %3078 = vmatpush1.bf16.msra.mxu0 %v2653_v2  ;;  %v6259_v25 = vpop.permute.xlu1 %2490 }
 0x368   : > { %v2489_v60 = vpop.permute.xlu0 %2488 }
 0x369   : > { %v2656_v33 = vsel %vm2552_vm7, %v2489_v60, %v6259_v25  ;;  %v2655_v10 = vsel %vm2552_vm7, %v2487_v57, %v2489_v60  ;;  %1936 = vrot.lane.b32.xlu1 %v6212_v7, %s4548_s29 }
 0x36a   : > { %1891 = vrot.lane.b32.xlu0 %v6063_v49, %s4546_s27  ;;  %3159 = vmatprep.subr.bf16.mxu1 %v2656_v33  ;;  %v6895_v33 = vld [vmem:[#allocation6_spill] sm:$0xff] }
 0x36b   : > { %3160 = vmatpush1.bf16.msra.mxu1 %v2655_v10  ;;  %v2513_v21 = vpop.permute.xlu1 %2512  ;;  %v1242_v10 = vsel %vm1230_vm0, %v4856_v31, %v6895_v33 }
 0x36c   : > { %v2511_v42 = vpop.permute.xlu0 %2510 }
 0x36d   : > { %v2666_v3 = vsel %vm2552_vm7, %v2511_v42, %v2513_v21  ;;  %v2665_v12 = vsel %vm2552_vm7, %v5762_v27, %v2511_v42  ;;  %1940 = vrot.lane.b32.xlu1 %v4286_v6, %s4548_s29  ;;  %v4287_v42 = vld [vmem:[%s4690_s8 + $0x24] ss:$48 sps:$4 sm:$0xff]  }
 0x36e   : > { %1938 = vrot.lane.b32.xlu0 %v6224_v9, %s4548_s29  ;;  %3079 = vmatprep.subr.bf16.mxu0 %v2666_v3 }
 0x36f   : > { %3080 = vmatpush1.bf16.msra.mxu0 %v2665_v12  ;;  %v6274_v43 = vpop.permute.xlu1 %2516 }
 0x370   : > { %v2515_v14 = vpop.permute.xlu0 %2514 }
 0x371   : > { %v2668_v13 = vsel %vm2552_vm7, %v2515_v14, %v6274_v43  ;;  %v2667_v29 = vsel %vm2552_vm7, %v2513_v21, %v2515_v14  ;;  %2284 = vrot.lane.b32.xlu1 %v6212_v7, %s4549_s30 }
 0x372   : > { %1942 = vrot.lane.b32.xlu0 %v6063_v49, %s4548_s29  ;;  %3161 = vmatprep.subr.bf16.mxu1 %v2668_v13 }
 0x373   : > { %3162 = vmatpush1.bf16.msra.mxu1 %v2667_v29  ;;  %v2539_v27 = vpop.permute.xlu1 %2538  ;;  %v6896_v29 = vld [vmem:[#allocation7_spill] sm:$0xff] }
 0x374   : > { %v2537_v57 = vpop.permute.xlu0 %2536 }
 0x375   : > { %v2678_v34 = vsel %vm2552_vm7, %v2537_v57, %v2539_v27  ;;  %v2677_v16 = vsel %vm2552_vm7, %v5789_v30, %v2537_v57  ;;  %2288 = vrot.lane.b32.xlu1 %v4286_v6, %s4549_s30  ;;  %v6898_v57 = vld [vmem:[#allocation78_spill] sm:$0xff] }
 0x376   : > { %2286 = vrot.lane.b32.xlu0 %v6224_v9, %s4549_s30  ;;  %3081 = vmatprep.subr.bf16.mxu0 %v2678_v34  ;;  %v4288_v9 = vld [vmem:[%s4690_s8 + $0x20] ss:$48 sps:$4 sm:$0xff]  }
 0x377   : > { %3082 = vmatpush1.bf16.msra.mxu0 %v2677_v16  ;;  %v6289_v2 = vpop.permute.xlu1 %2542  ;;  %v6899_v16 = vld [vmem:[#allocation9_spill] sm:$0xff] }
 0x378   : > { %v2541_v60 = vpop.permute.xlu0 %2540  ;;  %3184 = vmatprep.subr.bf16.mxu0 %v4287_v42 }
 0x379   : > { %v2680_v21 = vsel %vm2552_vm7, %v2541_v60, %v6289_v2  ;;  %v2679_v30 = vsel %vm2552_vm7, %v2539_v27, %v2541_v60  ;;  %2310 = vrot.lane.b32.xlu1 %v1242_v10, %s4549_s30  ;;  %v6897_v27 = vld [vmem:[#allocation8_spill] sm:$0xff]  ;;  %v6900_v60 = vld [vmem:[#allocation10_spill] sm:$0xff] }
 0x37a   : > { %2290 = vrot.lane.b32.xlu0 %v6063_v49, %s4549_s30  ;;  %3163 = vmatprep.subr.bf16.mxu1 %v2680_v21  ;;  %v4289_v49 = vld [vmem:[%s4690_s8 + $0x28] ss:$48 sps:$4 sm:$0xff]  }
 0x37b   : > { %3094 = vmatmul.mubr.bf16.vlgmr.msra.gmra.mrb[4].mxu0 %v5787_v19  ;;  %3164 = vmatpush1.bf16.msra.mxu1 %v2679_v30  ;;  %v1972_v31 = vpop.permute.xlu1 %1971  ;;  %v6902_v21 = vld [vmem:[#allocation11_spill] sm:$0xff] }
 0x37c   : > { %3185 = vmatpush1.bf16.msra.mxu0 %v4288_v9  ;;  %v1970_v6 = vpop.permute.xlu0 %1969  ;;  %3266 = vmatprep.subr.bf16.mxu1 %v6212_v7  ;;  %v1292_v9 = vsel %vm1281_vm1, %v6896_v29, %v6900_v60 }
 0x37d   : > { %v1973_v3 = vsel %vm1230_vm0, %v6895_v33, %v1970_v6  ;;  %v1974_v12 = vsel %vm1230_vm0, %v1970_v6, %v1972_v31  ;;  %3186 = vmatprep.subr.bf16.mxu0 %v5775_v26  ;;  %3216 = vmatprep.mubr.bf16.mxu0 %v5358_v40  ;;  %v1291_v26 = vsel %vm1281_vm1, %v6897_v27, %v6896_v29  ;;  %v6903_v6 = vld [vmem:[#allocation14_spill] sm:$0xff]  ;;  %vm6911_vm0 = vcmask 883712  }
 0x37e   : > { %2314 = vrot.lane.b32.xlu1 %v1974_v12, %s4549_s30  ;;  %2312 = vrot.lane.b32.xlu0 %v1973_v3, %s4549_s30  ;;  %v1293_v33 = vsel %vm1281_vm1, %v6900_v60, %v6899_v16  ;;  %v6904_v3 = vld [vmem:[#allocation12_spill] sm:$0xff]  ;;  %v6909_v60 = vld [vmem:[#allocation22_spill] sm:$0xff] }
 0x37f   : > { %3176 = vmatmul.mubr.bf16.vlgmr.msra.gmra.mrb[4].mxu1 %v5787_v19  ;;  %v1996_v14 = vpop.permute.xlu1 %1995  ;;  %v1344_v12 = vsel %vm1332_vm2, %v6904_v3, %v6903_v6  ;;  %v6916_v6 = vld [vmem:[#allocation27_spill] sm:$0xff] }
 0x380   : > { %3187 = vmatpush1.bf16.msra.mxu0 %v5754_v59  ;;  %3267 = vmatpush1.bf16.msra.mxu1 %v4289_v49  ;;  %v1994_v13 = vpop.permute.xlu0 %1993  ;;  %v1290_v59 = vsel %vm1281_vm1, %v4893_v45, %v6897_v27  ;;  %vm6912_vm1 = vmmov %vm6911_vm0 }
 0x381   : > { %3268 = vmatprep.subr.bf16.mxu1 %v1242_v10  ;;  %v2010_v7 = vsel %vm2001_vm11, %v5802_v48, %v1994_v13  ;;  %3188 = vmatprep.subr.bf16.mxu0 %v1291_v26  ;;  %v6901_v10 = vld [vmem:[#allocation13_spill] sm:$0xff]  ;;  %v2011_v30 = vsel %vm2001_vm11, %v1994_v13, %v1996_v14  ;;  %v6906_v13 = vld [vmem:[#allocation16_spill] sm:$0xff] }
 0x382   : > { %2316 = vrot.lane.b32.xlu0 %v1972_v31, %s4549_s30  ;;  %2336 = vrot.lane.b32.xlu1 %v2010_v7, %s4549_s30  ;;  %v1342_v42 = vsel %vm1332_vm2, %v6902_v21, %v6901_v10  ;;  %v1392_v29 = vsel %vm1383_vm3, %v4991_v37, %v6906_v13  ;;  %v1343_v7 = vsel %vm1332_vm2, %v6901_v10, %v6904_v3  ;;  %v6917_v3 = vld [vmem:[#allocation28_spill] sm:$0xff] }
 0x383   : > { %3298 = vmatprep.mubr.bf16.mxu1 %v5358_v40  ;;  %v2000_v34 = vpop.permute.xlu1 %1999  ;;  %v1341_v40 = vsel %vm1332_vm2, %v4952_v0, %v6902_v21  ;;  %vm6915_vm2 = vmmov %vm6911_vm0 }
 0x384   : > { %3189 = vmatpush1.bf16.msra.mxu0 %v1290_v59  ;;  %3269 = vmatpush1.bf16.msra.mxu1 %v6898_v57  ;;  %v1998_v48 = vpop.permute.xlu0 %1997  ;;  %v6907_v57 = vld [vmem:[#allocation17_spill] sm:$0xff] }
 0x385   : > { %3270 = vmatprep.subr.bf16.mxu1 %v1293_v33  ;;  %v2012_v45 = vsel %vm2001_vm11, %v1996_v14, %v1998_v48  ;;  %3190 = vmatprep.subr.bf16.mxu0 %v1342_v42  ;;  %v6905_v14 = vld [vmem:[#allocation15_spill] sm:$0xff]  ;;  %v2013_v26 = vsel %vm2001_vm11, %v1998_v48, %v2000_v34  ;;  %v6908_v34 = vld [vmem:[#allocation18_spill] sm:$0xff]  ;;  %v6910_v33 = vld [vmem:[#allocation20_spill] sm:$0xff]  ;;  %vm6918_vm11 = vcmask 752640  }
 0x386   : > { %2338 = vrot.lane.b32.xlu0 %v2011_v30, %s4549_s30  ;;  %2340 = vrot.lane.b32.xlu1 %v2012_v45, %s4549_s30  ;;  %v1393_v27 = vsel %vm1383_vm3, %v6906_v13, %v6905_v14  ;;  %v1444_v48 = vsel %vm6911_vm0, %v6910_v33, %v6909_v60  ;;  %v1443_v10 = vsel %vm6912_vm1, %v5053_v52, %v6910_v33  ;;  %v6913_v45 = vld [vmem:[#allocation23_spill] sm:$0xff] }
 0x387   : > { %v2035_v31 = vpop.permute.xlu1 %2034  ;;  %v1394_v42 = vsel %vm1383_vm3, %v6905_v14, %v6908_v34 }
 0x388   : > { %3191 = vmatpush1.bf16.msra.mxu0 %v1341_v40  ;;  %3271 = vmatpush1.bf16.msra.mxu1 %v1292_v9  ;;  %v2033_v49 = vpop.permute.xlu0 %2032  ;;  %v6914_v40 = vld [vmem:[#allocation21_spill] sm:$0xff] }
 0x389   : > { %3272 = vmatprep.subr.bf16.mxu1 %v1344_v12  ;;  %v2049_v0 = vsel %vm2040_vm12, %v5832_v39, %v2033_v49  ;;  %3192 = vmatprep.subr.bf16.mxu0 %v1393_v27  ;;  %v1395_v39 = vsel %vm1383_vm3, %v6908_v34, %v6907_v57  ;;  %v2050_v21 = vsel %vm2040_vm12, %v2033_v49, %v2035_v31  ;;  %vm6920_vm3 = vmmov %vm6918_vm11  ;;  %v6925_v34 = vld [vmem:[#allocation38_spill] sm:$0xff] }
 0x38a   : > { %2342 = vrot.lane.b32.xlu0 %v2013_v26, %s4549_s30  ;;  %2362 = vrot.lane.b32.xlu1 %v2049_v0, %s4549_s30  ;;  %v1446_v9 = vsel %vm6915_vm2, %v6914_v40, %v6913_v45  ;;  %v1495_v12 = vsel %vm6918_vm11, %v6917_v3, %v6916_v6  ;;  %v1494_v27 = vsel %vm6920_vm3, %v6832_v4, %v6917_v3  ;;  %vm6924_vm13 = vmmov %vm6920_vm3  ;;  %v6933_v45 = vld [vmem:[#allocation37_spill] sm:$0xff]  ;;  %v6936_v3 = vld [vmem:[#allocation46_spill] sm:$0xff]  ;;  %vm6937_vm11 = vcmask 736256  }
 0x38b   : > { %v2039_v59 = vpop.permute.xlu1 %2038  ;;  %vm6931_vm1 = vmmov %vm6920_vm3  ;;  %vm6939_vm3 = vcmask 646144  }
 0x38c   : > { %3193 = vmatpush1.bf16.msra.mxu0 %v1392_v29  ;;  %3273 = vmatpush1.bf16.msra.mxu1 %v1343_v7  ;;  %v2037_v16 = vpop.permute.xlu0 %2036  ;;  %v6922_v29 = vld [vmem:[#allocation29_spill] sm:$0xff]  ;;  %v6923_v7 = vld [vmem:[#allocation30_spill] sm:$0xff] }
 0x38d   : > { %3274 = vmatprep.subr.bf16.mxu1 %v1395_v39  ;;  %v2051_v37 = vsel %vm2040_vm12, %v2035_v31, %v2037_v16  ;;  %3194 = vmatprep.subr.bf16.mxu0 %v1444_v48  ;;  %v2052_v49 = vsel %vm2040_vm12, %v2037_v16, %v2039_v59  ;;  %vm6921_vm12 = vmmov %vm6911_vm0  ;;  %v1497_v59 = vsel %vm6924_vm13, %v6923_v7, %v6922_v29  ;;  %v6926_v39 = vld [vmem:[#allocation35_spill] sm:$0xff] }
 0x38e   : > { %2364 = vrot.lane.b32.xlu0 %v2050_v21, %s4549_s30  ;;  %2366 = vrot.lane.b32.xlu1 %v2051_v37, %s4549_s30  ;;  %v1445_v26 = vsel %vm6921_vm12, %v6909_v60, %v6914_v40  ;;  %v1546_v16 = vsel %vm6927_vm4, %v6926_v39, %v6925_v34  ;;  %vm6930_vm0 = vmmov %vm6927_vm4  ;;  %v1496_v37 = vsel %vm6931_vm1, %v6916_v6, %v6923_v7 }
 0x38f   : > { %v2074_v30 = vpop.permute.xlu1 %2073  ;;  %v1545_v21 = vsel %vm6930_vm0, %v6839_v63, %v6926_v39  ;;  %vm6934_vm2 = vmmov %vm6930_vm0  ;;  %v6948_v39 = vld [vmem:[#allocation53_spill] sm:$0xff] }
 0x390   : > { %3195 = vmatpush1.bf16.msra.mxu0 %v1443_v10  ;;  %3275 = vmatpush1.bf16.msra.mxu1 %v1394_v42  ;;  %v2072_v31 = vpop.permute.xlu0 %2071  ;;  %vm6940_vm12 = vmmov %vm6937_vm11 }
 0x391   : > { %3276 = vmatprep.subr.bf16.mxu1 %v1446_v9  ;;  %v2088_v52 = vsel %vm6919_vm14, %v5868_v36, %v2072_v31  ;;  %3196 = vmatprep.subr.bf16.mxu0 %v1495_v12  ;;  %v2089_v33 = vsel %vm6928_vm6, %v2072_v31, %v2074_v30  ;;  %v6935_v31 = vld [vmem:[#allocation45_spill] sm:$0xff]  ;;  %vm6938_vm14 = vmmov %vm6929_vm5 }
 0x392   : > { %v6384_v14 = vpop.f32.mrb[0].mxu0  ;;  %2368 = vrot.lane.b32.xlu0 %v2052_v49, %s4549_s30  ;;  %2388 = vrot.lane.b32.xlu1 %v2088_v52, %s4549_s30  ;;  %v1597_v12 = vsel %vm6937_vm11, %v6936_v3, %v6935_v31  ;;  %vm6941_vm13 = vmmov %vm6930_vm0 }
 0x393   : > { %v6388_v13 = vpop.f32.mrb[1].mxu0  ;;  %v2078_v36 = vpop.permute.xlu1 %2077  ;;  %vm6944_vm4 = vmmov %vm6937_vm11  ;;  %vm6954_vm11 = vcmask 474112  }
 0x394   : > { %v2935_v0 = vpop.f32.mrb[2].mxu0  ;;  %3197 = vmatpush1.bf16.msra.mxu0 %v1494_v27  ;;  %3277 = vmatpush1.bf16.msra.mxu1 %v1445_v26  ;;  %v2076_v57 = vpop.permute.xlu0 %2075  ;;  %v1596_v27 = vsel %vm6940_vm12, %v6842_v17, %v6936_v3  ;;  %v1547_v26 = vsel %vm6941_vm13, %v6925_v34, %v6933_v45  ;;  %vm6945_vm6 = vmmov %vm6939_vm3 }
 0x395   : > { %3278 = vmatprep.subr.bf16.mxu1 %v1497_v59  ;;  %v2090_v4 = vsel %vm6929_vm5, %v2074_v30, %v2076_v57  ;;  %3198 = vmatprep.subr.bf16.mxu0 %v1546_v16  ;;  %v2936_v60 = vpop.f32.mrb[3].mxu0  ;;  %v6406_v48 = vpop.f32.mrb[0].mxu1  ;;  %v6932_v30 = vld [vmem:[#allocation39_spill] sm:$0xff]  ;;  %v2091_v63 = vsel %vm6938_vm14, %v2076_v57, %v2078_v36  ;;  %vm6946_vm5 = vmmov %vm6939_vm3  ;;  %v1650_v16 = vsel %vm1638_vm8, %v6871_v22, %v6948_v39 }
 0x396   : > { %2390 = vrot.lane.b32.xlu0 %v2089_v33, %s4549_s30  ;;  %2392 = vrot.lane.b32.xlu1 %v2090_v4, %s4549_s30  ;;  %v6414_v10 = vpop.f32.mrb[1].mxu1  ;;  %v1548_v40 = vsel %vm6934_vm2, %v6933_v45, %v6932_v30  ;;  %v6942_v36 = vld [vmem:[#allocation47_spill] sm:$0xff]  ;;  %vm6947_vm0 = vmmov %vm6944_vm4  ;;  %vm6950_vm2 = vcmask 637952   ;;  %v6951_v60 = vld [vmem:[#allocation57_spill] sm:$0xff] }
 0x397   : > { %v2113_v42 = vpop.permute.xlu1 %2112  ;;  %v3017_v49 = vpop.f32.mrb[2].mxu1  ;;  %vm6949_vm1 = vmmov %vm6939_vm3  ;;  %v1701_v22 = vsel %vm1689_vm9, %v6878_v51, %v6951_v60 }
 0x398   : > { %3199 = vmatpush1.bf16.msra.mxu0 %v1545_v21  ;;  %3279 = vmatpush1.bf16.msra.mxu1 %v1496_v37  ;;  %v2111_v9 = vpop.permute.xlu0 %2110  ;;  %v3018_v52 = vpop.f32.mrb[3].mxu1  ;;  %v6952_v37 = vld [vmem:[#allocation67_spill] sm:$0xff]  ;;  %vm6955_vm14 = vmmov %vm6950_vm2 }
 0x399   : > { %3280 = vmatprep.subr.bf16.mxu1 %v1548_v40  ;;  %v2127_v6 = vsel %vm6939_vm3, %v5904_v11, %v2111_v9  ;;  %3200 = vmatprep.subr.bf16.mxu0 %v1597_v12  ;;  %v6943_v11 = vld [vmem:[#allocation48_spill] sm:$0xff]  ;;  %v2128_v59 = vsel %vm6945_vm6, %v2111_v9, %v2113_v42  ;;  %vm6956_vm3 = vmmov %vm6950_vm2 }
 0x39a   : > { %2394 = vrot.lane.b32.xlu0 %v2091_v63, %s4549_s30  ;;  %2414 = vrot.lane.b32.xlu1 %v2127_v6, %s4549_s30  ;;  %v1599_v29 = vsel %vm6944_vm4, %v6943_v11, %v6942_v36  ;;  %v1598_v17 = vsel %vm6947_vm0, %v6935_v31, %v6943_v11  ;;  %vm6957_vm12 = vmmov %vm6954_vm11  ;;  %vm6959_vm4 = vcmask 629760  }
 0x39b   : > { %v2117_v0 = vpop.permute.xlu1 %2116  ;;  %vm6958_vm13 = vmmov %vm6950_vm2 }
 0x39c   : > { %3201 = vmatpush1.bf16.msra.mxu0 %v1596_v27  ;;  %3281 = vmatpush1.bf16.msra.mxu1 %v1547_v26  ;;  %v2115_v7 = vpop.permute.xlu0 %2114  ;;  %vm6960_vm6 = vmmov %vm6959_vm4 }
 0x39d   : > { %3282 = vmatprep.subr.bf16.mxu1 %v1599_v29  ;;  %v2129_v57 = vsel %vm6946_vm5, %v2113_v42, %v2115_v7  ;;  %3202 = vmatprep.subr.bf16.mxu0 %v6018_v46  ;;  %v2130_v4 = vsel %vm6949_vm1, %v2115_v7, %v2117_v0  ;;  %v6953_v42 = vld [vmem:[#allocation64_spill] sm:$0xff]  ;;  %vm6961_vm5 = vmmov %vm6959_vm4  ;;  %vm6963_vm1 = vcmask 498688   ;;  %v6967_v7 = vld [vmem:[#allocation66_spill] sm:$0xff] }
 0x39e   : > { %2416 = vrot.lane.b32.xlu0 %v2128_v59, %s4549_s30  ;;  %2418 = vrot.lane.b32.xlu1 %v2129_v57, %s4549_s30  ;;  %vm6962_vm0 = vmmov %vm6959_vm4 }
 0x39f   : > { %v2152_v34 = vpop.permute.xlu1 %2151 }
 0x3a0   : > { %3203 = vmatpush1.bf16.msra.mxu0 %v6000_v23  ;;  %3283 = vmatpush1.bf16.msra.mxu1 %v1598_v17  ;;  %v2150_v33 = vpop.permute.xlu0 %2149 }
 0x3a1   : > { %3284 = vmatprep.subr.bf16.mxu1 %v1650_v16  ;;  %v2166_v46 = vsel %vm6950_vm2, %v5938_v32, %v2150_v33  ;;  %3204 = vmatprep.subr.bf16.mxu0 %v6048_v28  ;;  %v1750_v32 = vsel %vm6954_vm11, %v6953_v42, %v6952_v37  ;;  %v2167_v28 = vsel %vm6955_vm14, %v2150_v33, %v2152_v34  ;;  %vm6964_vm2 = vmmov %vm6963_vm1 }
 0x3a2   : > { %2420 = vrot.lane.b32.xlu0 %v2130_v4, %s4549_s30  ;;  %2440 = vrot.lane.b32.xlu1 %v2166_v46, %s4549_s30  ;;  %vm6965_vm11 = vmmov %vm6963_vm1 }
 0x3a3   : > { %v2156_v23 = vpop.permute.xlu1 %2155  ;;  %vm6966_vm14 = vmmov %vm6963_vm1 }
 0x3a4   : > { %3205 = vmatpush1.bf16.msra.mxu0 %v6030_v24  ;;  %3285 = vmatpush1.bf16.msra.mxu1 %v6013_v5  ;;  %v2154_v21 = vpop.permute.xlu0 %2153  ;;  %v1749_v5 = vsel %vm6957_vm12, %v6860_v15, %v6953_v42 }
 0x3a5   : > { %3286 = vmatprep.subr.bf16.mxu1 %v1701_v22  ;;  %v2168_v30 = vsel %vm6956_vm3, %v2152_v34, %v2154_v21  ;;  %3206 = vmatprep.subr.bf16.mxu0 %v1750_v32  ;;  %v2169_v45 = vsel %vm6958_vm13, %v2154_v21, %v2156_v23  ;;  %vm6968_vm3 = vmmov %vm6957_vm12  ;;  %v2818_v21 = vld [vmem:[%s6665_s3] sm:$0x3] }
 0x3a6   : > { %2442 = vrot.lane.b32.xlu0 %v2167_v28, %s4549_s30  ;;  %2444 = vrot.lane.b32.xlu1 %v2168_v30, %s4549_s30  ;;  %vm6969_vm12 = vmmov %vm6968_vm3 }
 0x3a7   : > { %v2191_v24 = vpop.permute.xlu1 %2190  ;;  %v1751_v17 = vsel %vm6969_vm12, %v6952_v37, %v6967_v7 }
 0x3a8   : > { %3207 = vmatpush1.bf16.msra.mxu0 %v1749_v5  ;;  %3287 = vmatpush1.bf16.msra.mxu1 %v6043_v50  ;;  %v2189_v51 = vpop.permute.xlu0 %2188 }
 0x3a9   : > { %v2205_v40 = vsel %vm6959_vm4, %v5966_v20, %v2189_v51  ;;  %v2206_v3 = vsel %vm6960_vm6, %v2189_v51, %v2191_v24 }
 0x3aa   : > { %2446 = vrot.lane.b32.xlu0 %v2169_v45, %s4549_s30  ;;  %2466 = vrot.lane.b32.xlu1 %v2205_v40, %s4549_s30 }
 0x3ab   : > { %v2195_v9 = vpop.permute.xlu1 %2194 }
 0x3ac   : > { %v2193_v31 = vpop.permute.xlu0 %2192 }
 0x3ad   : > { %v2207_v15 = vsel %vm6961_vm5, %v2191_v24, %v2193_v31  ;;  %v2208_v63 = vsel %vm6962_vm0, %v2193_v31, %v2195_v9  ;;  %vm6974_vm5 = vcmask 334848  }
 0x3ae   : > { %2468 = vrot.lane.b32.xlu0 %v2206_v3, %s4549_s30  ;;  %2470 = vrot.lane.b32.xlu1 %v2207_v15, %s4549_s30  ;;  %vm6975_vm0 = vmmov %vm6974_vm5 }
 0x3af   : > { %v2230_v50 = vpop.permute.xlu1 %2229 }
 0x3b0   : > { %v2228_v12 = vpop.permute.xlu0 %2227 }
 0x3b1   : > { %v2244_v20 = vsel %vm6963_vm1, %v5988_v38, %v2228_v12  ;;  %v2245_v52 = vsel %vm6964_vm2, %v2228_v12, %v2230_v50  ;;  %vm6977_vm1 = vmmov %vm6975_vm0  ;;  %vm6978_vm2 = vcmask 326656  }
 0x3b2   : > { %2472 = vrot.lane.b32.xlu0 %v2208_v63, %s4549_s30  ;;  %2492 = vrot.lane.b32.xlu1 %v2244_v20, %s4549_s30 }
 0x3b3   : > { %v2234_v6 = vpop.permute.xlu1 %2233 }
 0x3b4   : > { %v2232_v49 = vpop.permute.xlu0 %2231 }
 0x3b5   : > { %v2246_v27 = vsel %vm6965_vm11, %v2230_v50, %v2232_v49  ;;  %v2247_v36 = vsel %vm6966_vm14, %v2232_v49, %v2234_v6  ;;  %vm6979_vm11 = vmmov %vm6978_vm2 }
 0x3b6   : > { %2494 = vrot.lane.b32.xlu0 %v2245_v52, %s4549_s30  ;;  %2496 = vrot.lane.b32.xlu1 %v2246_v27, %s4549_s30  ;;  %vm6980_vm14 = vmmov %vm6978_vm2 }
 0x3b7   : > { %v2251_v26 = vpop.permute.xlu1 %2250 }
 0x3b8   : > { %v2249_v0 = vpop.permute.xlu0 %2248 }
 0x3b9   : > { %v2255_v29 = vsel %vm1638_vm8, %v2249_v0, %v2251_v26  ;;  %v2254_v57 = vsel %vm1638_vm8, %v6948_v39, %v2249_v0 }
 0x3ba   : > { %2498 = vrot.lane.b32.xlu0 %v2247_v36, %s4549_s30  ;;  %2518 = vrot.lane.b32.xlu1 %v1650_v16, %s4549_s30 }
 0x3bb   : > { %v1739_v38 = vpop.permute.xlu1 %1738 }
 0x3bc   : > { %v2253_v11 = vpop.permute.xlu0 %2252  ;;  %v1752_v59 = vsel %vm6968_vm3, %v6967_v7, %v1739_v38  ;;  %vm6981_vm3 = vmmov %vm6978_vm2 }
 0x3bd   : > { %3288 = vmatprep.subr.bf16.mxu1 %v1752_v59  ;;  %v2256_v33 = vsel %vm1638_vm8, %v2251_v26, %v2253_v11  ;;  %vm6970_vm8 = vcmask 343040  }
 0x3be   : > { %2522 = vrot.lane.b32.xlu1 %v2255_v29, %s4549_s30  ;;  %2520 = vrot.lane.b32.xlu0 %v2254_v57, %s4549_s30  ;;  %vm6971_vm13 = vmmov %vm6970_vm8 }
 0x3bf   : > { %3289 = vmatpush1.bf16.msra.mxu1 %v1751_v17  ;;  %v2260_v34 = vpop.permute.xlu1 %2259  ;;  %vm6972_vm4 = vmmov %vm6970_vm8 }
 0x3c0   : > { %v2258_v16 = vpop.permute.xlu0 %2257  ;;  %vm6973_vm6 = vmmov %vm6972_vm4 }
 0x3c1   : > { %v2264_v46 = vsel %vm1689_vm9, %v2258_v16, %v2260_v34  ;;  %v2263_v23 = vsel %vm1689_vm9, %v6951_v60, %v2258_v16 }
 0x3c2   : > { %2544 = vrot.lane.b32.xlu1 %v1701_v22, %s4549_s30  ;;  %2524 = vrot.lane.b32.xlu0 %v2256_v33, %s4549_s30 }
 0x3c3   : > { %v1784_v4 = vpop.permute.xlu1 %1783 }
 0x3c4   : > { %v2262_v39 = vpop.permute.xlu0 %2261  ;;  %v1800_v32 = vsel %vm6971_vm13, %v6005_v58, %v1784_v4 }
 0x3c5   : > { %v2265_v28 = vsel %vm1689_vm9, %v2260_v34, %v2262_v39  ;;  %vm6976_vm9 = vmmov %vm6975_vm0 }
 0x3c6   : > { %2548 = vrot.lane.b32.xlu1 %v2264_v46, %s4549_s30  ;;  %2546 = vrot.lane.b32.xlu0 %v2263_v23, %s4549_s30 }
 0x3c7   : > { %v1788_v37 = vpop.permute.xlu1 %1787 }
 0x3c8   : > { %v1786_v42 = vpop.permute.xlu0 %1785 }
 0x3c9   : > { %v1801_v22 = vsel %vm6970_vm8, %v1784_v4, %v1786_v42  ;;  %v1802_v24 = vsel %vm6973_vm6, %v1786_v42, %v1788_v37 }
 0x3ca   : > { %2821 = vperm.xlu1 %4244, %v2818_v21   ;;  %3208 = vmatprep.subr.bf16.mxu0 %v1801_v22 }
 0x3cb   : > { %2550 = vrot.lane.b32.xlu0 %v2265_v28, %s4549_s30  ;;  %3209 = vmatpush1.bf16.msra.mxu0 %v1800_v32  ;;  %v1835_v60 = vpop.permute.xlu1 %1834 }
 0x3cc   : > { %v1790_v30 = vpop.permute.xlu0 %1789  ;;  %v1851_v58 = vsel %vm6975_vm0, %v6035_v62, %v1835_v60 }
 0x3cd   : > { %v1803_v5 = vsel %vm6972_vm4, %v1788_v37, %v1790_v30 }
 0x3ce   : > { %3290 = vmatprep.subr.bf16.mxu1 %v1803_v5 }
 0x3cf   : > { %3291 = vmatpush1.bf16.msra.mxu1 %v1802_v24  ;;  %v1839_v51 = vpop.permute.xlu1 %1838 }
 0x3d0   : > { %v1837_v45 = vpop.permute.xlu0 %1836 }
 0x3d1   : > { %v1852_v40 = vsel %vm6974_vm5, %v1835_v60, %v1837_v45  ;;  %v1853_v15 = vsel %vm6977_vm1, %v1837_v45, %v1839_v51 }
 0x3d2   : > { %3210 = vmatprep.subr.bf16.mxu0 %v1852_v40 }
 0x3d3   : > { %3211 = vmatpush1.bf16.msra.mxu0 %v1851_v58  ;;  %v1886_v9 = vpop.permute.xlu1 %1885 }
 0x3d4   : > { %v1841_v31 = vpop.permute.xlu0 %1840  ;;  %v1902_v20 = vsel %vm6979_vm11, %v6060_v8, %v1886_v9 }
 0x3d5   : > { %v1854_v3 = vsel %vm6976_vm9, %v1839_v51, %v1841_v31 }
 0x3d6   : > { %3292 = vmatprep.subr.bf16.mxu1 %v1854_v3 }
 0x3d7   : > { %3293 = vmatpush1.bf16.msra.mxu1 %v1853_v15  ;;  %v1890_v50 = vpop.permute.xlu1 %1889 }
 0x3d8   : > { %v1888_v12 = vpop.permute.xlu0 %1887 }
 0x3d9   : > { %v1903_v63 = vsel %vm6978_vm2, %v1886_v9, %v1888_v12  ;;  %v1904_v52 = vsel %vm6981_vm3, %v1888_v12, %v1890_v50 }
 0x3da   : > { %3212 = vmatprep.subr.bf16.mxu0 %v1903_v63 }
 0x3db   : > { %3213 = vmatpush1.bf16.msra.mxu0 %v1902_v20  ;;  %v1937_v62 = vpop.permute.xlu1 %1936 }
 0x3dc   : > { %v1892_v6 = vpop.permute.xlu0 %1891  ;;  %v1953_v36 = vsel %vm1944_vm10, %v6088_v18, %v1937_v62 }
 0x3dd   : > { %v1905_v49 = vsel %vm6980_vm14, %v1890_v50, %v1892_v6 }
 0x3de   : > { %3294 = vmatprep.subr.bf16.mxu1 %v1905_v49 }
 0x3df   : > { %3295 = vmatpush1.bf16.msra.mxu1 %v1904_v52  ;;  %v1941_v27 = vpop.permute.xlu1 %1940 }
 0x3e0   : > { %v1939_v26 = vpop.permute.xlu0 %1938 }
 0x3e1   : > { %v1954_v0 = vsel %vm1944_vm10, %v1937_v62, %v1939_v26  ;;  %v1955_v29 = vsel %vm1944_vm10, %v1939_v26, %v1941_v27 }
 0x3e2   : > { %3214 = vmatprep.subr.bf16.mxu0 %v1954_v0 }
 0x3e3   : > { %3215 = vmatpush1.bf16.msra.mxu0 %v1953_v36  ;;  %v2285_v8 = vpop.permute.xlu1 %2284 }
 0x3e4   : > { %v1943_v38 = vpop.permute.xlu0 %1942  ;;  %v2561_v18 = vsel %vm2552_vm7, %v6107_v1, %v2285_v8 }
 0x3e5   : > { %v1956_v11 = vsel %vm1944_vm10, %v1941_v27, %v1943_v38 }
 0x3e6   : > { %3296 = vmatprep.subr.bf16.mxu1 %v1956_v11  ;;  %3217 = vmatmul.mubr.bf16.vlgmr.msra.gmra.mrb[8].mxu0 %v5362_v41 }
 0x3e7   : > { %3297 = vmatpush1.bf16.msra.mxu1 %v1955_v29  ;;  %3826 = vmatprep.mubr.msk.bf16.mxu0 %vm2852_vm15, %v5588_v47  ;;  %v2289_v7 = vpop.permute.xlu1 %2288 }
 0x3e8   : > { %v2287_v59 = vpop.permute.xlu0 %2286 }
 0x3e9   : > { %v2562_v57 = vsel %vm2552_vm7, %v2285_v8, %v2287_v59  ;;  %v2563_v33 = vsel %vm2552_vm7, %v2287_v59, %v2289_v7 }
 0x3ea   : > { %3225 = vmatprep.subr.bf16.mxu0 %v2562_v57  ;;  %3299 = vmatmul.mubr.bf16.vlgmr.msra.gmra.mrb[8].mxu1 %v5362_v41 }
 0x3eb   : > { %3226 = vmatpush1.bf16.msra.mxu0 %v2561_v18  ;;  %3827 = vmatprep.mubr.msk.bf16.mxu1 %vm2852_vm15, %v5588_v47  ;;  %v2311_v17 = vpop.permute.xlu1 %2310 }
 0x3ec   : > { %v2291_v34 = vpop.permute.xlu0 %2290  ;;  %v2573_v1 = vsel %vm2552_vm7, %v6130_v55, %v2311_v17 }
 0x3ed   : > { %v2564_v16 = vsel %vm2552_vm7, %v2289_v7, %v2291_v34 }
 0x3ee   : > { %3307 = vmatprep.subr.bf16.mxu1 %v2564_v16 }
 0x3ef   : > { %3308 = vmatpush1.bf16.msra.mxu1 %v2563_v33 }
 0x3f0   : > { %v2315_v4 = vpop.permute.xlu1 %2314  ;;  %v2313_v39 = vpop.permute.xlu0 %2312 }
 0x3f1   : > { %v2574_v46 = vsel %vm2552_vm7, %v2311_v17, %v2313_v39  ;;  %v2575_v21 = vsel %vm2552_vm7, %v2313_v39, %v2315_v4 }
 0x3f2   : > { %3227 = vmatprep.subr.bf16.mxu0 %v2574_v46 }
 0x3f3   : > { %3228 = vmatpush1.bf16.msra.mxu0 %v2573_v1 }
 0x3f4   : > { %v2337_v41 = vpop.permute.xlu1 %2336  ;;  %v2317_v23 = vpop.permute.xlu0 %2316 }
 0x3f5   : > { %v2576_v47 = vsel %vm2552_vm7, %v2315_v4, %v2317_v23  ;;  %v2585_v32 = vsel %vm2552_vm7, %v6158_v53, %v2337_v41 }
 0x3f6   : > { %3309 = vmatprep.subr.bf16.mxu1 %v2576_v47 }
 0x3f7   : > { %3310 = vmatpush1.bf16.msra.mxu1 %v2575_v21 }
 0x3f8   : > { %v2341_v37 = vpop.permute.xlu1 %2340  ;;  %v2339_v42 = vpop.permute.xlu0 %2338 }
 0x3f9   : > { %v2586_v22 = vsel %vm2552_vm7, %v2337_v41, %v2339_v42  ;;  %v2587_v30 = vsel %vm2552_vm7, %v2339_v42, %v2341_v37 }
 0x3fa   : > { %3229 = vmatprep.subr.bf16.mxu0 %v2586_v22 }
 0x3fb   : > { %3230 = vmatpush1.bf16.msra.mxu0 %v2585_v32 }
 0x3fc   : > { %v2363_v55 = vpop.permute.xlu1 %2362  ;;  %v2343_v28 = vpop.permute.xlu0 %2342 }
 0x3fd   : > { %v2588_v60 = vsel %vm2552_vm7, %v2341_v37, %v2343_v28  ;;  %v2597_v45 = vsel %vm2552_vm7, %v6174_v61, %v2363_v55 }
 0x3fe   : > { %3311 = vmatprep.subr.bf16.mxu1 %v2588_v60 }
 0x3ff   : > { %3312 = vmatpush1.bf16.msra.mxu1 %v2587_v30 }
 0x400   : > { %v2367_v5 = vpop.permute.xlu1 %2366  ;;  %v2365_v24 = vpop.permute.xlu0 %2364 }
 0x401   : > { %v2598_v51 = vsel %vm2552_vm7, %v2363_v55, %v2365_v24  ;;  %v2599_v9 = vsel %vm2552_vm7, %v2365_v24, %v2367_v5 }
 0x402   : > { %3231 = vmatprep.subr.bf16.mxu0 %v2598_v51 }
 0x403   : > { %3232 = vmatpush1.bf16.msra.mxu0 %v2597_v45 }
 0x404   : > { %v2389_v53 = vpop.permute.xlu1 %2388  ;;  %v2369_v40 = vpop.permute.xlu0 %2368 }
 0x405   : > { %v2600_v58 = vsel %vm2552_vm7, %v2367_v5, %v2369_v40  ;;  %v2609_v50 = vsel %vm2552_vm7, %v6190_v54, %v2389_v53  ;;  %v4551_v40 = vmov 1983009808  }
 0x406   : > { %3313 = vmatprep.subr.bf16.mxu1 %v2600_v58  ;;  %v3399_v58 = vunpack.c.l.s4 %v4551_v40 }
 0x407   : > { %3314 = vmatpush1.bf16.msra.mxu1 %v2599_v9 }
 0x408   : > { %v2393_v31 = vpop.permute.xlu1 %2392  ;;  %v2391_v3 = vpop.permute.xlu0 %2390  ;;  %v3400_v9 = vunpack.c.0.s8 %v3399_v58 }
 0x409   : > { %v2610_v15 = vsel %vm2552_vm7, %v2389_v53, %v2391_v3  ;;  %v2611_v20 = vsel %vm2552_vm7, %v2391_v3, %v2393_v31 }
 0x40a   : > { %3233 = vmatprep.subr.bf16.mxu0 %v2610_v15 }
 0x40b   : > { %3234 = vmatpush1.bf16.msra.mxu0 %v2609_v50 }
 0x40c   : > { %v2415_v61 = vpop.permute.xlu1 %2414  ;;  %v2395_v12 = vpop.permute.xlu0 %2394 }
 0x40d   : > { %v2612_v63 = vsel %vm2552_vm7, %v2393_v31, %v2395_v12  ;;  %v2621_v52 = vsel %vm2552_vm7, %v6206_v35, %v2415_v61 }
 0x40e   : > { %3315 = vmatprep.subr.bf16.mxu1 %v2612_v63 }
 0x40f   : > { %3316 = vmatpush1.bf16.msra.mxu1 %v2611_v20  ;;  %v6982_v20 = vld [vmem:[#allocation60_spill] sm:$0xff] }
 0x410   : > { %v2419_v62 = vpop.permute.xlu1 %2418  ;;  %v2417_v6 = vpop.permute.xlu0 %2416 }
 0x411   : > { %v2622_v49 = vsel %vm2552_vm7, %v2415_v61, %v2417_v6  ;;  %v2623_v0 = vsel %vm2552_vm7, %v2417_v6, %v2419_v62 }
 0x412   : > { %3235 = vmatprep.subr.bf16.mxu0 %v2622_v49 }
 0x413   : > { %3236 = vmatpush1.bf16.msra.mxu0 %v2621_v52 }
 0x414   : > { %v2441_v54 = vpop.permute.xlu1 %2440  ;;  %v2421_v27 = vpop.permute.xlu0 %2420 }
 0x415   : > { %v2624_v26 = vsel %vm2552_vm7, %v2419_v62, %v2421_v27  ;;  %v2633_v11 = vsel %vm2552_vm7, %v6228_v56, %v2441_v54  ;;  %v6611_v62 = vsub.s32 %v3400_v9, %v6982_v20 }
 0x416   : > { %3317 = vmatprep.subr.bf16.mxu1 %v2624_v26 }
 0x417   : > { %3318 = vmatpush1.bf16.msra.mxu1 %v2623_v0 }
 0x418   : > { %v2445_v36 = vpop.permute.xlu1 %2444  ;;  %v2443_v8 = vpop.permute.xlu0 %2442 }
 0x419   : > { %v2634_v38 = vsel %vm2552_vm7, %v2441_v54, %v2443_v8  ;;  %v2635_v59 = vsel %vm2552_vm7, %v2443_v8, %v2445_v36 }
 0x41a   : > { %3237 = vmatprep.subr.bf16.mxu0 %v2634_v38 }
 0x41b   : > { %3238 = vmatpush1.bf16.msra.mxu0 %v2633_v11 }
 0x41c   : > { %v2467_v35 = vpop.permute.xlu1 %2466  ;;  %v2447_v29 = vpop.permute.xlu0 %2446 }
 0x41d   : > { %v2636_v7 = vsel %vm2552_vm7, %v2445_v36, %v2447_v29  ;;  %v2645_v34 = vsel %vm2552_vm7, %v6244_v44, %v2467_v35 }
 0x41e   : > { %3319 = vmatprep.subr.bf16.mxu1 %v2636_v7 }
 0x41f   : > { %3320 = vmatpush1.bf16.msra.mxu1 %v2635_v59 }
 0x420   : > { %v2471_v57 = vpop.permute.xlu1 %2470  ;;  %v2469_v18 = vpop.permute.xlu0 %2468 }
 0x421   : > { %v2646_v17 = vsel %vm2552_vm7, %v2467_v35, %v2469_v18  ;;  %v2647_v4 = vsel %vm2552_vm7, %v2469_v18, %v2471_v57 }
 0x422   : > { %3239 = vmatprep.subr.bf16.mxu0 %v2646_v17 }
 0x423   : > { %3240 = vmatpush1.bf16.msra.mxu0 %v2645_v34 }
 0x424   : > { %v2493_v56 = vpop.permute.xlu1 %2492  ;;  %v2473_v16 = vpop.permute.xlu0 %2472 }
 0x425   : > { %v2648_v33 = vsel %vm2552_vm7, %v2471_v57, %v2473_v16  ;;  %v2657_v41 = vsel %vm2552_vm7, %v6259_v25, %v2493_v56 }
 0x426   : > { %3321 = vmatprep.subr.bf16.mxu1 %v2648_v33 }
 0x427   : > { %3322 = vmatpush1.bf16.msra.mxu1 %v2647_v4 }
 0x428   : > { %v2497_v39 = vpop.permute.xlu1 %2496  ;;  %v2495_v46 = vpop.permute.xlu0 %2494 }
 0x429   : > { %v2658_v1 = vsel %vm2552_vm7, %v2493_v56, %v2495_v46  ;;  %v2659_v21 = vsel %vm2552_vm7, %v2495_v46, %v2497_v39 }
 0x42a   : > { %3241 = vmatprep.subr.bf16.mxu0 %v2658_v1 }
 0x42b   : > { %3242 = vmatpush1.bf16.msra.mxu0 %v2657_v41 }
 0x42c   : > { %v2519_v44 = vpop.permute.xlu1 %2518  ;;  %v2499_v23 = vpop.permute.xlu0 %2498 }
 0x42d   : > { %v2660_v47 = vsel %vm2552_vm7, %v2497_v39, %v2499_v23  ;;  %v2669_v32 = vsel %vm2552_vm7, %v6274_v43, %v2519_v44 }
 0x42e   : > { %3323 = vmatprep.subr.bf16.mxu1 %v2660_v47 }
 0x42f   : > { %3324 = vmatpush1.bf16.msra.mxu1 %v2659_v21 }
 0x430   : > { %v2523_v37 = vpop.permute.xlu1 %2522  ;;  %v2521_v42 = vpop.permute.xlu0 %2520 }
 0x431   : > { %v2670_v22 = vsel %vm2552_vm7, %v2519_v44, %v2521_v42  ;;  %v2671_v60 = vsel %vm2552_vm7, %v2521_v42, %v2523_v37 }
 0x432   : > { %3243 = vmatprep.subr.bf16.mxu0 %v2670_v22 }
 0x433   : > { %3244 = vmatpush1.bf16.msra.mxu0 %v2669_v32 }
 0x434   : > { %v2525_v25 = vpop.permute.xlu0 %2524  ;;  %v2545_v55 = vpop.permute.xlu1 %2544 }
 0x435   : > { %v2672_v28 = vsel %vm2552_vm7, %v2523_v37, %v2525_v25  ;;  %v2681_v24 = vsel %vm2552_vm7, %v6289_v2, %v2545_v55 }
 0x436   : > { %3325 = vmatprep.subr.bf16.mxu1 %v2672_v28 }
 0x437   : > { %3326 = vmatpush1.bf16.msra.mxu1 %v2671_v60 }
 0x438   : > { %v2547_v30 = vpop.permute.xlu0 %2546  ;;  %v2549_v43 = vpop.permute.xlu1 %2548 }
 0x439   : > { %v2682_v5 = vsel %vm2552_vm7, %v2545_v55, %v2547_v30  ;;  %v2683_v53 = vsel %vm2552_vm7, %v2547_v30, %v2549_v43 }
 0x43a   : > { %3245 = vmatprep.subr.bf16.mxu0 %v2682_v5 }
 0x43b   : > { %3246 = vmatpush1.bf16.msra.mxu0 %v2681_v24 }
 0x43d   : > { %v2551_v51 = vpop.permute.xlu0 %2550 }
 0x43e   : > { %v2684_v45 = vsel %vm2552_vm7, %v2549_v43, %v2551_v51  ;;  %3258 = vmatmul.mubr.bf16.vlgmr.msra.gmra.mrb[8].mxu0 %v5787_v19 }
 0x43f   : > { %3327 = vmatprep.subr.bf16.mxu1 %v2684_v45 }
 0x440   : > { %3328 = vmatpush1.bf16.msra.mxu1 %v2683_v53 }
 0x443   : > { %3340 = vmatmul.mubr.bf16.vlgmr.msra.gmra.mrb[8].mxu1 %v5787_v19 }
 0x449   : > { %v6600_v2 = vpop.permute.xlu1 %2821 }
 0x44a   : > { %v3844_v31 = vadd.f32 %v6384_v14, %v6600_v2  ;;  %v3845_v3 = vadd.f32 %v6388_v13, %v6600_v2  ;;  %v3846_v15 = vadd.f32 %v6406_v48, %v6600_v2  ;;  %v3847_v19 = vadd.f32 %v6414_v10, %v6600_v2 }
 0x44c   : > { %vm3348_vm7 = vcmp.ge.f32.partialorder %v3844_v31, 0.0  ;;  %vm3349_vm10 = vcmp.ge.f32.partialorder %v3845_v3, 0.0  ;;  %vm3350_vm15 = vcmp.ge.f32.partialorder %v3846_v15, 0.0  ;;  %vm3351_vm12 = vcmp.ge.f32.partialorder %v3847_v19, 0.0 }
 0x44d   : > { %v3360_v50 = vmul.f32 0.1, %v3844_v31  ;;  %v3361_v61 = vmul.f32 0.1, %v3845_v3  ;;  %v3362_v12 = vmul.f32 0.1, %v3846_v15 }
 0x44e   : > { %v3095_v63 = vpop.f32.mrb[4].mxu0  ;;  %v3363_v14 = vmul.f32 0.1, %v3847_v19 }
 0x44f   : > { %v3848_v13 = vadd.f32 %v3095_v63, %v6600_v2  ;;  %v3097_v6 = vpop.f32.mrb[5].mxu0  ;;  %v3372_v48 = vsel %vm3348_vm7, %v3844_v31, %v3360_v50  ;;  %v3373_v49 = vsel %vm3349_vm10, %v3845_v3, %v3361_v61  ;;  %v3374_v52 = vsel %vm3350_vm15, %v3846_v15, %v3362_v12 }
 0x450   : > { %v3849_v10 = vadd.f32 %v3097_v6, %v6600_v2  ;;  %v3375_v54 = vsel %vm3351_vm12, %v3847_v19, %v3363_v14  ;;  %v3396_v27 = vcombine.low %v3372_v48, %v3373_v49  ;;  %v3099_v26 = vpop.f32.mrb[6].mxu0 }
 0x451   : > { %vm3352_vm8 = vcmp.ge.f32.partialorder %v3848_v13, 0.0  ;;  %v3364_v0 = vmul.f32 0.1, %v3848_v13  ;;  %v3397_v36 = vcombine.low %v3374_v52, %v3375_v54  ;;  %v3100_v8 = vpop.f32.mrb[7].mxu0 }
 0x452   : > { %v3177_v38 = vpop.f32.mrb[4].mxu1  ;;  %vm3353_vm13 = vcmp.ge.f32.partialorder %v3849_v10, 0.0  ;;  %v3365_v11 = vmul.f32 0.1, %v3849_v10  ;;  %v3404_v35 = vrot.slane %v3396_v27, %v6611_v62 }
 0x453   : > { %v3376_v29 = vsel %vm3352_vm8, %v3848_v13, %v3364_v0  ;;  %v3850_v7 = vadd.f32 %v3177_v38, %v6600_v2  ;;  %v3179_v59 = vpop.f32.mrb[5].mxu1  ;;  %v3411_v57 = vrot.slane %v3397_v36, %v6611_v62 }
 0x454   : > { %v3377_v18 = vsel %vm3353_vm13, %v3849_v10, %v3365_v11  ;;  %v3851_v17 = vadd.f32 %v3179_v59, %v6600_v2  ;;  %v3181_v34 = vpop.f32.mrb[6].mxu1 }
 0x455   : > { %vm3354_vm4 = vcmp.ge.f32.partialorder %v3850_v7, 0.0  ;;  %v3366_v56 = vmul.f32 0.1, %v3850_v7  ;;  %v3413_v16 = vcombine.low %v3376_v29, %v3377_v18  ;;  %v3412_v33 = vcombine.low %v3404_v35, %v3411_v57  ;;  %v3182_v4 = vpop.f32.mrb[7].mxu1 }
 0x456   : > { %vm3355_vm6 = vcmp.ge.f32.partialorder %v3851_v17, 0.0  ;;  %v3367_v39 = vmul.f32 0.1, %v3851_v17 }
 0x457   : > { %v3378_v46 = vsel %vm3354_vm4, %v3850_v7, %v3366_v56  ;;  %3450 = vst [vmem:[%s6621_s25] sm:$0xff] %v3412_v33  ;;  %v3421_v41 = vrot.slane %v3413_v16, %v6611_v62 }
 0x458   : > { %v3379_v1 = vsel %vm3355_vm6, %v3851_v17, %v3367_v39 }
 0x459   : > { %v3414_v44 = vcombine.low %v3378_v46, %v3379_v1 }
 0x45b   : > { %v3428_v23 = vrot.slane %v3414_v44, %v6611_v62 }
 0x45d   : > { %v3429_v47 = vcombine.low %v3421_v41, %v3428_v23 }
 0x45f   : > { %3451 = vst [vmem:[%s6621_s25 + $0x8] sm:$0xff] %v3429_v47 }
 0x511   : > { %v3259_v21 = vpop.f32.mrb[8].mxu0 }
 0x512   : > { %v3852_v37 = vadd.f32 %v3259_v21, %v6600_v2  ;;  %v3261_v42 = vpop.f32.mrb[9].mxu0 }
 0x513   : > { %v3853_v22 = vadd.f32 %v3261_v42, %v6600_v2  ;;  %v3263_v32 = vpop.f32.mrb[10].mxu0 }
 0x514   : > { %vm3356_vm5 = vcmp.ge.f32.partialorder %v3852_v37, 0.0  ;;  %v3368_v25 = vmul.f32 0.1, %v3852_v37  ;;  %v3264_v55 = vpop.f32.mrb[11].mxu0 }
 0x515   : > { %vm3357_vm0 = vcmp.ge.f32.partialorder %v3853_v22, 0.0  ;;  %v3369_v28 = vmul.f32 0.1, %v3853_v22 }
 0x516   : > { %v3341_v60 = vpop.f32.mrb[8].mxu1  ;;  %v3380_v30 = vsel %vm3356_vm5, %v3852_v37, %v3368_v25 }
 0x517   : > { %v3854_v5 = vadd.f32 %v3341_v60, %v6600_v2  ;;  %v3343_v24 = vpop.f32.mrb[9].mxu1  ;;  %v3381_v43 = vsel %vm3357_vm0, %v3853_v22, %v3369_v28 }
 0x518   : > { %v3855_v51 = vadd.f32 %v3343_v24, %v6600_v2  ;;  %v3345_v45 = vpop.f32.mrb[10].mxu1  ;;  %v3430_v53 = vcombine.low %v3380_v30, %v3381_v43 }
 0x519   : > { %vm3358_vm9 = vcmp.ge.f32.partialorder %v3854_v5, 0.0  ;;  %v3370_v40 = vmul.f32 0.1, %v3854_v5  ;;  %v3346_v58 = vpop.f32.mrb[11].mxu1 }
 0x51a   : > { %vm3359_vm1 = vcmp.ge.f32.partialorder %v3855_v51, 0.0  ;;  %v3371_v9 = vmul.f32 0.1, %v3855_v51  ;;  %v3438_v19 = vrot.slane %v3430_v53, %v6611_v62 }
 0x51b   : > { %v3382_v31 = vsel %vm3358_vm9, %v3854_v5, %v3370_v40 }
 0x51c   : > { %v3383_v3 = vsel %vm3359_vm1, %v3855_v51, %v3371_v9 }
 0x51d   : > { %v3431_v15 = vcombine.low %v3382_v31, %v3383_v3 }
 0x51f   : > { %v3445_v50 = vrot.slane %v3431_v15, %v6611_v62 }
 0x521   : > { %v3446_v61 = vcombine.low %v3438_v19, %v3445_v50 }
 0x523   : > { %3452 = vst [vmem:[%s6621_s25 + $0x10] sm:$0xff] %v3446_v61 }
 0x524 PF: > { %s14_s23 = sadd.s32 1, %s4492_s23   ;;  %s6983_s9 = sld [smem:[#allocation4_spill]] }
 0x525   : > { %p11_p5 = scmp.ge.s32.totalorder %s14_s23, 6   ;;  %s6984_s14 = sld [smem:[#allocation5_spill]] }
 0x526   : > { %s6985_s15 = smov %s4464_s16  ;;  %s6986_s16 = smov %s4652_s13 }
 0x527   : > { %s6987_s17 = smov %s4472_s18  ;;  %s6988_s18 = smov %s4649_s12 }
 0x528   : > { %s6989_s19 = smov %s4484_s21  ;;  %s6990_s20 = smov %s4488_s22 }
 0x529   :  { %13 = sbr.rel (!%p11_p5) target bundleno = 5 (0x5), region = 335 }
 0x52a   : > { %s6991_s21 = smov %s6983_s9 }
 0x52b   : > { %s6992_s22 = smov %s6984_s14 }

</bundles_post_ra>
